<compile_context>
chip_gen: v7x
topology: tpu7x:2x2x1
jax: 0.10.0
libtpu: 0.0.40
codegen_flags: <defaults>
</compile_context>

<pallas_src>
import jax
import jax.numpy as jnp
import numpy as np
from jax.experimental import pallas as pl
from jax.experimental.pallas import tpu as pltpu


def _round_up(x, m):
    return ((x + m - 1) // m) * m


# ---------------------------------------------------------------------------
# Packed-layout bookkeeping.
# ---------------------------------------------------------------------------
def make_layout(cfg):
    ie, iq = cfg["item_emb_size"], cfg["item_emb_size"] // 4
    inum, imem = cfg["item_num"], cfg["item_mem_num"]
    ms, hs = cfg["mem_size"], cfg["hidden_size"]

    L = {}
    L["MS_PAD"] = _round_up(ms, 128)            # padded cf width
    L["HID_PAD"] = _round_up(3 * hs, 128)       # packed hidden width (3 branches)
    L["W0_COLS"] = L["MS_PAD"] + L["HID_PAD"]   # fused stage-1 weight width

    # stage-2 packed output s: [ small heads | EL (m-major) | ER ]
    L["W1_OFF"] = 0                             # ie*iq
    L["B1_OFF"] = ie * iq                       # iq
    L["W2_OFF"] = ie * iq + iq                  # iq
    L["B2_OFF"] = ie * iq + 2 * iq              # 1
    small_w = ie * iq + 2 * iq + 1
    L["SMALL_PAD"] = _round_up(small_w, 128)
    L["EL_OFF"] = L["SMALL_PAD"]
    L["ER_OFF"] = L["EL_OFF"] + _round_up(inum * imem, 128)
    L["OUT2"] = L["ER_OFF"] + _round_up(imem * ie, 128)

    # merged HBM output slab: [ cf | small heads | item_embedding ]
    L["ITEM_W"] = inum * ie
    L["HEADS_OFF"] = L["MS_PAD"]
    L["ITEM_OFF"] = L["MS_PAD"] + L["SMALL_PAD"]
    L["SLAB_W"] = L["ITEM_OFF"] + _round_up(L["ITEM_W"], 128)
    return L


# ---------------------------------------------------------------------------
# Pack raw parameters (done once).  `compute_dtype` controls the MXU operand
# dtype (bf16 recommended on v6e/v7x, f32 on v5e); biases stay f32.
# ---------------------------------------------------------------------------
def pack_params(p, cfg, compute_dtype=jnp.bfloat16):
    ie, iq = cfg["item_emb_size"], cfg["item_emb_size"] // 4
    inum, imem = cfg["item_num"], cfg["item_mem_num"]
    ms, hs, ue = cfg["mem_size"], cfg["hidden_size"], cfg["user_emb_size"]
    L = make_layout(cfg)
    f32 = jnp.float32

    # ---- stage 1: W0 = [ memory | memory @ Wh ]  (fold done once, in f32) ----
    wh = jnp.zeros((ms, L["HID_PAD"]), f32)
    wh = wh.at[:, 0 * hs:1 * hs].set(p["w1h"])
    wh = wh.at[:, 1 * hs:2 * hs].set(p["w2h"])
    wh = wh.at[:, 2 * hs:3 * hs].set(p["w3h"])
    w0 = jnp.zeros((ue, L["W0_COLS"]), f32)
    w0 = w0.at[:, :ms].set(p["memory"])
    w0 = w0.at[:, L["MS_PAD"]:].set(p["memory"] @ wh)
    b0 = jnp.zeros((1, L["W0_COLS"]), f32)
    b0 = b0.at[:, L["MS_PAD"] + 0 * hs:L["MS_PAD"] + 1 * hs].set(p["b1h"])
    b0 = b0.at[:, L["MS_PAD"] + 1 * hs:L["MS_PAD"] + 2 * hs].set(p["b2h"])
    b0 = b0.at[:, L["MS_PAD"] + 2 * hs:L["MS_PAD"] + 3 * hs].set(p["b3h"])

    # ---- stage 2: block-diagonal packed heads + EL (m-major) + ER ------------
    w2 = jnp.zeros((L["HID_PAD"], L["OUT2"]), f32)
    b2 = jnp.zeros((1, L["OUT2"]), f32)

    def put(w2, b2, row0, col0, w, b):
        w2 = w2.at[row0:row0 + w.shape[0], col0:col0 + w.shape[1]].set(w)
        b2 = b2.at[:, col0:col0 + b.shape[1]].set(b)
        return w2, b2

    w2, b2 = put(w2, b2, 0 * hs, L["W1_OFF"], p["w1w"], p["b1w"])
    w2, b2 = put(w2, b2, 0 * hs, L["B1_OFF"], p["w1b"], p["b1b"])
    w2, b2 = put(w2, b2, 1 * hs, L["W2_OFF"], p["w2w"], p["b2w"])
    w2, b2 = put(w2, b2, 1 * hs, L["B2_OFF"], p["w2b"], p["b2b"])
    # emb_left columns reordered to m-major (col = m*item_num + n) so each
    # m-slice of the stage-2 output is a contiguous lane group for the tail.
    we1_m = p["we1"].reshape(hs, inum, imem).transpose(0, 2, 1).reshape(hs, inum * imem)
    be1_m = p["be1"].reshape(1, inum, imem).transpose(0, 2, 1).reshape(1, inum * imem)
    w2, b2 = put(w2, b2, 2 * hs, L["EL_OFF"], we1_m, be1_m)
    w2, b2 = put(w2, b2, 2 * hs, L["ER_OFF"], p["we2"], p["be2"])

    cd = compute_dtype
    return {"user_embedding": p["user_embedding"],
            "w0": w0.astype(cd), "b0": b0,          # biases kept f32
            "w2": w2.astype(cd), "b2": b2}


# ---------------------------------------------------------------------------
# Fused kernel.
# ---------------------------------------------------------------------------
def _make_kernel(TB, L, cfg, compute_dtype):
    inum, imem, ie = cfg["item_num"], cfg["item_mem_num"], cfg["item_emb_size"]
    MS_PAD, SMALL_PAD = L["MS_PAD"], L["SMALL_PAD"]
    EL_OFF, ER_OFF = L["EL_OFF"], L["ER_OFF"]
    HEADS_OFF, ITEM_OFF = L["HEADS_OFF"], L["ITEM_OFF"]
    ITEM_W = inum * ie

    def kernel(ue_ref, w0_ref, b0_ref, w2_ref, b2_ref, out_ref):
        # Stage 1 (memory@Wh folded at pack time): one matmul yields both
        # cf_vec and the pre-relu hidden activations of all three branches.
        t = jnp.dot(ue_ref[...], w0_ref[...],
                    preferred_element_type=jnp.float32) + b0_ref[...]
        cf = t[:, :MS_PAD]                                   # (TB, MS_PAD)
        h = jnp.maximum(t[:, MS_PAD:], 0.0)                  # (TB, HID_PAD)

        # Stage 2: single block-diagonal matmul for all six heads.
        s = jnp.dot(h.astype(compute_dtype), w2_ref[...],
                    preferred_element_type=jnp.float32) + b2_ref[...]

        # item_embedding = emb_left @ emb_right, unrolled over item_mem_num on
        # the VPU (no per-row tiny MXU matmuls); EL/ER never leave VMEM.
        acc = jnp.zeros((TB, inum, ie), jnp.float32)
        for m in range(imem):                                # imem small; unrolled
            el_m = s[:, EL_OFF + m * inum:EL_OFF + (m + 1) * inum]   # (TB, inum)
            er_m = s[:, ER_OFF + m * ie:ER_OFF + (m + 1) * ie]       # (TB, ie)
            acc = acc + el_m.reshape(TB, inum, 1) * er_m.reshape(TB, 1, ie)

        # Single merged lane-dense output slab (all stores 128-aligned):
        #   [ cf | small heads | item_embedding ]   -- EL/ER lanes are NOT stored.
        out_ref[:, :MS_PAD] = cf
        out_ref[:, HEADS_OFF:HEADS_OFF + SMALL_PAD] = s[:, :SMALL_PAD]
        out_ref[:, ITEM_OFF:ITEM_OFF + ITEM_W] = acc.reshape(TB, ITEM_W)

    return kernel


# ---------------------------------------------------------------------------
# Batch-tile selection: big tiles for MXU row fill, but keep >=2 grid steps
# once the batch is large so v7x's second TensorCore gets work.
# ---------------------------------------------------------------------------
def _pick_tb(B, tb_max=512):
    B8 = _round_up(max(B, 1), 8)
    if B8 < 256:                       # small batch: one tile, done
        return B8, B8
    TB = min(_round_up(tb_max, 128), _round_up(pl.cdiv(B8, 2), 128))
    TB = min(TB, B8)
    return TB, _round_up(B8, TB)


# ---------------------------------------------------------------------------
# Wrapper: gather, padding, BlockSpecs, output unpacking.
# ---------------------------------------------------------------------------
def meta_recommender_forward(user_id, packed, cfg, *, tb_max=512):
    ie, iq = cfg["item_emb_size"], cfg["item_emb_size"] // 4
    inum, imem = cfg["item_num"], cfg["item_mem_num"]
    ms, ue_size = cfg["mem_size"], cfg["user_emb_size"]
    L = make_layout(cfg)

    B = user_id.shape[0]
    TB, B_pad = _pick_tb(B, tb_max)
    grid = (B_pad // TB,)

    # TODO(synk): the user_embedding row gather stays in XLA glue; fusing it
    # would need scalar-prefetched ids + an in-kernel gather on the VMEM table.
    cd = packed["w0"].dtype
    user_emb = packed["user_embedding"][user_id].astype(cd)
    user_emb = jnp.pad(user_emb, ((0, B_pad - B), (0, 0)))   # padded rows: garbage, sliced off

    kernel = _make_kernel(TB, L, cfg, cd)

    def row_spec(width):                        # batch-tiled arrays
        return pl.BlockSpec((TB, width), lambda i: (i, 0))

    def const_spec(arr):                        # weights: VMEM-resident across steps
        return pl.BlockSpec(arr.shape, lambda i: (0, 0))

    flops = 2 * B_pad * (ue_size * L["W0_COLS"] + L["HID_PAD"] * L["OUT2"]
                         + imem * inum * ie)
    bytes_accessed = (user_emb.size * user_emb.dtype.itemsize
                      + packed["w0"].size * packed["w0"].dtype.itemsize
                      + packed["w2"].size * packed["w2"].dtype.itemsize
                      + 4 * (packed["b0"].size + packed["b2"].size)
                      + 4 * B_pad * L["SLAB_W"])

    slab = pl.pallas_call(
        kernel,
        grid=grid,
        in_specs=[row_spec(ue_size),
                  const_spec(packed["w0"]), const_spec(packed["b0"]),
                  const_spec(packed["w2"]), const_spec(packed["b2"])],
        out_specs=row_spec(L["SLAB_W"]),
        out_shape=jax.ShapeDtypeStruct((B_pad, L["SLAB_W"]), jnp.float32),
        compiler_params=pltpu.CompilerParams(
            dimension_semantics=("parallel",)),
        cost_estimate=pl.CostEstimate(flops=flops, transcendentals=0,
                                      bytes_accessed=bytes_accessed),
    )(user_emb, packed["w0"], packed["b0"], packed["w2"], packed["b2"])

    # Unpack back to the PyTorch shapes (pure layout plumbing).
    H = L["HEADS_OFF"]
    cf_vec = slab[:B, :ms]
    weight1 = slab[:B, H + L["W1_OFF"]:H + L["W1_OFF"] + ie * iq].reshape(B, ie, iq)
    bias1 = slab[:B, H + L["B1_OFF"]:H + L["B1_OFF"] + iq].reshape(B, 1, iq)
    weight2 = slab[:B, H + L["W2_OFF"]:H + L["W2_OFF"] + iq].reshape(B, iq, 1)
    bias2 = slab[:B, H + L["B2_OFF"]:H + L["B2_OFF"] + 1].reshape(B, 1, 1)
    item_embedding = slab[:B, L["ITEM_OFF"]:L["ITEM_OFF"] + inum * ie].reshape(B, inum, ie)
    return [weight1, weight2], [bias1, bias2], item_embedding, cf_vec


# ---------------------------------------------------------------------------
# Deterministic parameter init (shapes follow MetaRecommender.__init__;
# nn.Linear weights pre-transposed to (in, out), biases as (1, out)).
# ---------------------------------------------------------------------------
def init_params(key, cfg):
    ue, ms, hs = cfg["user_emb_size"], cfg["mem_size"], cfg["hidden_size"]
    ie, iq = cfg["item_emb_size"], cfg["item_emb_size"] // 4
    inum, imem = cfg["item_num"], cfg["item_mem_num"]

    keys = iter(jax.random.split(key, 24))

    def linear(fan_in, fan_out):
        bound = 1.0 / np.sqrt(fan_in)
        w = jax.random.uniform(next(keys), (fan_in, fan_out), jnp.float32, -bound, bound)
        b = jax.random.uniform(next(keys), (1, fan_out), jnp.float32, -bound, bound)
        return w, b

    params = {}
    params["user_embedding"] = jax.random.normal(next(keys), (cfg["user_num"], ue), jnp.float32)
    xav = np.sqrt(2.0 / (ue + ms))
    params["memory"] = xav * jax.random.normal(next(keys), (ue, ms), jnp.float32)
    params["w1h"], params["b1h"] = linear(ms, hs)
    params["w1w"], params["b1w"] = linear(hs, ie * iq)
    params["w1b"], params["b1b"] = linear(hs, iq)
    params["w2h"], params["b2h"] = linear(ms, hs)
    params["w2w"], params["b2w"] = linear(hs, iq * 1)
    params["w2b"], params["b2b"] = linear(hs, 1)
    params["w3h"], params["b3h"] = linear(ms, hs)
    params["we1"], params["be1"] = linear(hs, inum * imem)
    params["we2"], params["be2"] = linear(hs, imem * ie)
    return params


# ---------------------------------------------------------------------------
# Pure-JAX reference (mirrors the PyTorch forward) for correctness checks.
# ---------------------------------------------------------------------------
def forward_ref(user_id, p, cfg):
    B = user_id.shape[0]
    ie, iq = cfg["item_emb_size"], cfg["item_emb_size"] // 4
    inum, imem = cfg["item_num"], cfg["item_mem_num"]
    ue = p["user_embedding"][user_id]
    cf = ue @ p["memory"]

    def one_layer(wh, bh, ww, bw, wb, bb, int_size, out_size):
        h = jnp.maximum(cf @ wh + bh, 0.0)
        return ((h @ ww + bw).reshape(B, int_size, out_size),
                (h @ wb + bb).reshape(B, 1, out_size))

    w1, b1 = one_layer(p["w1h"], p["b1h"], p["w1w"], p["b1w"], p["w1b"], p["b1b"], ie, iq)
    w2, b2 = one_layer(p["w2h"], p["b2h"], p["w2w"], p["b2w"], p["w2b"], p["b2b"], iq, 1)
    h3 = jnp.maximum(cf @ p["w3h"] + p["b3h"], 0.0)
    el = (h3 @ p["we1"] + p["be1"]).reshape(B, inum, imem)
    er = (h3 @ p["we2"] + p["be2"]).reshape(B, imem, ie)
    item_emb = jnp.einsum("bnm,bme->bne", el, er)
    return [w1, w2], [b1, b2], item_emb, cf


if __name__ == "__main__":
    cfg = dict(user_num=16, item_num=32, item_emb_size=16, item_mem_num=8,
               user_emb_size=16, mem_size=32, hidden_size=32)

    key = jax.random.PRNGKey(0)
    k_param, k_u0, k_u1, k_u2 = jax.random.split(key, 4)
    params = init_params(k_param, cfg)

    # Tolerances: the memory@Wh fold re-associates the matmul chain and TPU
    # default matmul precision may round f32 MXU inputs to bf16, so bit-level
    # agreement with the unfused reference is not expected; layout/packing
    # bugs would show up as O(1) errors, far above these thresholds.
    cases = ((jnp.float32, 2e-2), (jnp.bfloat16, 4e-2))
    # (batch, tb_max): last case forces a multi-step grid (TB=128, 3 steps).
    batches = ((2, 512, k_u0), (20, 512, k_u1), (300, 128, k_u2))

    for cdtype, tol in cases:
        packed = pack_params(params, cfg, compute_dtype=cdtype)
        for B, tbm, k_uid in batches:
            user_id = jax.random.randint(k_uid, (B,), 0, cfg["user_num"])

            out_w, out_b, item_emb, cf_vec = meta_recommender_forward(
                user_id, packed, cfg, tb_max=tbm)
            jax.block_until_ready((out_w, out_b, item_emb, cf_vec))

            ref_w, ref_b, ref_ie, ref_cf = forward_ref(user_id, params, cfg)
            got = out_w + out_b + [item_emb, cf_vec]
            ref = ref_w + ref_b + [ref_ie, ref_cf]
            for g, r in zip(got, ref):
                assert g.shape == r.shape, (g.shape, r.shape)
                assert np.allclose(np.asarray(g), np.asarray(r),
                                   rtol=tol, atol=tol), \
                    f"output mismatch (dtype={cdtype}, B={B})"

    print("KERNEL_OK")
</pallas_src>

<mosaic_0001>
module attributes {stable_mosaic.version = 11 : i64} {
  func.func @kernel(%arg0: i32, %arg1: memref<8x16xf32, #tpu.memory_space<vmem>>, %arg2: memref<16x256xf32, #tpu.memory_space<vmem>>, %arg3: memref<1x256xf32, #tpu.memory_space<vmem>>, %arg4: memref<128x512xf32, #tpu.memory_space<vmem>>, %arg5: memref<1x512xf32, #tpu.memory_space<vmem>>, %arg6: memref<8x768xf32, #tpu.memory_space<vmem>>) attributes {dimension_semantics = [#tpu.dimension_semantics<parallel>], iteration_bounds = array<i64: 1>, scalar_prefetch = 0 : i64, scratch_operands = 0 : i64, tpu.core_type = #tpu.core_type<tc>, window_params = [{transform_indices = @transform_0, window_bounds = array<i64: 8, 16>}, {pipeline_mode = #tpu.pipeline_mode<synchronous>, transform_indices = @transform_1, window_bounds = array<i64: 16, 256>}, {pipeline_mode = #tpu.pipeline_mode<synchronous>, transform_indices = @transform_2, window_bounds = array<i64: 1, 256>}, {pipeline_mode = #tpu.pipeline_mode<synchronous>, transform_indices = @transform_3, window_bounds = array<i64: 128, 512>}, {pipeline_mode = #tpu.pipeline_mode<synchronous>, transform_indices = @transform_4, window_bounds = array<i64: 1, 512>}, {transform_indices = @transform_5, window_bounds = array<i64: 8, 768>}]} {
    %c0 = arith.constant 0 : index
    %c0_0 = arith.constant 0 : index
    %0 = vector.load %arg1[%c0, %c0_0] : memref<8x16xf32, #tpu.memory_space<vmem>>, vector<8x16xf32>
    %c0_1 = arith.constant 0 : index
    %c0_2 = arith.constant 0 : index
    %1 = vector.load %arg2[%c0_1, %c0_2] : memref<16x256xf32, #tpu.memory_space<vmem>>, vector<16x256xf32>
    %cst = arith.constant dense<0.000000e+00> : vector<8x256xf32>
    %2 = tpu.matmul %0, %1, %cst {dimension_numbers = #tpu.dot_dimension_numbers<[1], [0], [0], [1], [0, 0, 1, 1], [], []>} : vector<8x16xf32>, vector<16x256xf32>, vector<8x256xf32> -> vector<8x256xf32>
    %c0_3 = arith.constant 0 : index
    %c0_4 = arith.constant 0 : index
    %3 = vector.load %arg3[%c0_3, %c0_4] : memref<1x256xf32, #tpu.memory_space<vmem>>, vector<1x256xf32>
    %4 = vector.broadcast %3 : vector<1x256xf32> to vector<8x256xf32>
    %5 = arith.addf %2, %4 : vector<8x256xf32>
    %6 = vector.extract_strided_slice %5 {offsets = [0, 0], sizes = [8, 128], strides = [1, 1]} : vector<8x256xf32> to vector<8x128xf32>
    %7 = vector.extract_strided_slice %5 {offsets = [0, 128], sizes = [8, 128], strides = [1, 1]} : vector<8x256xf32> to vector<8x128xf32>
    %cst_5 = arith.constant 0.000000e+00 : f32
    %8 = vector.broadcast %cst_5 : f32 to vector<8x128xf32>
    %9 = arith.maximumf %7, %8 : vector<8x128xf32>
    %c0_6 = arith.constant 0 : index
    %c0_7 = arith.constant 0 : index
    %10 = vector.load %arg4[%c0_6, %c0_7] : memref<128x512xf32, #tpu.memory_space<vmem>>, vector<128x512xf32>
    %cst_8 = arith.constant dense<0.000000e+00> : vector<8x512xf32>
    %11 = tpu.matmul %9, %10, %cst_8 {dimension_numbers = #tpu.dot_dimension_numbers<[1], [0], [0], [1], [0, 0, 1, 1], [], []>} : vector<8x128xf32>, vector<128x512xf32>, vector<8x512xf32> -> vector<8x512xf32>
    %c0_9 = arith.constant 0 : index
    %c0_10 = arith.constant 0 : index
    %12 = vector.load %arg5[%c0_9, %c0_10] : memref<1x512xf32, #tpu.memory_space<vmem>>, vector<1x512xf32>
    %13 = vector.broadcast %12 : vector<1x512xf32> to vector<8x512xf32>
    %14 = arith.addf %11, %13 : vector<8x512xf32>
    %cst_11 = arith.constant 0.000000e+00 : f32
    %15 = vector.broadcast %cst_11 : f32 to vector<8x32x16xf32>
    %16 = vector.extract_strided_slice %14 {offsets = [0, 128], sizes = [8, 32], strides = [1, 1]} : vector<8x512xf32> to vector<8x32xf32>
    %17 = vector.extract_strided_slice %14 {offsets = [0, 384], sizes = [8, 16], strides = [1, 1]} : vector<8x512xf32> to vector<8x16xf32>
    %18 = vector.shape_cast %16 : vector<8x32xf32> to vector<8x32x1xf32>
    %19 = vector.shape_cast %17 : vector<8x16xf32> to vector<8x1x16xf32>
    %20 = vector.broadcast %18 : vector<8x32x1xf32> to vector<8x32x16xf32>
    %21 = vector.broadcast %19 : vector<8x1x16xf32> to vector<8x32x16xf32>
    %22 = arith.mulf %20, %21 : vector<8x32x16xf32>
    %23 = arith.addf %15, %22 : vector<8x32x16xf32>
    %24 = vector.extract_strided_slice %14 {offsets = [0, 160], sizes = [8, 32], strides = [1, 1]} : vector<8x512xf32> to vector<8x32xf32>
    %25 = vector.extract_strided_slice %14 {offsets = [0, 400], sizes = [8, 16], strides = [1, 1]} : vector<8x512xf32> to vector<8x16xf32>
    %26 = vector.shape_cast %24 : vector<8x32xf32> to vector<8x32x1xf32>
    %27 = vector.shape_cast %25 : vector<8x16xf32> to vector<8x1x16xf32>
    %28 = vector.broadcast %26 : vector<8x32x1xf32> to vector<8x32x16xf32>
    %29 = vector.broadcast %27 : vector<8x1x16xf32> to vector<8x32x16xf32>
    %30 = arith.mulf %28, %29 : vector<8x32x16xf32>
    %31 = arith.addf %23, %30 : vector<8x32x16xf32>
    %32 = vector.extract_strided_slice %14 {offsets = [0, 192], sizes = [8, 32], strides = [1, 1]} : vector<8x512xf32> to vector<8x32xf32>
    %33 = vector.extract_strided_slice %14 {offsets = [0, 416], sizes = [8, 16], strides = [1, 1]} : vector<8x512xf32> to vector<8x16xf32>
    %34 = vector.shape_cast %32 : vector<8x32xf32> to vector<8x32x1xf32>
    %35 = vector.shape_cast %33 : vector<8x16xf32> to vector<8x1x16xf32>
    %36 = vector.broadcast %34 : vector<8x32x1xf32> to vector<8x32x16xf32>
    %37 = vector.broadcast %35 : vector<8x1x16xf32> to vector<8x32x16xf32>
    %38 = arith.mulf %36, %37 : vector<8x32x16xf32>
    %39 = arith.addf %31, %38 : vector<8x32x16xf32>
    %40 = vector.extract_strided_slice %14 {offsets = [0, 224], sizes = [8, 32], strides = [1, 1]} : vector<8x512xf32> to vector<8x32xf32>
    %41 = vector.extract_strided_slice %14 {offsets = [0, 432], sizes = [8, 16], strides = [1, 1]} : vector<8x512xf32> to vector<8x16xf32>
    %42 = vector.shape_cast %40 : vector<8x32xf32> to vector<8x32x1xf32>
    %43 = vector.shape_cast %41 : vector<8x16xf32> to vector<8x1x16xf32>
    %44 = vector.broadcast %42 : vector<8x32x1xf32> to vector<8x32x16xf32>
    %45 = vector.broadcast %43 : vector<8x1x16xf32> to vector<8x32x16xf32>
    %46 = arith.mulf %44, %45 : vector<8x32x16xf32>
    %47 = arith.addf %39, %46 : vector<8x32x16xf32>
    %48 = vector.extract_strided_slice %14 {offsets = [0, 256], sizes = [8, 32], strides = [1, 1]} : vector<8x512xf32> to vector<8x32xf32>
    %49 = vector.extract_strided_slice %14 {offsets = [0, 448], sizes = [8, 16], strides = [1, 1]} : vector<8x512xf32> to vector<8x16xf32>
    %50 = vector.shape_cast %48 : vector<8x32xf32> to vector<8x32x1xf32>
    %51 = vector.shape_cast %49 : vector<8x16xf32> to vector<8x1x16xf32>
    %52 = vector.broadcast %50 : vector<8x32x1xf32> to vector<8x32x16xf32>
    %53 = vector.broadcast %51 : vector<8x1x16xf32> to vector<8x32x16xf32>
    %54 = arith.mulf %52, %53 : vector<8x32x16xf32>
    %55 = arith.addf %47, %54 : vector<8x32x16xf32>
    %56 = vector.extract_strided_slice %14 {offsets = [0, 288], sizes = [8, 32], strides = [1, 1]} : vector<8x512xf32> to vector<8x32xf32>
    %57 = vector.extract_strided_slice %14 {offsets = [0, 464], sizes = [8, 16], strides = [1, 1]} : vector<8x512xf32> to vector<8x16xf32>
    %58 = vector.shape_cast %56 : vector<8x32xf32> to vector<8x32x1xf32>
    %59 = vector.shape_cast %57 : vector<8x16xf32> to vector<8x1x16xf32>
    %60 = vector.broadcast %58 : vector<8x32x1xf32> to vector<8x32x16xf32>
    %61 = vector.broadcast %59 : vector<8x1x16xf32> to vector<8x32x16xf32>
    %62 = arith.mulf %60, %61 : vector<8x32x16xf32>
    %63 = arith.addf %55, %62 : vector<8x32x16xf32>
    %64 = vector.extract_strided_slice %14 {offsets = [0, 320], sizes = [8, 32], strides = [1, 1]} : vector<8x512xf32> to vector<8x32xf32>
    %65 = vector.extract_strided_slice %14 {offsets = [0, 480], sizes = [8, 16], strides = [1, 1]} : vector<8x512xf32> to vector<8x16xf32>
    %66 = vector.shape_cast %64 : vector<8x32xf32> to vector<8x32x1xf32>
    %67 = vector.shape_cast %65 : vector<8x16xf32> to vector<8x1x16xf32>
    %68 = vector.broadcast %66 : vector<8x32x1xf32> to vector<8x32x16xf32>
    %69 = vector.broadcast %67 : vector<8x1x16xf32> to vector<8x32x16xf32>
    %70 = arith.mulf %68, %69 : vector<8x32x16xf32>
    %71 = arith.addf %63, %70 : vector<8x32x16xf32>
    %72 = vector.extract_strided_slice %14 {offsets = [0, 352], sizes = [8, 32], strides = [1, 1]} : vector<8x512xf32> to vector<8x32xf32>
    %73 = vector.extract_strided_slice %14 {offsets = [0, 496], sizes = [8, 16], strides = [1, 1]} : vector<8x512xf32> to vector<8x16xf32>
    %74 = vector.shape_cast %72 : vector<8x32xf32> to vector<8x32x1xf32>
    %75 = vector.shape_cast %73 : vector<8x16xf32> to vector<8x1x16xf32>
    %76 = vector.broadcast %74 : vector<8x32x1xf32> to vector<8x32x16xf32>
    %77 = vector.broadcast %75 : vector<8x1x16xf32> to vector<8x32x16xf32>
    %78 = arith.mulf %76, %77 : vector<8x32x16xf32>
    %79 = arith.addf %71, %78 : vector<8x32x16xf32>
    %c0_12 = arith.constant 0 : index
    %c0_13 = arith.constant 0 : index
    %80 = vector.load %arg6[%c0_12, %c0_13] : memref<8x768xf32, #tpu.memory_space<vmem>>, vector<8x128xf32>
    tpu.vector_store %arg6[%c0_12, %c0_13], %6 {strides = array<i32>} : memref<8x768xf32, #tpu.memory_space<vmem>>, vector<8x128xf32>,
    %81 = vector.extract_strided_slice %14 {offsets = [0, 0], sizes = [8, 128], strides = [1, 1]} : vector<8x512xf32> to vector<8x128xf32>
    %c0_14 = arith.constant 0 : index
    %c128 = arith.constant 128 : index
    %82 = vector.load %arg6[%c0_14, %c128] : memref<8x768xf32, #tpu.memory_space<vmem>>, vector<8x128xf32>
    tpu.vector_store %arg6[%c0_14, %c128], %81 {strides = array<i32>} : memref<8x768xf32, #tpu.memory_space<vmem>>, vector<8x128xf32>,
    %83 = vector.shape_cast %79 : vector<8x32x16xf32> to vector<8x512xf32>
    %c0_15 = arith.constant 0 : index
    %c256 = arith.constant 256 : index
    %84 = vector.load %arg6[%c0_15, %c256] : memref<8x768xf32, #tpu.memory_space<vmem>>, vector<8x512xf32>
    tpu.vector_store %arg6[%c0_15, %c256], %83 {strides = array<i32>} : memref<8x768xf32, #tpu.memory_space<vmem>>, vector<8x512xf32>,
    return
  }
  func.func @transform_0(%arg0: i32) -> (i32, i32) {
    %c0_i32 = arith.constant 0 : i32
    %c0_i32_0 = arith.constant 0 : i32
    return %arg0, %c0_i32 : i32, i32
  }
  func.func @transform_1(%arg0: i32) -> (i32, i32) {
    %c0_i32 = arith.constant 0 : i32
    %c0_i32_0 = arith.constant 0 : i32
    %c0_i32_1 = arith.constant 0 : i32
    return %c0_i32, %c0_i32_0 : i32, i32
  }
  func.func @transform_2(%arg0: i32) -> (i32, i32) {
    %c0_i32 = arith.constant 0 : i32
    %c0_i32_0 = arith.constant 0 : i32
    %c0_i32_1 = arith.constant 0 : i32
    return %c0_i32, %c0_i32_0 : i32, i32
  }
  func.func @transform_3(%arg0: i32) -> (i32, i32) {
    %c0_i32 = arith.constant 0 : i32
    %c0_i32_0 = arith.constant 0 : i32
    %c0_i32_1 = arith.constant 0 : i32
    return %c0_i32, %c0_i32_0 : i32, i32
  }
  func.func @transform_4(%arg0: i32) -> (i32, i32) {
    %c0_i32 = arith.constant 0 : i32
    %c0_i32_0 = arith.constant 0 : i32
    %c0_i32_1 = arith.constant 0 : i32
    return %c0_i32, %c0_i32_0 : i32, i32
  }
  func.func @transform_5(%arg0: i32) -> (i32, i32) {
    %c0_i32 = arith.constant 0 : i32
    %c0_i32_0 = arith.constant 0 : i32
    return %arg0, %c0_i32 : i32, i32
  }
}

</mosaic_0001>

<bundles_post_ra>
// kernel: tpu_custom_call.1
= control target key start
LH: loop header
LB: loop body
LE: loop exit
PB: predicated region body
PF: predicated region fallthrough
CT: control target
= control target key end

     0   :  { %10 = vsyncpa [#allocation3], 0  ;;  %s6281_s0 = inlined_call_operand.hbm [shape: f32[8,16], index: 0, kind: input, shape index: {}]   ;;  %s6282_s1 = inlined_call_operand.hbm [shape: f32[16,256], index: 1, kind: input, shape index: {}]   ;;  %s6283_s2 = inlined_call_operand.vmem [shape: f32[1,256], index: 2, kind: input, shape index: {}]   ;;  %s6284_s3 = inlined_call_operand.hbm [shape: f32[128,512], index: 3, kind: input, shape index: {}]   ;;  %s6285_s4 = inlined_call_operand.vmem [shape: f32[1,512], index: 4, kind: input, shape index: {}]   ;;  %s6286_s5 = inlined_call_operand.hbm [shape: f32[8,768], index: 5, kind: output, shape index: {}]  }
   0x1   :  { %11 = vsyncpa [#allocation6], 0 }
   0x2   :  { %12 = vsyncpa [#allocation4], 0  ;;  %s3843_s18 = smov [#allocation5]   ;;  %s3749_s22 = scalar_lea.hbm %s6282_s1, 512 }
   0x3   :  { %s28_s19 = sshll.u32 %s3843_s18, 4  ;;  %p3750_p0 = scmp.ne.s32.totalorder %s6282_s1, %s3749_s22  ;;  %s29_s19 = int_to_ptr.vmem [resolvable:$true] %s28_s19 }
   0x4   :  { %p3753_p1 = scmp.lt.u32.totalorder %s3749_s22, %s6282_s1 }
   0x6   :  { %p3755_p2 = pnand %p3753_p1, %p3750_p0 }
   0x8   :  { %3758 = shalt.err (!%p3755_p2)
}
   0x9   :  { %s3759_s27 = scalar_lea.vmem %s29_s19, 512  ;;  %p3764_p4 = scmp.lt.s32.totalorder %s29_s19, %s29_s19 }
   0xa   :  { %p3760_p3 = scmp.ne.s32.totalorder %s29_s19, %s3759_s27  ;;  %p3765_p5 = scmp.lt.s32.totalorder %s3759_s27, %s3759_s27 }
   0xc   :  { %p3766_p6 = por %p3765_p5, %p3764_p4 }
   0xe   :  { %p3767_p7 = pnand %p3766_p6, %p3760_p3 }
  0x10   :  { %3770 = shalt.err (!%p3767_p7)
}
  0x11   :  { %s3844_s28 = smov 256   ;;  %s3845_s29 = smov 16  }
  0x12   :  { %34 = dma.hbm_to_vmem [thread:$0]  %s6282_s1, 512, %s29_s19, [#allocation6], %s3844_s28, %s3844_s28, %s3845_s29  }
  0x13   :  { %s3846_s7 = smov [#allocation2]   ;;  %s3847_s9 = smov [#allocation7]  }
  0x14   :  { %s19_s8 = sshll.u32 %s3846_s7, 4  ;;  %s42_s10 = sshll.u32 %s3847_s9, 4  ;;  %s20_s8 = int_to_ptr.vmem [resolvable:$true] %s19_s8  ;;  %s43_s10 = int_to_ptr.vmem [resolvable:$true] %s42_s10 }
  0x15   :  { %s3771_s13 = scalar_lea.hbm %s6281_s0, 128 }
  0x16   :  { %p3772_p8 = scmp.ne.s32.totalorder %s6281_s0, %s3771_s13  ;;  %p3775_p9 = scmp.lt.u32.totalorder %s3771_s13, %s6281_s0 }
  0x18   :  { %p3777_p10 = pnand %p3775_p9, %p3772_p8 }
  0x1a   :  { %3780 = shalt.err (!%p3777_p10)
}
  0x1b   :  { %s3781_s1 = scalar_lea.vmem %s20_s8, 128  ;;  %p3786_p12 = scmp.lt.s32.totalorder %s20_s8, %s20_s8 }
  0x1c   :  { %p3782_p11 = scmp.ne.s32.totalorder %s20_s8, %s3781_s1  ;;  %p3787_p13 = scmp.lt.s32.totalorder %s3781_s1, %s3781_s1 }
  0x1e   :  { %p3788_p0 = por %p3787_p13, %p3786_p12 }
  0x20   :  { %p3789_p1 = pnand %p3788_p0, %p3782_p11 }
  0x22   :  { %3792 = shalt.err (!%p3789_p1)
}
  0x23   :  { %22 = dma.hbm_to_vmem [thread:$0]  %s6281_s0, 128, %s20_s8, [#allocation3]  }
  0x24   :  { %s3793_s22 = scalar_lea.hbm %s6284_s3, 8192 }
  0x25   :  { %p3794_p2 = scmp.ne.s32.totalorder %s6284_s3, %s3793_s22  ;;  %p3797_p3 = scmp.lt.u32.totalorder %s3793_s22, %s6284_s3 }
  0x27   :  { %p3799_p4 = pnand %p3797_p3, %p3794_p2 }
  0x29   :  { %3802 = shalt.err (!%p3799_p4)
}
  0x2a   :  { %s3803_s27 = scalar_lea.vmem %s43_s10, 8192  ;;  %p3808_p6 = scmp.lt.s32.totalorder %s43_s10, %s43_s10 }
  0x2b   :  { %p3804_p5 = scmp.ne.s32.totalorder %s43_s10, %s3803_s27  ;;  %p3809_p7 = scmp.lt.s32.totalorder %s3803_s27, %s3803_s27 }
  0x2d   :  { %p3810_p8 = por %p3809_p7, %p3808_p6 }
  0x2f   :  { %p3811_p9 = pnand %p3810_p8, %p3804_p5 }
  0x31   :  { %3814 = shalt.err (!%p3811_p9)
}
  0x32   :  { %s3848_s0 = smov 512   ;;  %s3849_s28 = smov 32  }
  0x33   :  { %48 = dma.hbm_to_vmem [thread:$0]  %s6284_s3, 8192, %s43_s10, [#allocation6], %s3848_s0, %s3848_s0, %s3849_s28  }
  0x34   :  { %3837 = dma.done.wait [#allocation3], 128  }
  0x35   :  { %3838 = vsyncadd [#allocation3], 4294967168 }
  0x36   :  { %3839 = dma.done.wait [#allocation6], 8704  }
  0x37   :  { %3840 = vsyncadd [#allocation6], 4294958592  ;;  %v3850_v0 = vmov 0.0   ;;  %v62_v1 = vld [vmem:[#allocation5 + $0x8] sm:$0xff]  ;;  %v64_v2 = vld [vmem:[#allocation5 + $0x18] sm:$0xff]  ;;  %vm77_vm0 = vcmask 130048  }
  0x38   :  { %145 = vmatprep.mubr.f32.mxu0 %v3850_v0  ;;  %303 = vmatprep.mubr.f32.mxu1 %v3850_v0  ;;  %v61_v3 = vld [vmem:[#allocation5] sm:$0xff]  ;;  %v3664_v4 = vpack.c.bf16 %v64_v2, %v62_v1  ;;  %v63_v5 = vld [vmem:[#allocation5 + $0x10] sm:$0xff]  ;;  %v154_v6 = vld [vmem:[#allocation7 + $0x8] sm:$0xff]  ;;  %s3853_s9 = smov 112   ;;  %s3854_s10 = smov 96   ;;  %vm3610_vm1 = vcmask 261120  }
  0x39   :  { %v3666_v7 = vpack.c.bf16 %v63_v5, %v61_v3  ;;  %v60_v8 = vld [vmem:[#allocation2] sm:$0xff]  ;;  %v158_v9 = vld [vmem:[#allocation7 + $0x28] sm:$0xff]  ;;  %v153_v14 = vld [vmem:[#allocation7] sm:$0xff]  ;;  %s3855_s11 = smov 80   ;;  %s3856_s12 = smov 48   ;;  %vm3612_vm2 = vcmask 392192  }
  0x3a   :  { %v156_v10 = vld [vmem:[#allocation7 + $0x18] sm:$0xff]  ;;  %3665 = vmatprep.subr.bf16.mxu0 %v3664_v4  ;;  %v3668_v12 = vpack.c.bf16 %v158_v9, %v154_v6  ;;  %v157_v15 = vld [vmem:[#allocation7 + $0x20] sm:$0xff]  ;;  %v155_v16 = vld [vmem:[#allocation7 + $0x10] sm:$0xff]  ;;  %vm3614_vm3 = vcmask 523264   ;;  %vm3616_vm4 = vcmask 654336   ;;  %vm3618_vm5 = vcmask 785408  }
  0x3b   :  { %v160_v11 = vld [vmem:[#allocation7 + $0x38] sm:$0xff]  ;;  %3667 = vmatpush1.bf16.msra.mxu0 %v3666_v7  ;;  %v3670_v17 = vpack.c.bf16 %v157_v15, %v153_v14  ;;  %v159_v18 = vld [vmem:[#allocation7 + $0x30] sm:$0xff]  ;;  %v162_v19 = vld [vmem:[#allocation7 + $0x48] sm:$0xff]  ;;  %vm3620_vm6 = vcmask 916480  }
  0x3c   :  { %v3700_v13 = vpack.c.bf16 %v160_v11, %v156_v10  ;;  %v166_v20 = vld [vmem:[#allocation7 + $0x68] sm:$0xff]  ;;  %3669 = vmatprep.subr.bf16.mxu1 %v3668_v12  ;;  %v3702_v21 = vpack.c.bf16 %v159_v18, %v155_v16  ;;  %v164_v23 = vld [vmem:[#allocation7 + $0x58] sm:$0xff]  ;;  %v161_v25 = vld [vmem:[#allocation7 + $0x40] sm:$0xff] }
  0x3d   :  { %v3672_v22 = vpack.c.bf16 %v166_v20, %v162_v19  ;;  %v168_v24 = vld [vmem:[#allocation7 + $0x78] sm:$0xff]  ;;  %3671 = vmatpush1.bf16.msra.mxu1 %v3670_v17  ;;  %v165_v27 = vld [vmem:[#allocation7 + $0x60] sm:$0xff]  ;;  %v163_v28 = vld [vmem:[#allocation7 + $0x50] sm:$0xff] }
  0x3e   :  { %3701 = vmatprep.subr.bf16.mxu0 %v3700_v13  ;;  %v3704_v26 = vpack.c.bf16 %v168_v24, %v164_v23  ;;  %v167_v29 = vld [vmem:[#allocation7 + $0x70] sm:$0xff]  ;;  %3663 = vmatmul.mubr.msk.f32.vlgmr.msra.gmra.mrb[0].mxu0 %vm77_vm0, %v60_v8  ;;  %v3674_v30 = vpack.c.bf16 %v165_v27, %v161_v25  ;;  %v170_v31 = vld [vmem:[#allocation7 + $0x88] sm:$0xff]  ;;  %v172_v33 = vld [vmem:[#allocation7 + $0x98] sm:$0xff] }
  0x3f   :  { %3673 = vmatprep.subr.bf16.mxu1 %v3672_v22  ;;  %v174_v32 = vld [vmem:[#allocation7 + $0xa8] sm:$0xff]  ;;  %3703 = vmatpush1.bf16.msra.mxu0 %v3702_v21  ;;  %v3706_v34 = vpack.c.bf16 %v167_v29, %v163_v28  ;;  %v176_v36 = vld [vmem:[#allocation7 + $0xb8] sm:$0xff]  ;;  %v169_v37 = vld [vmem:[#allocation7 + $0x80] sm:$0xff] }
  0x40   :  { %v3676_v35 = vpack.c.bf16 %v174_v32, %v170_v31  ;;  %v173_v38 = vld [vmem:[#allocation7 + $0xa0] sm:$0xff]  ;;  %374 = vmatprep.mubr.f32.mxu0 %v3850_v0  ;;  %3705 = vmatprep.subr.bf16.mxu0 %v3704_v26  ;;  %v3708_v39 = vpack.c.bf16 %v176_v36, %v172_v33  ;;  %v171_v40 = vld [vmem:[#allocation7 + $0x90] sm:$0xff]  ;;  %v178_v42 = vld [vmem:[#allocation7 + $0xc8] sm:$0xff] }
  0x41   :  { %v175_v41 = vld [vmem:[#allocation7 + $0xb0] sm:$0xff]  ;;  %3675 = vmatpush1.bf16.msra.mxu1 %v3674_v30  ;;  %v3678_v43 = vpack.c.bf16 %v173_v38, %v169_v37  ;;  %v182_v44 = vld [vmem:[#allocation7 + $0xe8] sm:$0xff]  ;;  %v180_v45 = vld [vmem:[#allocation7 + $0xd8] sm:$0xff] }
  0x42   :  { %v184_v46 = vld [vmem:[#allocation7 + $0xf8] sm:$0xff]  ;;  %3677 = vmatprep.subr.bf16.mxu1 %v3676_v35  ;;  %v3680_v47 = vpack.c.bf16 %v182_v44, %v178_v42  ;;  %v177_v48 = vld [vmem:[#allocation7 + $0xc0] sm:$0xff]  ;;  %v3710_v50 = vpack.c.bf16 %v175_v41, %v171_v40  ;;  %v186_v51 = vld [vmem:[#allocation7 + $0x108] sm:$0xff]  ;;  %v67_v40 = vlaneseq }
  0x43   :  { %v181_v49 = vld [vmem:[#allocation7 + $0xe0] sm:$0xff]  ;;  %3707 = vmatpush1.bf16.msra.mxu0 %v3706_v34  ;;  %v190_v52 = vld [vmem:[#allocation7 + $0x128] sm:$0xff]  ;;  %v3712_v53 = vpack.c.bf16 %v184_v46, %v180_v45  ;;  %v179_v54 = vld [vmem:[#allocation7 + $0xd0] sm:$0xff] }
  0x44   :  { %3709 = vmatprep.subr.bf16.mxu0 %v3708_v39  ;;  %v183_v55 = vld [vmem:[#allocation7 + $0xf0] sm:$0xff]  ;;  %v3682_v56 = vpack.c.bf16 %v181_v49, %v177_v48  ;;  %v188_v57 = vld [vmem:[#allocation7 + $0x118] sm:$0xff]  ;;  %v3684_v59 = vpack.c.bf16 %v190_v52, %v186_v51  ;;  %v185_v60 = vld [vmem:[#allocation7 + $0x100] sm:$0xff]  ;;  %v3929_v41 = vshrl.u32 %v67_v40, 7 }
  0x45   :  { %3679 = vmatpush1.bf16.msra.mxu1 %v3678_v43  ;;  %v192_v58 = vld [vmem:[#allocation7 + $0x138] sm:$0xff]  ;;  %v189_v61 = vld [vmem:[#allocation7 + $0x120] sm:$0xff]  ;;  %v3714_v62 = vpack.c.bf16 %v183_v55, %v179_v54  ;;  %v194_v63 = vld [vmem:[#allocation7 + $0x148] sm:$0xff] }
  0x46   :  { %3681 = vmatprep.subr.bf16.mxu1 %v3680_v47  ;;  %v198_v0 = vld [vmem:[#allocation7 + $0x168] sm:$0xff]  ;;  %v3716_v1 = vpack.c.bf16 %v192_v58, %v188_v57  ;;  %v187_v2 = vld [vmem:[#allocation7 + $0x110] sm:$0xff]  ;;  %v3686_v4 = vpack.c.bf16 %v189_v61, %v185_v60  ;;  %v196_v5 = vld [vmem:[#allocation7 + $0x158] sm:$0xff]  ;;  %6309 = vst [vmem:[#allocation12_spill] sm:$0xff] %v3929_v41  ;;  %v3932_v42 = vsub.s32 0, %v3929_v41  ;;  %v3938_v44 = vsub.s32 1, %v3929_v41 }
  0x47   :  { %3711 = vmatpush1.bf16.msra.mxu0 %v3710_v50  ;;  %v191_v3 = vld [vmem:[#allocation7 + $0x130] sm:$0xff]  ;;  %v200_v6 = vld [vmem:[#allocation7 + $0x178] sm:$0xff]  ;;  %v3688_v7 = vpack.c.bf16 %v198_v0, %v194_v63  ;;  %v193_v8 = vld [vmem:[#allocation7 + $0x140] sm:$0xff]  ;;  %v3943_v52 = vsub.s32 2, %v3929_v41  ;;  %v459_v61 = vsub.s32 4, %v3929_v41 }
  0x48   :  { %3713 = vmatprep.subr.bf16.mxu0 %v3712_v53  ;;  %v197_v9 = vld [vmem:[#allocation7 + $0x160] sm:$0xff]  ;;  %v3718_v10 = vpack.c.bf16 %v191_v3, %v187_v2  ;;  %v202_v11 = vld [vmem:[#allocation7 + $0x188] sm:$0xff]  ;;  %v3720_v13 = vpack.c.bf16 %v200_v6, %v196_v5  ;;  %v195_v14 = vld [vmem:[#allocation7 + $0x150] sm:$0xff]  ;;  %v516_v2 = vsub.s32 7, %v3929_v41 }
  0x49   :  { %3683 = vmatpush1.bf16.msra.mxu1 %v3682_v56  ;;  %v206_v12 = vld [vmem:[#allocation7 + $0x1a8] sm:$0xff]  ;;  %v199_v15 = vld [vmem:[#allocation7 + $0x170] sm:$0xff]  ;;  %v3690_v16 = vpack.c.bf16 %v197_v9, %v193_v8  ;;  %v204_v17 = vld [vmem:[#allocation7 + $0x198] sm:$0xff] }
  0x4a   :  { %3685 = vmatprep.subr.bf16.mxu1 %v3684_v59  ;;  %v208_v18 = vld [vmem:[#allocation7 + $0x1b8] sm:$0xff]  ;;  %v3692_v19 = vpack.c.bf16 %v206_v12, %v202_v11  ;;  %v201_v20 = vld [vmem:[#allocation7 + $0x180] sm:$0xff]  ;;  %v3722_v22 = vpack.c.bf16 %v199_v15, %v195_v14  ;;  %v203_v24 = vld [vmem:[#allocation7 + $0x190] sm:$0xff]  ;;  %v3990_v11 = vsub.s32 3, %v3929_v41 }
  0x4b   :  { %3715 = vmatpush1.bf16.msra.mxu0 %v3714_v62  ;;  %v205_v21 = vld [vmem:[#allocation7 + $0x1a0] sm:$0xff]  ;;  %v3724_v23 = vpack.c.bf16 %v208_v18, %v204_v17  ;;  %v207_v25 = vld [vmem:[#allocation7 + $0x1b0] sm:$0xff]  ;;  %v210_v28 = vld [vmem:[#allocation7 + $0x1c8] sm:$0xff]  ;;  %v478_v62 = vsub.s32 5, %v3929_v41 }
  0x4c   :  { %3717 = vmatprep.subr.bf16.mxu0 %v3716_v1  ;;  %v3694_v26 = vpack.c.bf16 %v205_v21, %v201_v20  ;;  %v3726_v27 = vpack.c.bf16 %v207_v25, %v203_v24  ;;  %v214_v29 = vld [vmem:[#allocation7 + $0x1e8] sm:$0xff]  ;;  %v212_v30 = vld [vmem:[#allocation7 + $0x1d8] sm:$0xff]  ;;  %v209_v33 = vld [vmem:[#allocation7 + $0x1c0] sm:$0xff]  ;;  %v497_v1 = vsub.s32 6, %v3929_v41 }
  0x4d   :  { %3687 = vmatpush1.bf16.msra.mxu1 %v3686_v4  ;;  %v3696_v31 = vpack.c.bf16 %v214_v29, %v210_v28  ;;  %v216_v32 = vld [vmem:[#allocation7 + $0x1f8] sm:$0xff]  ;;  %v213_v34 = vld [vmem:[#allocation7 + $0x1e0] sm:$0xff]  ;;  %v211_v37 = vld [vmem:[#allocation7 + $0x1d0] sm:$0xff] }
  0x4e   :  { %3689 = vmatprep.subr.bf16.mxu1 %v3688_v7  ;;  %v3728_v35 = vpack.c.bf16 %v216_v32, %v212_v30  ;;  %v3698_v36 = vpack.c.bf16 %v213_v34, %v209_v33  ;;  %v215_v38 = vld [vmem:[#allocation7 + $0x1f0] sm:$0xff]  ;;  %v65_v43 = vld [vmem:[%s6283_s2] sm:$0x3] }
  0x4f   :  { %3719 = vmatpush1.bf16.msra.mxu0 %v3718_v10  ;;  %v3730_v39 = vpack.c.bf16 %v215_v38, %v211_v37  ;;  %v70_v45 = vrot.slane %v65_v43, %v3932_v42  ;;  %v74_v46 = vrot.slane %v65_v43, %v3938_v44  ;;  %v3948_v53 = vld [vmem:[%s6285_s4] sm:$0xf]  ;;  %s3852_s4 = smov 64  }
  0x50   :  { %3721 = vmatprep.subr.bf16.mxu0 %v3720_v13  ;;  %v222_v54 = vrot.slane %v3948_v53, %v3932_v42  ;;  %v230_v55 = vrot.slane %v3948_v53, %v3943_v52  ;;  %v226_v56 = vrot.slane %v3948_v53, %v3938_v44 }
  0x51   :  { %3691 = vmatpush1.bf16.msra.mxu1 %v3690_v16 }
  0x52   :  { %3693 = vmatprep.subr.bf16.mxu1 %v3692_v19 }
  0x53   :  { %3723 = vmatpush1.bf16.msra.mxu0 %v3722_v22 }
  0x54   :  { %3725 = vmatprep.subr.bf16.mxu0 %v3724_v23 }
  0x55   :  { %3695 = vmatpush1.bf16.msra.mxu1 %v3694_v26 }
  0x56   :  { %3697 = vmatprep.subr.bf16.mxu1 %v3696_v31 }
  0x57   :  { %3727 = vmatpush1.bf16.msra.mxu0 %v3726_v27 }
  0x58   :  { %3729 = vmatprep.subr.bf16.mxu0 %v3728_v35 }
  0x59   :  { %3699 = vmatpush1.bf16.msra.mxu1 %v3698_v36 }
  0x5b   :  { %3731 = vmatpush1.bf16.msra.mxu0 %v3730_v39 }
 0x111   :  { %v147_v47 = vpop.f32.mrb[0].mxu0 }
 0x112   :  { %v148_v48 = vadd.f32 %v147_v47, %v70_v45  ;;  %v149_v49 = vpop.f32.mrb[1].mxu0 }
 0x113   :  { %v150_v50 = vadd.f32 %v149_v49, %v74_v46 }
 0x114   :  { %2951 = vst [vmem:[#allocation8] sm:$0xff] %v148_v48 }
 0x115   :  { %v152_v51 = vmax.f32 %v150_v50, 0.0 }
 0x117   :  { %304 = vmatmul.mubr.f32.vlgmr.msra.gmra.mrb[0].mxu1 %v152_v51  ;;  %375 = vmatmul.mubr.f32.vlgmr.msra.gmra.mrb[2].mxu0 %v152_v51 }
 0x1ea   :  { %v305_v57 = vpop.f32.mrb[0].mxu1  ;;  %v376_v58 = vpop.f32.mrb[2].mxu0 }
 0x1eb   :  { %v306_v59 = vadd.f32 %v305_v57, %v222_v54  ;;  %v377_v60 = vadd.f32 %v376_v58, %v230_v55  ;;  %v307_v63 = vpop.f32.mrb[1].mxu1  ;;  %v3958_v0 = vpop.f32.mrb[3].mxu0 }
 0x1ec   :  { %v308_v3 = vadd.f32 %v307_v63, %v226_v56 }
 0x1ed   :  { %2952 = vst [vmem:[#allocation8 + $0x8] sm:$0xff] %v306_v59  ;;  %v3963_v4 = vrot.slane %v377_v60, %v3932_v42  ;;  %v3978_v9 = vrot.slane %v377_v60, %v3938_v44  ;;  %v3985_v10 = vrot.slane %v377_v60, %v3943_v52  ;;  %v3995_v12 = vrot.slane %v377_v60, %v3990_v11 }
 0x1ee   :  { %v3965_v5 = vrot.slane %v308_v3, %v459_v61  ;;  %v3967_v6 = vrot.slane %v308_v3, %v478_v62  ;;  %v3970_v7 = vrot.slane %v308_v3, %v497_v1  ;;  %v3972_v8 = vrot.slane %v308_v3, %v516_v2 }
 0x1ef   :  { %6310 = vst [vmem:[#allocation13_spill] sm:$0xff] %v3963_v4  ;;  %1656 = vbcast.lane.b32.xlu1 %v3963_v4, 264  ;;  %1652 = vbcast.lane.b32.xlu0 %v3963_v4, 256  ;;  %6311 = vst [vmem:[#allocation14_spill] sm:$0xff] %v3978_v9  ;;  %v4001_v13 = vrot.slane %v377_v60, %v459_v61  ;;  %v4007_v14 = vrot.slane %v377_v60, %v478_v62 }
 0x1f0   :  { %6312 = vst [vmem:[#allocation15_spill] sm:$0xff] %v3985_v10  ;;  %6313 = vst [vmem:[#allocation16_spill] sm:$0xff] %v3995_v12  ;;  %v4013_v15 = vrot.slane %v377_v60, %v497_v1  ;;  %v4019_v16 = vrot.slane %v377_v60, %v516_v2  ;;  %v4026_v17 = vrot.slane %v308_v3, %v3932_v42 }
 0x1f1   :  { %6314 = vst [vmem:[#allocation17_spill] sm:$0xff] %v4001_v13  ;;  %6315 = vst [vmem:[#allocation18_spill] sm:$0xff] %v4007_v14  ;;  %v4033_v18 = vrot.slane %v308_v3, %v3938_v44  ;;  %v4040_v19 = vrot.slane %v308_v3, %v3943_v52  ;;  %v4047_v20 = vrot.slane %v308_v3, %v3990_v11 }
 0x1f2   :  { %6316 = vst [vmem:[#allocation19_spill] sm:$0xff] %v4013_v15  ;;  %6317 = vst [vmem:[#allocation20_spill] sm:$0xff] %v4019_v16 }
 0x1f3   :  { %1664 = vbcast.lane.b32.xlu1 %v3963_v4, 280  ;;  %1660 = vbcast.lane.b32.xlu0 %v3963_v4, 272 }
 0x1f7   :  { %1675 = vbcast.lane.b32.xlu1 %v3978_v9, 264  ;;  %1671 = vbcast.lane.b32.xlu0 %v3978_v9, 256 }
 0x1fb   :  { %1683 = vbcast.lane.b32.xlu1 %v3978_v9, 280  ;;  %1679 = vbcast.lane.b32.xlu0 %v3978_v9, 272 }
 0x1ff   :  { %1694 = vbcast.lane.b32.xlu1 %v3985_v10, 264  ;;  %1690 = vbcast.lane.b32.xlu0 %v3985_v10, 256 }
 0x203   :  { %1702 = vbcast.lane.b32.xlu1 %v3985_v10, 280  ;;  %1698 = vbcast.lane.b32.xlu0 %v3985_v10, 272 }
 0x207   :  { %1713 = vbcast.lane.b32.xlu1 %v3995_v12, 264  ;;  %1709 = vbcast.lane.b32.xlu0 %v3995_v12, 256 }
 0x20b   :  { %1721 = vbcast.lane.b32.xlu1 %v3995_v12, 280  ;;  %1717 = vbcast.lane.b32.xlu0 %v3995_v12, 272 }
 0x20f   :  { %1732 = vbcast.lane.b32.xlu1 %v4001_v13, 264  ;;  %1728 = vbcast.lane.b32.xlu0 %v4001_v13, 256 }
 0x213   :  { %1740 = vbcast.lane.b32.xlu1 %v4001_v13, 280  ;;  %1736 = vbcast.lane.b32.xlu0 %v4001_v13, 272 }
 0x217   :  { %1751 = vbcast.lane.b32.xlu1 %v4007_v14, 264  ;;  %1747 = vbcast.lane.b32.xlu0 %v4007_v14, 256 }
 0x21b   :  { %1759 = vbcast.lane.b32.xlu1 %v4007_v14, 280  ;;  %1755 = vbcast.lane.b32.xlu0 %v4007_v14, 272 }
 0x21f   :  { %1770 = vbcast.lane.b32.xlu1 %v4013_v15, 264  ;;  %1766 = vbcast.lane.b32.xlu0 %v4013_v15, 256 }
 0x223   :  { %1778 = vbcast.lane.b32.xlu1 %v4013_v15, 280  ;;  %1774 = vbcast.lane.b32.xlu0 %v4013_v15, 272 }
 0x227   :  { %1789 = vbcast.lane.b32.xlu1 %v4019_v16, 264  ;;  %1785 = vbcast.lane.b32.xlu0 %v4019_v16, 256 }
 0x22b   :  { %1797 = vbcast.lane.b32.xlu1 %v4019_v16, 280  ;;  %1793 = vbcast.lane.b32.xlu0 %v4019_v16, 272 }
 0x22f   :  { %394 = vbcast.lane.b32.xlu1 %v4026_v17, 272  ;;  %386 = vbcast.lane.b32.xlu0 %v4026_v17, 256 }
 0x233   :  { %398 = vbcast.lane.b32.xlu1 %v4026_v17, 280  ;;  %390 = vbcast.lane.b32.xlu0 %v4026_v17, 264 }
 0x237   :  { %409 = vbcast.lane.b32.xlu1 %v4033_v18, 264  ;;  %405 = vbcast.lane.b32.xlu0 %v4033_v18, 256 }
 0x23b   :  { %417 = vbcast.lane.b32.xlu1 %v4033_v18, 280  ;;  %413 = vbcast.lane.b32.xlu0 %v4033_v18, 272 }
 0x23f   :  { %428 = vbcast.lane.b32.xlu1 %v4040_v19, 264  ;;  %424 = vbcast.lane.b32.xlu0 %v4040_v19, 256 }
 0x243   :  { %436 = vbcast.lane.b32.xlu1 %v4040_v19, 280  ;;  %432 = vbcast.lane.b32.xlu0 %v4040_v19, 272 }
 0x247   :  { %447 = vbcast.lane.b32.xlu1 %v4047_v20, 264  ;;  %443 = vbcast.lane.b32.xlu0 %v4047_v20, 256 }
 0x24b   :  { %455 = vbcast.lane.b32.xlu1 %v4047_v20, 280  ;;  %451 = vbcast.lane.b32.xlu0 %v4047_v20, 272 }
 0x24f   :  { %466 = vbcast.lane.b32.xlu1 %v3965_v5, 264  ;;  %462 = vbcast.lane.b32.xlu0 %v3965_v5, 256 }
 0x253   :  { %474 = vbcast.lane.b32.xlu1 %v3965_v5, 280  ;;  %470 = vbcast.lane.b32.xlu0 %v3965_v5, 272 }
 0x257   :  { %485 = vbcast.lane.b32.xlu1 %v3967_v6, 264  ;;  %481 = vbcast.lane.b32.xlu0 %v3967_v6, 256 }
 0x25b   :  { %493 = vbcast.lane.b32.xlu1 %v3967_v6, 280  ;;  %489 = vbcast.lane.b32.xlu0 %v3967_v6, 272 }
 0x25f   :  { %504 = vbcast.lane.b32.xlu1 %v3970_v7, 264  ;;  %500 = vbcast.lane.b32.xlu0 %v3970_v7, 256 }
 0x261   :  { %v4063_v21 = vpop.permute.xlu1 %1656  ;;  %v4065_v22 = vpop.permute.xlu0 %1652 }
 0x263   :  { %512 = vbcast.lane.b32.xlu1 %v3970_v7, 280  ;;  %508 = vbcast.lane.b32.xlu0 %v3970_v7, 272 }
 0x265   :  { %v4069_v23 = vpop.permute.xlu1 %1664  ;;  %v4071_v24 = vpop.permute.xlu0 %1660 }
 0x267   :  { %523 = vbcast.lane.b32.xlu1 %v3972_v8, 264  ;;  %519 = vbcast.lane.b32.xlu0 %v3972_v8, 256 }
 0x269   :  { %v4075_v25 = vpop.permute.xlu1 %1675  ;;  %v4077_v26 = vpop.permute.xlu0 %1671 }
 0x26b   :  { %531 = vbcast.lane.b32.xlu1 %v3972_v8, 280  ;;  %527 = vbcast.lane.b32.xlu0 %v3972_v8, 272 }
 0x26d   :  { %v4081_v27 = vpop.permute.xlu1 %1683  ;;  %v4083_v28 = vpop.permute.xlu0 %1679 }
 0x26f   :  { %693 = vbcast.lane.b32.xlu1 %v4026_v17, 296  ;;  %689 = vbcast.lane.b32.xlu0 %v4026_v17, 288 }
 0x271   :  { %v4087_v29 = vpop.permute.xlu1 %1694  ;;  %v4089_v30 = vpop.permute.xlu0 %1690 }
 0x273   :  { %701 = vbcast.lane.b32.xlu1 %v4026_v17, 312  ;;  %697 = vbcast.lane.b32.xlu0 %v4026_v17, 304 }
 0x275   :  { %v4093_v31 = vpop.permute.xlu1 %1702  ;;  %v4095_v32 = vpop.permute.xlu0 %1698 }
 0x277   :  { %709 = vbcast.lane.b32.xlu1 %v4033_v18, 296  ;;  %705 = vbcast.lane.b32.xlu0 %v4033_v18, 288 }
 0x279   :  { %v4099_v33 = vpop.permute.xlu1 %1713  ;;  %v4101_v34 = vpop.permute.xlu0 %1709 }
 0x27b   :  { %717 = vbcast.lane.b32.xlu1 %v4033_v18, 312  ;;  %713 = vbcast.lane.b32.xlu0 %v4033_v18, 304 }
 0x27d   :  { %v4105_v35 = vpop.permute.xlu1 %1721  ;;  %v4107_v36 = vpop.permute.xlu0 %1717 }
 0x27f   :  { %725 = vbcast.lane.b32.xlu1 %v4040_v19, 296  ;;  %721 = vbcast.lane.b32.xlu0 %v4040_v19, 288 }
 0x281   :  { %v4111_v37 = vpop.permute.xlu1 %1732  ;;  %v4113_v38 = vpop.permute.xlu0 %1728 }
 0x283   :  { %733 = vbcast.lane.b32.xlu1 %v4040_v19, 312  ;;  %729 = vbcast.lane.b32.xlu0 %v4040_v19, 304 }
 0x285   :  { %v4117_v39 = vpop.permute.xlu1 %1740  ;;  %v4119_v40 = vpop.permute.xlu0 %1736 }
 0x287   :  { %741 = vbcast.lane.b32.xlu1 %v4047_v20, 296  ;;  %737 = vbcast.lane.b32.xlu0 %v4047_v20, 288 }
 0x289   :  { %v4123_v43 = vpop.permute.xlu1 %1751  ;;  %v4125_v44 = vpop.permute.xlu0 %1747 }
 0x28b   :  { %749 = vbcast.lane.b32.xlu1 %v4047_v20, 312  ;;  %745 = vbcast.lane.b32.xlu0 %v4047_v20, 304 }
 0x28d   :  { %v4129_v45 = vpop.permute.xlu1 %1759  ;;  %v4131_v46 = vpop.permute.xlu0 %1755 }
 0x28f   :  { %757 = vbcast.lane.b32.xlu1 %v3965_v5, 296  ;;  %753 = vbcast.lane.b32.xlu0 %v3965_v5, 288 }
 0x291   :  { %v4135_v47 = vpop.permute.xlu1 %1770  ;;  %v4137_v48 = vpop.permute.xlu0 %1766 }
 0x293   :  { %765 = vbcast.lane.b32.xlu1 %v3965_v5, 312  ;;  %761 = vbcast.lane.b32.xlu0 %v3965_v5, 304 }
 0x295   :  { %v4141_v49 = vpop.permute.xlu1 %1778  ;;  %v4143_v50 = vpop.permute.xlu0 %1774 }
 0x297   :  { %773 = vbcast.lane.b32.xlu1 %v3967_v6, 296  ;;  %769 = vbcast.lane.b32.xlu0 %v3967_v6, 288 }
 0x299   :  { %v4147_v51 = vpop.permute.xlu1 %1789  ;;  %v4149_v52 = vpop.permute.xlu0 %1785 }
 0x29a   :  { %6318 = vst [vmem:[#allocation21_spill] sm:$0xff] %v4147_v51  ;;  %6319 = vst [vmem:[#allocation22_spill] sm:$0xff] %v4149_v52 }
 0x29b   :  { %781 = vbcast.lane.b32.xlu1 %v3967_v6, 312  ;;  %777 = vbcast.lane.b32.xlu0 %v3967_v6, 304 }
 0x29d   :  { %v4153_v54 = vpop.permute.xlu1 %1797  ;;  %v4155_v55 = vpop.permute.xlu0 %1793 }
 0x29e   :  { %6320 = vst [vmem:[#allocation23_spill] sm:$0xff] %v4153_v54  ;;  %6321 = vst [vmem:[#allocation24_spill] sm:$0xff] %v4155_v55 }
 0x29f   :  { %789 = vbcast.lane.b32.xlu1 %v3970_v7, 296  ;;  %785 = vbcast.lane.b32.xlu0 %v3970_v7, 288 }
 0x2a1   :  { %v4159_v56 = vpop.permute.xlu1 %394  ;;  %v4161_v57 = vpop.permute.xlu0 %386 }
 0x2a2   :  { %6322 = vst [vmem:[#allocation25_spill] sm:$0xff] %v4159_v56  ;;  %6323 = vst [vmem:[#allocation26_spill] sm:$0xff] %v4161_v57 }
 0x2a3   :  { %797 = vbcast.lane.b32.xlu1 %v3970_v7, 312  ;;  %793 = vbcast.lane.b32.xlu0 %v3970_v7, 304 }
 0x2a5   :  { %v4165_v58 = vpop.permute.xlu1 %398  ;;  %v4167_v59 = vpop.permute.xlu0 %390 }
 0x2a6   :  { %6324 = vst [vmem:[#allocation27_spill] sm:$0xff] %v4165_v58  ;;  %6325 = vst [vmem:[#allocation28_spill] sm:$0xff] %v4167_v59 }
 0x2a7   :  { %805 = vbcast.lane.b32.xlu1 %v3972_v8, 296  ;;  %801 = vbcast.lane.b32.xlu0 %v3972_v8, 288 }
 0x2a9   :  { %v4171_v60 = vpop.permute.xlu1 %409  ;;  %v4173_v61 = vpop.permute.xlu0 %405 }
 0x2aa   :  { %6326 = vst [vmem:[#allocation29_spill] sm:$0xff] %v4171_v60  ;;  %6327 = vst [vmem:[#allocation30_spill] sm:$0xff] %v4173_v61 }
 0x2ab   :  { %813 = vbcast.lane.b32.xlu1 %v3972_v8, 312  ;;  %809 = vbcast.lane.b32.xlu0 %v3972_v8, 304 }
 0x2ad   :  { %v4177_v62 = vpop.permute.xlu1 %417  ;;  %v4179_v63 = vpop.permute.xlu0 %413 }
 0x2ae   :  { %6328 = vst [vmem:[#allocation31_spill] sm:$0xff] %v4177_v62  ;;  %6329 = vst [vmem:[#allocation32_spill] sm:$0xff] %v4179_v63 }
 0x2af   :  { %1013 = vbcast.lane.b32.xlu1 %v4026_v17, 328  ;;  %1009 = vbcast.lane.b32.xlu0 %v4026_v17, 320 }
 0x2b1   :  { %v4183_v1 = vpop.permute.xlu1 %428  ;;  %v4185_v2 = vpop.permute.xlu0 %424 }
 0x2b2   :  { %6330 = vst [vmem:[#allocation33_spill] sm:$0xff] %v4183_v1  ;;  %6331 = vst [vmem:[#allocation34_spill] sm:$0xff] %v4185_v2 }
 0x2b3   :  { %1021 = vbcast.lane.b32.xlu1 %v4026_v17, 344  ;;  %1017 = vbcast.lane.b32.xlu0 %v4026_v17, 336 }
 0x2b5   :  { %v4189_v3 = vpop.permute.xlu1 %436  ;;  %v4191_v61 = vpop.permute.xlu0 %432 }
 0x2b6   :  { %6332 = vst [vmem:[#allocation35_spill] sm:$0xff] %v4189_v3  ;;  %6333 = vst [vmem:[#allocation36_spill] sm:$0xff] %v4191_v61 }
 0x2b7   :  { %1029 = vbcast.lane.b32.xlu1 %v4033_v18, 328  ;;  %1025 = vbcast.lane.b32.xlu0 %v4033_v18, 320 }
 0x2b9   :  { %v4195_v63 = vpop.permute.xlu1 %447  ;;  %v4197_v62 = vpop.permute.xlu0 %443 }
 0x2ba   :  { %6334 = vst [vmem:[#allocation37_spill] sm:$0xff] %v4195_v63  ;;  %6335 = vst [vmem:[#allocation38_spill] sm:$0xff] %v4197_v62 }
 0x2bb   :  { %1037 = vbcast.lane.b32.xlu1 %v4033_v18, 344  ;;  %1033 = vbcast.lane.b32.xlu0 %v4033_v18, 336 }
 0x2bd   :  { %v4201_v2 = vpop.permute.xlu1 %455  ;;  %v4203_v1 = vpop.permute.xlu0 %451 }
 0x2be   :  { %6336 = vst [vmem:[#allocation39_spill] sm:$0xff] %v4201_v2  ;;  %6337 = vst [vmem:[#allocation40_spill] sm:$0xff] %v4203_v1 }
 0x2bf   :  { %1045 = vbcast.lane.b32.xlu1 %v4040_v19, 328  ;;  %1041 = vbcast.lane.b32.xlu0 %v4040_v19, 320 }
 0x2c1   :  { %v4207_v61 = vpop.permute.xlu1 %466  ;;  %v4209_v3 = vpop.permute.xlu0 %462 }
 0x2c2   :  { %6338 = vst [vmem:[#allocation41_spill] sm:$0xff] %v4207_v61  ;;  %6339 = vst [vmem:[#allocation42_spill] sm:$0xff] %v4209_v3 }
 0x2c3   :  { %1053 = vbcast.lane.b32.xlu1 %v4040_v19, 344  ;;  %1049 = vbcast.lane.b32.xlu0 %v4040_v19, 336 }
 0x2c5   :  { %v4213_v62 = vpop.permute.xlu1 %474  ;;  %v4215_v63 = vpop.permute.xlu0 %470 }
 0x2c6   :  { %6340 = vst [vmem:[#allocation43_spill] sm:$0xff] %v4213_v62  ;;  %6341 = vst [vmem:[#allocation44_spill] sm:$0xff] %v4215_v63 }
 0x2c7   :  { %1061 = vbcast.lane.b32.xlu1 %v4047_v20, 328  ;;  %1057 = vbcast.lane.b32.xlu0 %v4047_v20, 320 }
 0x2c9   :  { %v4219_v1 = vpop.permute.xlu1 %485  ;;  %v4221_v2 = vpop.permute.xlu0 %481 }
 0x2ca   :  { %6342 = vst [vmem:[#allocation45_spill] sm:$0xff] %v4219_v1  ;;  %6343 = vst [vmem:[#allocation46_spill] sm:$0xff] %v4221_v2 }
 0x2cb   :  { %1069 = vbcast.lane.b32.xlu1 %v4047_v20, 344  ;;  %1065 = vbcast.lane.b32.xlu0 %v4047_v20, 336 }
 0x2cd   :  { %v4225_v3 = vpop.permute.xlu1 %493  ;;  %v4227_v61 = vpop.permute.xlu0 %489 }
 0x2ce   :  { %6344 = vst [vmem:[#allocation47_spill] sm:$0xff] %v4225_v3  ;;  %6345 = vst [vmem:[#allocation48_spill] sm:$0xff] %v4227_v61 }
 0x2cf   :  { %1077 = vbcast.lane.b32.xlu1 %v3965_v5, 328  ;;  %1073 = vbcast.lane.b32.xlu0 %v3965_v5, 320 }
 0x2d1   :  { %v4231_v63 = vpop.permute.xlu1 %504  ;;  %v4233_v62 = vpop.permute.xlu0 %500 }
 0x2d2   :  { %6346 = vst [vmem:[#allocation49_spill] sm:$0xff] %v4231_v63  ;;  %6347 = vst [vmem:[#allocation50_spill] sm:$0xff] %v4233_v62 }
 0x2d3   :  { %1085 = vbcast.lane.b32.xlu1 %v3965_v5, 344  ;;  %1081 = vbcast.lane.b32.xlu0 %v3965_v5, 336 }
 0x2d5   :  { %v4237_v2 = vpop.permute.xlu1 %512  ;;  %v4239_v1 = vpop.permute.xlu0 %508 }
 0x2d6   :  { %6348 = vst [vmem:[#allocation51_spill] sm:$0xff] %v4237_v2  ;;  %6349 = vst [vmem:[#allocation52_spill] sm:$0xff] %v4239_v1 }
 0x2d7   :  { %1093 = vbcast.lane.b32.xlu1 %v3967_v6, 328  ;;  %1089 = vbcast.lane.b32.xlu0 %v3967_v6, 320 }
 0x2d9   :  { %v4243_v61 = vpop.permute.xlu1 %523  ;;  %v4245_v3 = vpop.permute.xlu0 %519 }
 0x2da   :  { %6350 = vst [vmem:[#allocation53_spill] sm:$0xff] %v4243_v61  ;;  %6351 = vst [vmem:[#allocation54_spill] sm:$0xff] %v4245_v3 }
 0x2db   :  { %1101 = vbcast.lane.b32.xlu1 %v3967_v6, 344  ;;  %1097 = vbcast.lane.b32.xlu0 %v3967_v6, 336 }
 0x2dd   :  { %v4249_v62 = vpop.permute.xlu1 %531  ;;  %v4251_v63 = vpop.permute.xlu0 %527 }
 0x2de   :  { %6352 = vst [vmem:[#allocation55_spill] sm:$0xff] %v4249_v62  ;;  %6353 = vst [vmem:[#allocation56_spill] sm:$0xff] %v4251_v63 }
 0x2df   :  { %1109 = vbcast.lane.b32.xlu1 %v3970_v7, 328  ;;  %1105 = vbcast.lane.b32.xlu0 %v3970_v7, 320 }
 0x2e1   :  { %v4255_v1 = vpop.permute.xlu1 %693  ;;  %v4257_v2 = vpop.permute.xlu0 %689 }
 0x2e3   :  { %1117 = vbcast.lane.b32.xlu1 %v3970_v7, 344  ;;  %1113 = vbcast.lane.b32.xlu0 %v3970_v7, 336 }
 0x2e5   :  { %v4261_v3 = vpop.permute.xlu1 %701  ;;  %v4263_v61 = vpop.permute.xlu0 %697 }
 0x2e7   :  { %1125 = vbcast.lane.b32.xlu1 %v3972_v8, 328  ;;  %1121 = vbcast.lane.b32.xlu0 %v3972_v8, 320 }
 0x2e9   :  { %v4267_v63 = vpop.permute.xlu1 %709  ;;  %v4269_v62 = vpop.permute.xlu0 %705 }
 0x2eb   :  { %1133 = vbcast.lane.b32.xlu1 %v3972_v8, 344  ;;  %1129 = vbcast.lane.b32.xlu0 %v3972_v8, 336 }
 0x2ed   :  { %v4273_v60 = vpop.permute.xlu1 %717  ;;  %v4275_v59 = vpop.permute.xlu0 %713 }
 0x2ef   :  { %1333 = vbcast.lane.b32.xlu1 %v4026_v17, 360  ;;  %1329 = vbcast.lane.b32.xlu0 %v4026_v17, 352 }
 0x2f1   :  { %v4279_v58 = vpop.permute.xlu1 %725  ;;  %v4281_v57 = vpop.permute.xlu0 %721 }
 0x2f3   :  { %1341 = vbcast.lane.b32.xlu1 %v4026_v17, 376  ;;  %1337 = vbcast.lane.b32.xlu0 %v4026_v17, 368 }
 0x2f5   :  { %v4285_v56 = vpop.permute.xlu1 %733  ;;  %v4287_v16 = vpop.permute.xlu0 %729 }
 0x2f7   :  { %1349 = vbcast.lane.b32.xlu1 %v4033_v18, 360  ;;  %1345 = vbcast.lane.b32.xlu0 %v4033_v18, 352 }
 0x2f9   :  { %v4291_v15 = vpop.permute.xlu1 %741  ;;  %v4293_v14 = vpop.permute.xlu0 %737 }
 0x2fb   :  { %1357 = vbcast.lane.b32.xlu1 %v4033_v18, 376  ;;  %1353 = vbcast.lane.b32.xlu0 %v4033_v18, 368 }
 0x2fd   :  { %v4297_v13 = vpop.permute.xlu1 %749  ;;  %v4299_v12 = vpop.permute.xlu0 %745 }
 0x2ff   :  { %1365 = vbcast.lane.b32.xlu1 %v4040_v19, 360  ;;  %1361 = vbcast.lane.b32.xlu0 %v4040_v19, 352 }
 0x301   :  { %v4303_v17 = vpop.permute.xlu1 %757  ;;  %v4305_v10 = vpop.permute.xlu0 %753 }
 0x303   :  { %1373 = vbcast.lane.b32.xlu1 %v4040_v19, 376  ;;  %1369 = vbcast.lane.b32.xlu0 %v4040_v19, 368 }
 0x305   :  { %v4309_v9 = vpop.permute.xlu1 %765  ;;  %v4311_v4 = vpop.permute.xlu0 %761 }
 0x306   :  { %6354 = vst [vmem:[#allocation57_spill] sm:$0xff] %v4311_v4 }
 0x307   :  { %1381 = vbcast.lane.b32.xlu1 %v4047_v20, 360  ;;  %1377 = vbcast.lane.b32.xlu0 %v4047_v20, 352 }
 0x309   :  { %v4315_v18 = vpop.permute.xlu1 %773  ;;  %v4317_v55 = vpop.permute.xlu0 %769 }
 0x30a   :  { %6355 = vst [vmem:[#allocation58_spill] sm:$0xff] %v4315_v18  ;;  %6356 = vst [vmem:[#allocation59_spill] sm:$0xff] %v4317_v55 }
 0x30b   :  { %1389 = vbcast.lane.b32.xlu1 %v4047_v20, 376  ;;  %1385 = vbcast.lane.b32.xlu0 %v4047_v20, 368  ;;  %v3851_v20 = vmov 1966171168  }
 0x30d   :  { %v4321_v54 = vpop.permute.xlu1 %781  ;;  %v4323_v52 = vpop.permute.xlu0 %777 }
 0x30e   :  { %6357 = vst [vmem:[#allocation60_spill] sm:$0xff] %v4321_v54  ;;  %6358 = vst [vmem:[#allocation61_spill] sm:$0xff] %v4323_v52  ;;  %v536_v54 = vunpack.c.l.s4 %v3851_v20 }
 0x30f   :  { %1397 = vbcast.lane.b32.xlu1 %v3965_v5, 360  ;;  %1393 = vbcast.lane.b32.xlu0 %v3965_v5, 352 }
 0x311   :  { %v4327_v19 = vpop.permute.xlu1 %789  ;;  %v4329_v51 = vpop.permute.xlu0 %785 }
 0x312   :  { %6359 = vst [vmem:[#allocation62_spill] sm:$0xff] %v4327_v19  ;;  %6360 = vst [vmem:[#allocation63_spill] sm:$0xff] %v4329_v51  ;;  %v234_v51 = vrot.slane %v3948_v53, %v3990_v11  ;;  %v537_v19 = vunpack.c.0.s8 %v536_v54 }
 0x313   :  { %1405 = vbcast.lane.b32.xlu1 %v3965_v5, 376  ;;  %1401 = vbcast.lane.b32.xlu0 %v3965_v5, 368 }
 0x314   :  { %v379_v20 = vadd.f32 %v3958_v0, %v234_v51 }
 0x315   :  { %v4333_v55 = vpop.permute.xlu1 %797  ;;  %v4335_v18 = vpop.permute.xlu0 %793 }
 0x316   :  { %6361 = vst [vmem:[#allocation64_spill] sm:$0xff] %v4333_v55  ;;  %6362 = vst [vmem:[#allocation65_spill] sm:$0xff] %v4335_v18  ;;  %v4353_v55 = vsub.s32 %v537_v19, %v3929_v41 }
 0x317   :  { %1413 = vbcast.lane.b32.xlu1 %v3967_v6, 360  ;;  %1409 = vbcast.lane.b32.xlu0 %v3967_v6, 352 }
 0x318   :  { %v541_v11 = vrot.slane %v379_v20, %v4353_v55 }
 0x319   :  { %v4339_v52 = vpop.permute.xlu1 %805  ;;  %v4341_v4 = vpop.permute.xlu0 %801 }
 0x31a   :  { %6363 = vst [vmem:[#allocation66_spill] sm:$0xff] %v4341_v4  ;;  %v557_v51 = vrot.slane %v541_v11, %v4353_v55  ;;  %v549_v41 = vcombine.high %v541_v11, %v541_v11 }
 0x31b   :  { %1421 = vbcast.lane.b32.xlu1 %v3967_v6, 376  ;;  %1417 = vbcast.lane.b32.xlu0 %v3967_v6, 368 }
 0x31d   :  { %v4347_v5 = vpop.permute.xlu1 %813  ;;  %v4349_v18 = vpop.permute.xlu0 %809 }
 0x31f   :  { %1429 = vbcast.lane.b32.xlu1 %v3970_v7, 360  ;;  %1425 = vbcast.lane.b32.xlu0 %v3970_v7, 352 }
 0x321   :  { %v4357_v4 = vpop.permute.xlu1 %1013  ;;  %v4359_v53 = vpop.permute.xlu0 %1009 }
 0x322   :  { %6364 = vst [vmem:[#allocation67_spill] sm:$0xff] %v4357_v4  ;;  %6365 = vst [vmem:[#allocation68_spill] sm:$0xff] %v4359_v53  ;;  %v4376_v53 = vrot.slane %v557_v51, %v3932_v42 }
 0x323   :  { %1437 = vbcast.lane.b32.xlu1 %v3970_v7, 376  ;;  %1433 = vbcast.lane.b32.xlu0 %v3970_v7, 368 }
 0x324   :  { %v1800_v7 = vmul.f32 %v4063_v21, %v4376_v53  ;;  %v1801_v21 = vmul.f32 %v4071_v24, %v4376_v53  ;;  %v579_v24 = vcombine.high %v557_v51, %v557_v51 }
 0x325   :  { %v4364_v6 = vpop.permute.xlu1 %1021  ;;  %v4366_v0 = vpop.permute.xlu0 %1017 }
 0x326   :  { %6366 = vst [vmem:[#allocation69_spill] sm:$0xff] %v4364_v6  ;;  %6367 = vst [vmem:[#allocation70_spill] sm:$0xff] %v4366_v0  ;;  %v1799_v6 = vmul.f32 %v4065_v22, %v4376_v53 }
 0x327   :  { %1445 = vbcast.lane.b32.xlu1 %v3972_v8, 360  ;;  %1441 = vbcast.lane.b32.xlu0 %v3972_v8, 352 }
 0x329   :  { %v4371_v54 = vpop.permute.xlu1 %1029  ;;  %v4373_v19 = vpop.permute.xlu0 %1025 }
 0x32a   :  { %6368 = vst [vmem:[#allocation71_spill] sm:$0xff] %v4373_v19  ;;  %v571_v19 = vrot.slane %v549_v41, %v4353_v55 }
 0x32b   :  { %1453 = vbcast.lane.b32.xlu1 %v3972_v8, 376  ;;  %1449 = vbcast.lane.b32.xlu0 %v3972_v8, 368  ;;  %v1802_v8 = vmul.f32 %v4069_v23, %v4376_v53 }
 0x32c   :  { %v4400_v22 = vrot.slane %v571_v19, %v3932_v42 }
 0x32d   :  { %v4382_v0 = vpop.permute.xlu1 %1037  ;;  %v4386_v4 = vpop.permute.xlu0 %1033 }
 0x32e   :  { %6369 = vst [vmem:[#allocation72_spill] sm:$0xff] %v4382_v0  ;;  %v1804_v41 = vmul.f32 %v4075_v25, %v4400_v22  ;;  %v1803_v23 = vmul.f32 %v4077_v26, %v4400_v22  ;;  %v1805_v25 = vmul.f32 %v4083_v28, %v4400_v22  ;;  %v534_v28 = vcombine.high %v379_v20, %v379_v20 }
 0x32f   :  { %1865 = vrot.lane.b32.xlu1 %v1800_v7, %s3852_s4  ;;  %1863 = vrot.lane.b32.xlu0 %v1799_v6, %s3852_s4 }
 0x331   :  { %v4393_v11 = vpop.permute.xlu1 %1045  ;;  %v4397_v0 = vpop.permute.xlu0 %1041 }
 0x332   :  { %6370 = vst [vmem:[#allocation73_spill] sm:$0xff] %v4397_v0 }
 0x333   :  { %1869 = vrot.lane.b32.xlu1 %v1802_v8, %s3852_s4  ;;  %1867 = vrot.lane.b32.xlu0 %v1801_v21, %s3852_s4  ;;  %v1806_v8 = vmul.f32 %v4081_v27, %v4400_v22 }
 0x335   :  { %v4406_v6 = vpop.permute.xlu1 %1053  ;;  %v4410_v7 = vpop.permute.xlu0 %1049 }
 0x336   :  { %6371 = vst [vmem:[#allocation74_spill] sm:$0xff] %v4406_v6  ;;  %v4423_v6 = vrot.slane %v579_v24, %v3932_v42 }
 0x337   :  { %1873 = vrot.lane.b32.xlu1 %v1804_v41, %s3852_s4  ;;  %1871 = vrot.lane.b32.xlu0 %v1803_v23, %s3852_s4  ;;  %v581_v23 = vcombine.high %v571_v19, %v571_v19 }
 0x338   :  { %v1808_v26 = vmul.f32 %v4087_v29, %v4423_v6  ;;  %v1807_v27 = vmul.f32 %v4089_v30, %v4423_v6  ;;  %v1810_v24 = vmul.f32 %v4093_v31, %v4423_v6  ;;  %v1809_v29 = vmul.f32 %v4095_v32, %v4423_v6 }
 0x339   :  { %v4416_v0 = vpop.permute.xlu1 %1061  ;;  %v4420_v21 = vpop.permute.xlu0 %1057  ;;  %v548_v30 = vrot.slane %v534_v28, %v4353_v55 }
 0x33b   :  { %1877 = vrot.lane.b32.xlu1 %v1806_v8, %s3852_s4  ;;  %1875 = vrot.lane.b32.xlu0 %v1805_v25, %s3852_s4 }
 0x33d   :  { %v4429_v51 = vpop.permute.xlu1 %1069  ;;  %v4433_v41 = vpop.permute.xlu0 %1065 }
 0x33e   :  { %6372 = vst [vmem:[#allocation75_spill] sm:$0xff] %v4433_v41  ;;  %v4447_v41 = vrot.slane %v581_v23, %v3932_v42 }
 0x33f   :  { %1881 = vrot.lane.b32.xlu1 %v1808_v26, %s3852_s4  ;;  %1879 = vrot.lane.b32.xlu0 %v1807_v27, %s3852_s4  ;;  %v564_v26 = vrot.slane %v548_v30, %v4353_v55 }
 0x340   :  { %v1812_v20 = vmul.f32 %v4099_v33, %v4447_v41  ;;  %v1811_v19 = vmul.f32 %v4101_v34, %v4447_v41  ;;  %v1814_v27 = vmul.f32 %v4105_v35, %v4447_v41  ;;  %v1813_v33 = vmul.f32 %v4107_v36, %v4447_v41 }
 0x341   :  { %v4439_v8 = vpop.permute.xlu1 %1077  ;;  %v4443_v25 = vpop.permute.xlu0 %1073  ;;  %v4471_v34 = vrot.slane %v564_v26, %v3932_v42 }
 0x343   :  { %1885 = vrot.lane.b32.xlu1 %v1810_v24, %s3852_s4  ;;  %1883 = vrot.lane.b32.xlu0 %v1809_v29, %s3852_s4  ;;  %v550_v24 = vcombine.high %v548_v30, %v548_v30  ;;  %v1816_v29 = vmul.f32 %v4111_v37, %v4471_v34  ;;  %v1815_v35 = vmul.f32 %v4113_v38, %v4471_v34 }
 0x344   :  { %v1818_v30 = vmul.f32 %v4117_v39, %v4471_v34  ;;  %v1817_v37 = vmul.f32 %v4119_v40, %v4471_v34  ;;  %v580_v40 = vcombine.high %v564_v26, %v564_v26 }
 0x345   :  { %v4453_v31 = vpop.permute.xlu1 %1085  ;;  %v4457_v32 = vpop.permute.xlu0 %1081  ;;  %v4484_v36 = vrot.slane %v550_v24, %v4353_v55 }
 0x347   :  { %1889 = vrot.lane.b32.xlu1 %v1812_v20, %s3852_s4  ;;  %1887 = vrot.lane.b32.xlu0 %v1811_v19, %s3852_s4  ;;  %v4498_v38 = vrot.slane %v4484_v36, %v3932_v42 }
 0x349   :  { %v4464_v28 = vpop.permute.xlu1 %1093  ;;  %v4468_v23 = vpop.permute.xlu0 %1089  ;;  %v1820_v55 = vmul.f32 %v4123_v43, %v4498_v38  ;;  %v1819_v39 = vmul.f32 %v4125_v44, %v4498_v38  ;;  %v1821_v43 = vmul.f32 %v4131_v46, %v4498_v38 }
 0x34b   :  { %1893 = vrot.lane.b32.xlu1 %v1814_v27, %s3852_s4  ;;  %1891 = vrot.lane.b32.xlu0 %v1813_v33, %s3852_s4 }
 0x34d   :  { %v4477_v20 = vpop.permute.xlu1 %1101  ;;  %v4481_v19 = vpop.permute.xlu0 %1097 }
 0x34f   :  { %1897 = vrot.lane.b32.xlu1 %v1816_v29, %s3852_s4  ;;  %1895 = vrot.lane.b32.xlu0 %v1815_v35, %s3852_s4  ;;  %v1822_v35 = vmul.f32 %v4129_v45, %v4498_v38 }
 0x351   :  { %v4490_v27 = vpop.permute.xlu1 %1109  ;;  %v4494_v33 = vpop.permute.xlu0 %1105 }
 0x353   :  { %1901 = vrot.lane.b32.xlu1 %v1818_v30, %s3852_s4  ;;  %1899 = vrot.lane.b32.xlu0 %v1817_v37, %s3852_s4 }
 0x355   :  { %v4504_v24 = vpop.permute.xlu1 %1117  ;;  %v4508_v29 = vpop.permute.xlu0 %1113 }
 0x356   :  { %6373 = vst [vmem:[#allocation76_spill] sm:$0xff] %v4504_v24  ;;  %v4521_v24 = vrot.slane %v580_v40, %v3932_v42 }
 0x357   :  { %1905 = vrot.lane.b32.xlu1 %v1820_v55, %s3852_s4  ;;  %1903 = vrot.lane.b32.xlu0 %v1819_v39, %s3852_s4 }
 0x358   :  { %v1824_v44 = vmul.f32 %v4135_v47, %v4521_v24  ;;  %v1823_v45 = vmul.f32 %v4137_v48, %v4521_v24  ;;  %v1826_v46 = vmul.f32 %v4141_v49, %v4521_v24  ;;  %v1825_v40 = vmul.f32 %v4143_v50, %v4521_v24 }
 0x359   :  { %v4514_v30 = vpop.permute.xlu1 %1125  ;;  %v4518_v37 = vpop.permute.xlu0 %1121  ;;  %v816_v48 = vmul.f32 %v4255_v1, %v4376_v53  ;;  %v818_v50 = vmul.f32 %v4261_v3, %v4376_v53  ;;  %v817_v1 = vmul.f32 %v4263_v61, %v4376_v53  ;;  %v822_v61 = vmul.f32 %v4273_v60, %v4400_v22 }
 0x35b   :  { %1909 = vrot.lane.b32.xlu1 %v1822_v35, %s3852_s4  ;;  %1907 = vrot.lane.b32.xlu0 %v1821_v43, %s3852_s4  ;;  %v815_v43 = vmul.f32 %v4257_v2, %v4376_v53  ;;  %v820_v2 = vmul.f32 %v4267_v63, %v4400_v22 }
 0x35d   :  { %v4527_v26 = vpop.permute.xlu1 %1133  ;;  %v4531_v55 = vpop.permute.xlu0 %1129 }
 0x35f   :  { %1913 = vrot.lane.b32.xlu1 %v1824_v44, %s3852_s4  ;;  %1911 = vrot.lane.b32.xlu0 %v1823_v45, %s3852_s4 }
 0x361   :  { %v4537_v39 = vpop.permute.xlu1 %1333  ;;  %v4541_v47 = vpop.permute.xlu0 %1329 }
 0x363   :  { %1917 = vrot.lane.b32.xlu1 %v1826_v46, %s3852_s4  ;;  %1915 = vrot.lane.b32.xlu0 %v1825_v40, %s3852_s4  ;;  %v819_v40 = vmul.f32 %v4269_v62, %v4400_v22  ;;  %v824_v62 = vmul.f32 %v4279_v58, %v4423_v6 }
 0x365   :  { %v4547_v35 = vpop.permute.xlu1 %1341  ;;  %v4551_v49 = vpop.permute.xlu0 %1337 }
 0x367   :  { %881 = vrot.lane.b32.xlu1 %v816_v48, %s3853_s9  ;;  %879 = vrot.lane.b32.xlu0 %v815_v43, %s3853_s9  ;;  %v821_v43 = vmul.f32 %v4275_v59, %v4400_v22  ;;  %v826_v59 = vmul.f32 %v4285_v56, %v4423_v6 }
 0x369   :  { %v4557_v44 = vpop.permute.xlu1 %1349  ;;  %v4561_v45 = vpop.permute.xlu0 %1345 }
 0x36b   :  { %885 = vrot.lane.b32.xlu1 %v818_v50, %s3853_s9  ;;  %883 = vrot.lane.b32.xlu0 %v817_v1, %s3853_s9  ;;  %v823_v1 = vmul.f32 %v4281_v57, %v4423_v6  ;;  %v828_v57 = vmul.f32 %v4291_v15, %v4447_v41 }
 0x36d   :  { %v4567_v46 = vpop.permute.xlu1 %1357  ;;  %v4571_v3 = vpop.permute.xlu0 %1353 }
 0x36f   :  { %889 = vrot.lane.b32.xlu1 %v820_v2, %s3853_s9  ;;  %887 = vrot.lane.b32.xlu0 %v819_v40, %s3853_s9  ;;  %v825_v40 = vmul.f32 %v4287_v16, %v4423_v6  ;;  %v830_v16 = vmul.f32 %v4297_v13, %v4447_v41 }
 0x371   :  { %v4577_v48 = vpop.permute.xlu1 %1365  ;;  %v4581_v63 = vpop.permute.xlu0 %1361 }
 0x373   :  { %893 = vrot.lane.b32.xlu1 %v822_v61, %s3853_s9  ;;  %891 = vrot.lane.b32.xlu0 %v821_v43, %s3853_s9  ;;  %v827_v43 = vmul.f32 %v4293_v14, %v4447_v41  ;;  %v832_v14 = vmul.f32 %v4303_v17, %v4471_v34 }
 0x375   :  { %v4587_v50 = vpop.permute.xlu1 %1373  ;;  %v4591_v60 = vpop.permute.xlu0 %1369 }
 0x377   :  { %897 = vrot.lane.b32.xlu1 %v824_v62, %s3853_s9  ;;  %895 = vrot.lane.b32.xlu0 %v823_v1, %s3853_s9  ;;  %v829_v1 = vmul.f32 %v4299_v12, %v4447_v41  ;;  %v834_v12 = vmul.f32 %v4309_v9, %v4471_v34 }
 0x379   :  { %v4597_v2 = vpop.permute.xlu1 %1381  ;;  %v4601_v58 = vpop.permute.xlu0 %1377 }
 0x37b   :  { %901 = vrot.lane.b32.xlu1 %v826_v59, %s3853_s9  ;;  %899 = vrot.lane.b32.xlu0 %v825_v40, %s3853_s9  ;;  %v831_v40 = vmul.f32 %v4305_v10, %v4471_v34  ;;  %v6378_v10 = vld [vmem:[#allocation58_spill] sm:$0xff] }
 0x37d   :  { %v4607_v61 = vpop.permute.xlu1 %1389  ;;  %v4611_v56 = vpop.permute.xlu0 %1385 }
 0x37f   :  { %905 = vrot.lane.b32.xlu1 %v828_v57, %s3853_s9  ;;  %903 = vrot.lane.b32.xlu0 %v827_v43, %s3853_s9  ;;  %v6376_v43 = vld [vmem:[#allocation57_spill] sm:$0xff] }
 0x381   :  { %v4617_v62 = vpop.permute.xlu1 %1397  ;;  %v4621_v15 = vpop.permute.xlu0 %1393 }
 0x383   :  { %909 = vrot.lane.b32.xlu1 %v830_v16, %s3853_s9  ;;  %907 = vrot.lane.b32.xlu0 %v829_v1, %s3853_s9  ;;  %v833_v16 = vmul.f32 %v6376_v43, %v4471_v34  ;;  %v836_v1 = vmul.f32 %v6378_v10, %v4498_v38  ;;  %v6382_v43 = vld [vmem:[#allocation60_spill] sm:$0xff] }
 0x385   :  { %v4627_v59 = vpop.permute.xlu1 %1405  ;;  %v4631_v13 = vpop.permute.xlu0 %1401 }
 0x386   :  { %6374 = vst [vmem:[#allocation77_spill] sm:$0xff] %v4631_v13 }
 0x387   :  { %913 = vrot.lane.b32.xlu1 %v832_v14, %s3853_s9  ;;  %911 = vrot.lane.b32.xlu0 %v831_v40, %s3853_s9  ;;  %v6380_v40 = vld [vmem:[#allocation59_spill] sm:$0xff] }
 0x388   :  { %v835_v13 = vmul.f32 %v6380_v40, %v4498_v38  ;;  %v6386_v40 = vld [vmem:[#allocation62_spill] sm:$0xff] }
 0x389   :  { %v4637_v57 = vpop.permute.xlu1 %1413  ;;  %v4641_v17 = vpop.permute.xlu0 %1409 }
 0x38a   :  { %6375 = vst [vmem:[#allocation78_spill] sm:$0xff] %v4637_v57  ;;  %6377 = vst [vmem:[#allocation57_spill] sm:$0xff] %v4641_v17  ;;  %v838_v17 = vmul.f32 %v6382_v43, %v4498_v38 }
 0x38b   :  { %917 = vrot.lane.b32.xlu1 %v834_v12, %s3853_s9  ;;  %915 = vrot.lane.b32.xlu0 %v833_v16, %s3853_s9  ;;  %v6384_v16 = vld [vmem:[#allocation61_spill] sm:$0xff] }
 0x38c   :  { %v837_v57 = vmul.f32 %v6384_v16, %v4498_v38 }
 0x38d   :  { %v4647_v14 = vpop.permute.xlu1 %1421  ;;  %v4651_v9 = vpop.permute.xlu0 %1417 }
 0x38e   :  { %6379 = vst [vmem:[#allocation58_spill] sm:$0xff] %v4647_v14  ;;  %6381 = vst [vmem:[#allocation59_spill] sm:$0xff] %v4651_v9  ;;  %v840_v9 = vmul.f32 %v6386_v40, %v4521_v24  ;;  %v6391_v40 = vld [vmem:[#allocation65_spill] sm:$0xff] }
 0x38f   :  { %921 = vrot.lane.b32.xlu1 %v836_v1, %s3853_s9  ;;  %919 = vrot.lane.b32.xlu0 %v835_v13, %s3853_s9  ;;  %v6388_v13 = vld [vmem:[#allocation63_spill] sm:$0xff] }
 0x390   :  { %v839_v14 = vmul.f32 %v6388_v13, %v4521_v24 }
 0x391   :  { %v4657_v12 = vpop.permute.xlu1 %1429  ;;  %v4661_v10 = vpop.permute.xlu0 %1425 }
 0x392   :  { %6383 = vst [vmem:[#allocation60_spill] sm:$0xff] %v4657_v12  ;;  %6385 = vst [vmem:[#allocation61_spill] sm:$0xff] %v4661_v10  ;;  %v582_v12 = vcombine.high %v4484_v36, %v4484_v36 }
 0x393   :  { %925 = vrot.lane.b32.xlu1 %v838_v17, %s3853_s9  ;;  %923 = vrot.lane.b32.xlu0 %v837_v57, %s3853_s9  ;;  %v6389_v17 = vld [vmem:[#allocation64_spill] sm:$0xff] }
 0x394   :  { %v842_v57 = vmul.f32 %v6389_v17, %v4521_v24  ;;  %v4686_v13 = vrot.slane %v582_v12, %v3932_v42 }
 0x395   :  { %v4667_v1 = vpop.permute.xlu1 %1437  ;;  %v4671_v43 = vpop.permute.xlu0 %1433 }
 0x396   :  { %6387 = vst [vmem:[#allocation62_spill] sm:$0xff] %v4667_v1  ;;  %v841_v1 = vmul.f32 %v6391_v40, %v4521_v24  ;;  %v844_v36 = vmul.f32 %v4339_v52, %v4686_v13  ;;  %v846_v42 = vmul.f32 %v4347_v5, %v4686_v13 }
 0x397   :  { %929 = vrot.lane.b32.xlu1 %v840_v9, %s3853_s9  ;;  %927 = vrot.lane.b32.xlu0 %v839_v14, %s3853_s9  ;;  %v6392_v9 = vld [vmem:[#allocation66_spill] sm:$0xff] }
 0x398   :  { %v843_v17 = vmul.f32 %v6392_v9, %v4686_v13  ;;  %v6397_v9 = vld [vmem:[#allocation68_spill] sm:$0xff] }
 0x399   :  { %v4679_v16 = vpop.permute.xlu1 %1445  ;;  %v4683_v10 = vpop.permute.xlu0 %1441 }
 0x39a   :  { %6390 = vst [vmem:[#allocation63_spill] sm:$0xff] %v4679_v16 }
 0x39b   :  { %933 = vrot.lane.b32.xlu1 %v842_v57, %s3853_s9  ;;  %931 = vrot.lane.b32.xlu0 %v841_v1, %s3853_s9  ;;  %v845_v1 = vmul.f32 %v4349_v18, %v4686_v13  ;;  %v6395_v57 = vld [vmem:[#allocation67_spill] sm:$0xff]  ;;  %v6399_v18 = vld [vmem:[#allocation69_spill] sm:$0xff] }
 0x39c   :  { %v1136_v40 = vmul.f32 %v6395_v57, %v4376_v53 }
 0x39d   :  { %v4692_v14 = vpop.permute.xlu1 %1453  ;;  %v4696_v16 = vpop.permute.xlu0 %1449 }
 0x39f   :  { %937 = vrot.lane.b32.xlu1 %v844_v36, %s3853_s9  ;;  %935 = vrot.lane.b32.xlu0 %v843_v17, %s3853_s9  ;;  %v1135_v17 = vmul.f32 %v6397_v9, %v4376_v53  ;;  %v1140_v9 = vmul.f32 %v4371_v54, %v4400_v22 }
 0x3a1   :  { %v4702_v12 = vpop.permute.xlu1 %1865  ;;  %v4706_v52 = vpop.permute.xlu0 %1863 }
 0x3a2   :  { %6393 = vst [vmem:[#allocation64_spill] sm:$0xff] %v4702_v12  ;;  %6394 = vst [vmem:[#allocation65_spill] sm:$0xff] %v4706_v52 }
 0x3a3   :  { %941 = vrot.lane.b32.xlu1 %v846_v42, %s3853_s9  ;;  %939 = vrot.lane.b32.xlu0 %v845_v1, %s3853_s9  ;;  %v1138_v42 = vmul.f32 %v6399_v18, %v4376_v53  ;;  %v6401_v1 = vld [vmem:[#allocation70_spill] sm:$0xff] }
 0x3a4   :  { %v1137_v57 = vmul.f32 %v6401_v1, %v4376_v53  ;;  %v6406_v1 = vld [vmem:[#allocation72_spill] sm:$0xff] }
 0x3a5   :  { %v4712_v36 = vpop.permute.xlu1 %1869  ;;  %v4716_v5 = vpop.permute.xlu0 %1867 }
 0x3a6   :  { %6396 = vst [vmem:[#allocation66_spill] sm:$0xff] %v4712_v36  ;;  %6398 = vst [vmem:[#allocation67_spill] sm:$0xff] %v4716_v5 }
 0x3a7   :  { %1201 = vrot.lane.b32.xlu1 %v1136_v40, %s3854_s10  ;;  %1199 = vrot.lane.b32.xlu0 %v1135_v17, %s3854_s10  ;;  %v6404_v17 = vld [vmem:[#allocation71_spill] sm:$0xff] }
 0x3a8   :  { %v1139_v5 = vmul.f32 %v6404_v17, %v4400_v22  ;;  %v1144_v17 = vmul.f32 %v4393_v11, %v4423_v6 }
 0x3a9   :  { %v4722_v52 = vpop.permute.xlu1 %1873  ;;  %v4726_v12 = vpop.permute.xlu0 %1871 }
 0x3aa   :  { %6400 = vst [vmem:[#allocation68_spill] sm:$0xff] %v4722_v52  ;;  %6402 = vst [vmem:[#allocation69_spill] sm:$0xff] %v4726_v12  ;;  %v1142_v12 = vmul.f32 %v6406_v1, %v4400_v22  ;;  %v6477_v52 = vld [vmem:[#allocation15_spill] sm:$0xff] }
 0x3ab   :  { %1205 = vrot.lane.b32.xlu1 %v1138_v42, %s3854_s10  ;;  %1203 = vrot.lane.b32.xlu0 %v1137_v57, %s3854_s10  ;;  %v1141_v57 = vmul.f32 %v4386_v4, %v4400_v22  ;;  %v6412_v4 = vld [vmem:[#allocation74_spill] sm:$0xff] }
 0x3ad   :  { %v4732_v40 = vpop.permute.xlu1 %1877  ;;  %v4736_v18 = vpop.permute.xlu0 %1875 }
 0x3ae   :  { %6403 = vst [vmem:[#allocation70_spill] sm:$0xff] %v4732_v40  ;;  %6405 = vst [vmem:[#allocation71_spill] sm:$0xff] %v4736_v18 }
 0x3af   :  { %1209 = vrot.lane.b32.xlu1 %v1140_v9, %s3854_s10  ;;  %1207 = vrot.lane.b32.xlu0 %v1139_v5, %s3854_s10  ;;  %v6410_v5 = vld [vmem:[#allocation73_spill] sm:$0xff] }
 0x3b0   :  { %v1143_v18 = vmul.f32 %v6410_v5, %v4423_v6  ;;  %v1148_v5 = vmul.f32 %v4416_v0, %v4447_v41 }
 0x3b1   :  { %v4742_v42 = vpop.permute.xlu1 %1881  ;;  %v4746_v54 = vpop.permute.xlu0 %1879 }
 0x3b2   :  { %6407 = vst [vmem:[#allocation72_spill] sm:$0xff] %v4742_v42  ;;  %6408 = vst [vmem:[#allocation79_spill] sm:$0xff] %v4746_v54  ;;  %v1146_v54 = vmul.f32 %v6412_v4, %v4423_v6 }
 0x3b3   :  { %1213 = vrot.lane.b32.xlu1 %v1142_v12, %s3854_s10  ;;  %1211 = vrot.lane.b32.xlu0 %v1141_v57, %s3854_s10  ;;  %v1145_v57 = vmul.f32 %v4410_v7, %v4423_v6  ;;  %v1150_v7 = vmul.f32 %v4429_v51, %v4447_v41 }
 0x3b5   :  { %v4752_v9 = vpop.permute.xlu1 %1885  ;;  %v4756_v1 = vpop.permute.xlu0 %1883 }
 0x3b6   :  { %6409 = vst [vmem:[#allocation80_spill] sm:$0xff] %v4752_v9  ;;  %6411 = vst [vmem:[#allocation73_spill] sm:$0xff] %v4756_v1 }
 0x3b7   :  { %1217 = vrot.lane.b32.xlu1 %v1144_v17, %s3854_s10  ;;  %1215 = vrot.lane.b32.xlu0 %v1143_v18, %s3854_s10  ;;  %v1147_v18 = vmul.f32 %v4420_v21, %v4447_v41  ;;  %v1152_v21 = vmul.f32 %v4439_v8, %v4471_v34 }
 0x3b9   :  { %v4762_v12 = vpop.permute.xlu1 %1889  ;;  %v4766_v11 = vpop.permute.xlu0 %1887 }
 0x3ba   :  { %6413 = vst [vmem:[#allocation74_spill] sm:$0xff] %v4762_v12  ;;  %6414 = vst [vmem:[#allocation81_spill] sm:$0xff] %v4766_v11 }
 0x3bb   :  { %1221 = vrot.lane.b32.xlu1 %v1146_v54, %s3854_s10  ;;  %1219 = vrot.lane.b32.xlu0 %v1145_v57, %s3854_s10  ;;  %v6418_v57 = vld [vmem:[#allocation75_spill] sm:$0xff] }
 0x3bc   :  { %v1149_v11 = vmul.f32 %v6418_v57, %v4447_v41  ;;  %v1154_v57 = vmul.f32 %v4453_v31, %v4471_v34 }
 0x3bd   :  { %v4772_v17 = vpop.permute.xlu1 %1893  ;;  %v4776_v4 = vpop.permute.xlu0 %1891 }
 0x3be   :  { %6415 = vst [vmem:[#allocation82_spill] sm:$0xff] %v4772_v17  ;;  %6416 = vst [vmem:[#allocation83_spill] sm:$0xff] %v4776_v4 }
 0x3bf   :  { %1225 = vrot.lane.b32.xlu1 %v1148_v5, %s3854_s10  ;;  %1223 = vrot.lane.b32.xlu0 %v1147_v18, %s3854_s10  ;;  %v1151_v18 = vmul.f32 %v4443_v25, %v4471_v34  ;;  %v1156_v25 = vmul.f32 %v4464_v28, %v4498_v38 }
 0x3c1   :  { %v4782_v54 = vpop.permute.xlu1 %1897  ;;  %v4786_v0 = vpop.permute.xlu0 %1895 }
 0x3c2   :  { %6417 = vst [vmem:[#allocation84_spill] sm:$0xff] %v4782_v54  ;;  %6419 = vst [vmem:[#allocation75_spill] sm:$0xff] %v4786_v0 }
 0x3c3   :  { %1229 = vrot.lane.b32.xlu1 %v1150_v7, %s3854_s10  ;;  %1227 = vrot.lane.b32.xlu0 %v1149_v11, %s3854_s10  ;;  %v1153_v11 = vmul.f32 %v4457_v32, %v4471_v34  ;;  %v1158_v32 = vmul.f32 %v4477_v20, %v4498_v38 }
 0x3c5   :  { %v4792_v5 = vpop.permute.xlu1 %1901  ;;  %v4796_v51 = vpop.permute.xlu0 %1899 }
 0x3c6   :  { %6420 = vst [vmem:[#allocation85_spill] sm:$0xff] %v4792_v5  ;;  %6421 = vst [vmem:[#allocation86_spill] sm:$0xff] %v4796_v51 }
 0x3c7   :  { %1233 = vrot.lane.b32.xlu1 %v1152_v21, %s3854_s10  ;;  %1231 = vrot.lane.b32.xlu0 %v1151_v18, %s3854_s10  ;;  %v1155_v18 = vmul.f32 %v4468_v23, %v4498_v38  ;;  %v1160_v23 = vmul.f32 %v4490_v27, %v4521_v24 }
 0x3c9   :  { %v4802_v7 = vpop.permute.xlu1 %1905  ;;  %v4806_v8 = vpop.permute.xlu0 %1903 }
 0x3ca   :  { %6422 = vst [vmem:[#allocation87_spill] sm:$0xff] %v4802_v7  ;;  %6423 = vst [vmem:[#allocation88_spill] sm:$0xff] %v4806_v8 }
 0x3cb   :  { %1237 = vrot.lane.b32.xlu1 %v1154_v57, %s3854_s10  ;;  %1235 = vrot.lane.b32.xlu0 %v1153_v11, %s3854_s10  ;;  %v1157_v11 = vmul.f32 %v4481_v19, %v4498_v38  ;;  %v6430_v19 = vld [vmem:[#allocation76_spill] sm:$0xff] }
 0x3cd   :  { %v4812_v21 = vpop.permute.xlu1 %1909  ;;  %v4816_v31 = vpop.permute.xlu0 %1907 }
 0x3ce   :  { %6424 = vst [vmem:[#allocation89_spill] sm:$0xff] %v4812_v21  ;;  %6425 = vst [vmem:[#allocation90_spill] sm:$0xff] %v4816_v31 }
 0x3cf   :  { %1241 = vrot.lane.b32.xlu1 %v1156_v25, %s3854_s10  ;;  %1239 = vrot.lane.b32.xlu0 %v1155_v18, %s3854_s10  ;;  %v1159_v18 = vmul.f32 %v4494_v33, %v4521_v24  ;;  %v1164_v33 = vmul.f32 %v4514_v30, %v4686_v13 }
 0x3d1   :  { %v4822_v57 = vpop.permute.xlu1 %1913  ;;  %v4826_v28 = vpop.permute.xlu0 %1911 }
 0x3d2   :  { %6426 = vst [vmem:[#allocation91_spill] sm:$0xff] %v4822_v57  ;;  %6427 = vst [vmem:[#allocation92_spill] sm:$0xff] %v4826_v28  ;;  %v1162_v28 = vmul.f32 %v6430_v19, %v4521_v24 }
 0x3d3   :  { %1245 = vrot.lane.b32.xlu1 %v1158_v32, %s3854_s10  ;;  %1243 = vrot.lane.b32.xlu0 %v1157_v11, %s3854_s10  ;;  %v1161_v11 = vmul.f32 %v4508_v29, %v4521_v24  ;;  %v1166_v29 = vmul.f32 %v4527_v26, %v4686_v13 }
 0x3d5   :  { %v4832_v25 = vpop.permute.xlu1 %1917  ;;  %v4836_v20 = vpop.permute.xlu0 %1915 }
 0x3d6   :  { %6428 = vst [vmem:[#allocation93_spill] sm:$0xff] %v4832_v25  ;;  %6429 = vst [vmem:[#allocation94_spill] sm:$0xff] %v4836_v20 }
 0x3d7   :  { %1249 = vrot.lane.b32.xlu1 %v1160_v23, %s3854_s10  ;;  %1247 = vrot.lane.b32.xlu0 %v1159_v18, %s3854_s10  ;;  %v1163_v18 = vmul.f32 %v4518_v37, %v4686_v13  ;;  %v1456_v37 = vmul.f32 %v4537_v39, %v4376_v53  ;;  %v1457_v39 = vmul.f32 %v4551_v49, %v4376_v53 }
 0x3d8   :  { %v1462_v49 = vmul.f32 %v4567_v46, %v4400_v22 }
 0x3d9   :  { %v4842_v32 = vpop.permute.xlu1 %881  ;;  %v4846_v27 = vpop.permute.xlu0 %879 }
 0x3db   :  { %1253 = vrot.lane.b32.xlu1 %v1162_v28, %s3854_s10  ;;  %1251 = vrot.lane.b32.xlu0 %v1161_v11, %s3854_s10  ;;  %v1165_v11 = vmul.f32 %v4531_v55, %v4686_v13  ;;  %v1458_v55 = vmul.f32 %v4547_v35, %v4376_v53 }
 0x3dd   :  { %v4852_v23 = vpop.permute.xlu1 %885  ;;  %v4856_v19 = vpop.permute.xlu0 %883 }
 0x3df   :  { %1257 = vrot.lane.b32.xlu1 %v1164_v33, %s3854_s10  ;;  %1255 = vrot.lane.b32.xlu0 %v1163_v18, %s3854_s10  ;;  %v1455_v18 = vmul.f32 %v4541_v47, %v4376_v53  ;;  %v1460_v47 = vmul.f32 %v4557_v44, %v4400_v22 }
 0x3e1   :  { %v4862_v28 = vpop.permute.xlu1 %889  ;;  %v4866_v30 = vpop.permute.xlu0 %887 }
 0x3e3   :  { %1261 = vrot.lane.b32.xlu1 %v1166_v29, %s3854_s10  ;;  %1259 = vrot.lane.b32.xlu0 %v1165_v11, %s3854_s10 }
 0x3e5   :  { %v4872_v33 = vpop.permute.xlu1 %893  ;;  %v4876_v26 = vpop.permute.xlu0 %891 }
 0x3e7   :  { %1521 = vrot.lane.b32.xlu1 %v1456_v37, %s3855_s11  ;;  %1519 = vrot.lane.b32.xlu0 %v1455_v18, %s3855_s11  ;;  %v1459_v18 = vmul.f32 %v4561_v45, %v4400_v22  ;;  %v1464_v45 = vmul.f32 %v4577_v48, %v4423_v6 }
 0x3e9   :  { %v4882_v29 = vpop.permute.xlu1 %897  ;;  %v4886_v11 = vpop.permute.xlu0 %895 }
 0x3eb   :  { %1525 = vrot.lane.b32.xlu1 %v1458_v55, %s3855_s11  ;;  %1523 = vrot.lane.b32.xlu0 %v1457_v39, %s3855_s11  ;;  %v1461_v39 = vmul.f32 %v4571_v3, %v4400_v22  ;;  %v1466_v3 = vmul.f32 %v4587_v50, %v4423_v6 }
 0x3ed   :  { %v4892_v37 = vpop.permute.xlu1 %901  ;;  %v4896_v35 = vpop.permute.xlu0 %899 }
 0x3ef   :  { %1529 = vrot.lane.b32.xlu1 %v1460_v47, %s3855_s11  ;;  %1527 = vrot.lane.b32.xlu0 %v1459_v18, %s3855_s11  ;;  %v1463_v18 = vmul.f32 %v4581_v63, %v4423_v6  ;;  %v1468_v63 = vmul.f32 %v4597_v2, %v4447_v41 }
 0x3f1   :  { %v4902_v55 = vpop.permute.xlu1 %905  ;;  %v4906_v44 = vpop.permute.xlu0 %903 }
 0x3f3   :  { %1533 = vrot.lane.b32.xlu1 %v1462_v49, %s3855_s11  ;;  %1531 = vrot.lane.b32.xlu0 %v1461_v39, %s3855_s11  ;;  %v1465_v39 = vmul.f32 %v4591_v60, %v4423_v6  ;;  %v1470_v60 = vmul.f32 %v4607_v61, %v4447_v41 }
 0x3f5   :  { %v4912_v47 = vpop.permute.xlu1 %909  ;;  %v4916_v46 = vpop.permute.xlu0 %907 }
 0x3f7   :  { %1537 = vrot.lane.b32.xlu1 %v1464_v45, %s3855_s11  ;;  %1535 = vrot.lane.b32.xlu0 %v1463_v18, %s3855_s11  ;;  %v1467_v18 = vmul.f32 %v4601_v58, %v4447_v41  ;;  %v1472_v58 = vmul.f32 %v4617_v62, %v4471_v34 }
 0x3f9   :  { %v4922_v49 = vpop.permute.xlu1 %913  ;;  %v4926_v48 = vpop.permute.xlu0 %911 }
 0x3fb   :  { %1541 = vrot.lane.b32.xlu1 %v1466_v3, %s3855_s11  ;;  %1539 = vrot.lane.b32.xlu0 %v1465_v39, %s3855_s11  ;;  %v1469_v39 = vmul.f32 %v4611_v56, %v4447_v41  ;;  %v1474_v56 = vmul.f32 %v4627_v59, %v4471_v34 }
 0x3fd   :  { %v4932_v45 = vpop.permute.xlu1 %917  ;;  %v4936_v50 = vpop.permute.xlu0 %915 }
 0x3ff   :  { %1545 = vrot.lane.b32.xlu1 %v1468_v63, %s3855_s11  ;;  %1543 = vrot.lane.b32.xlu0 %v1467_v18, %s3855_s11  ;;  %v1471_v18 = vmul.f32 %v4621_v15, %v4471_v34  ;;  %v6437_v15 = vld [vmem:[#allocation78_spill] sm:$0xff] }
 0x400   :  { %v1476_v25 = vmul.f32 %v6437_v15, %v4498_v38 }
 0x401   :  { %v4942_v3 = vpop.permute.xlu1 %921  ;;  %v4946_v2 = vpop.permute.xlu0 %919 }
 0x402   :  { %6431 = vst [vmem:[#allocation76_spill] sm:$0xff] %v4946_v2 }
 0x403   :  { %1549 = vrot.lane.b32.xlu1 %v1470_v60, %s3855_s11  ;;  %1547 = vrot.lane.b32.xlu0 %v1469_v39, %s3855_s11  ;;  %v6435_v39 = vld [vmem:[#allocation77_spill] sm:$0xff] }
 0x404   :  { %v1473_v20 = vmul.f32 %v6435_v39, %v4471_v34  ;;  %v6441_v39 = vld [vmem:[#allocation58_spill] sm:$0xff] }
 0x405   :  { %v4952_v63 = vpop.permute.xlu1 %925  ;;  %v4956_v61 = vpop.permute.xlu0 %923  ;;  %v1478_v31 = vmul.f32 %v6441_v39, %v4498_v38 }
 0x406   :  { %6432 = vst [vmem:[#allocation95_spill] sm:$0xff] %v4952_v63  ;;  %6433 = vst [vmem:[#allocation96_spill] sm:$0xff] %v4956_v61 }
 0x407   :  { %1553 = vrot.lane.b32.xlu1 %v1472_v58, %s3855_s11  ;;  %1551 = vrot.lane.b32.xlu0 %v1471_v18, %s3855_s11  ;;  %v6439_v18 = vld [vmem:[#allocation57_spill] sm:$0xff] }
 0x408   :  { %v1475_v57 = vmul.f32 %v6439_v18, %v4498_v38  ;;  %v6445_v18 = vld [vmem:[#allocation60_spill] sm:$0xff] }
 0x409   :  { %v4962_v60 = vpop.permute.xlu1 %929  ;;  %v4966_v62 = vpop.permute.xlu0 %927  ;;  %v1480_v8 = vmul.f32 %v6445_v18, %v4521_v24 }
 0x40a   :  { %6434 = vst [vmem:[#allocation97_spill] sm:$0xff] %v4962_v60  ;;  %6436 = vst [vmem:[#allocation77_spill] sm:$0xff] %v4966_v62  ;;  %v6627_v62 = vld [vmem:[#allocation53_spill] sm:$0xff]  ;;  %v6628_v60 = vld [vmem:[#allocation54_spill] sm:$0xff] }
 0x40b   :  { %1557 = vrot.lane.b32.xlu1 %v1474_v56, %s3855_s11  ;;  %1555 = vrot.lane.b32.xlu0 %v1473_v20, %s3855_s11  ;;  %v6443_v20 = vld [vmem:[#allocation59_spill] sm:$0xff] }
 0x40c   :  { %v1477_v21 = vmul.f32 %v6443_v20, %v4498_v38  ;;  %v6449_v20 = vld [vmem:[#allocation62_spill] sm:$0xff] }
 0x40d   :  { %v4972_v58 = vpop.permute.xlu1 %933  ;;  %v4976_v59 = vpop.permute.xlu0 %931  ;;  %v1482_v51 = vmul.f32 %v6449_v20, %v4521_v24 }
 0x40e   :  { %6438 = vst [vmem:[#allocation78_spill] sm:$0xff] %v4972_v58  ;;  %6440 = vst [vmem:[#allocation57_spill] sm:$0xff] %v4976_v59  ;;  %v6623_v59 = vld [vmem:[#allocation50_spill] sm:$0xff] }
 0x40f   :  { %1561 = vrot.lane.b32.xlu1 %v1476_v25, %s3855_s11  ;;  %1559 = vrot.lane.b32.xlu0 %v1475_v57, %s3855_s11  ;;  %v6447_v57 = vld [vmem:[#allocation61_spill] sm:$0xff] }
 0x410   :  { %v1479_v7 = vmul.f32 %v6447_v57, %v4521_v24  ;;  %v6452_v57 = vld [vmem:[#allocation63_spill] sm:$0xff] }
 0x411   :  { %v4982_v56 = vpop.permute.xlu1 %937  ;;  %v4986_v15 = vpop.permute.xlu0 %935  ;;  %v1484_v5 = vmul.f32 %v6452_v57, %v4686_v13 }
 0x412   :  { %6442 = vst [vmem:[#allocation58_spill] sm:$0xff] %v4982_v56  ;;  %6444 = vst [vmem:[#allocation59_spill] sm:$0xff] %v4986_v15  ;;  %v6620_v15 = vld [vmem:[#allocation47_spill] sm:$0xff]  ;;  %v6622_v56 = vld [vmem:[#allocation49_spill] sm:$0xff] }
 0x413   :  { %1565 = vrot.lane.b32.xlu1 %v1478_v31, %s3855_s11  ;;  %1563 = vrot.lane.b32.xlu0 %v1477_v21, %s3855_s11  ;;  %v1481_v21 = vmul.f32 %v4671_v43, %v4521_v24  ;;  %v1486_v43 = vmul.f32 %v4692_v14, %v4686_v13 }
 0x415   :  { %v4992_v25 = vpop.permute.xlu1 %941  ;;  %v4996_v39 = vpop.permute.xlu0 %939 }
 0x416   :  { %6446 = vst [vmem:[#allocation60_spill] sm:$0xff] %v4992_v25  ;;  %6448 = vst [vmem:[#allocation61_spill] sm:$0xff] %v4996_v39  ;;  %v6618_v39 = vld [vmem:[#allocation45_spill] sm:$0xff]  ;;  %v6619_v25 = vld [vmem:[#allocation46_spill] sm:$0xff] }
 0x417   :  { %1569 = vrot.lane.b32.xlu1 %v1480_v8, %s3855_s11  ;;  %1567 = vrot.lane.b32.xlu0 %v1479_v7, %s3855_s11  ;;  %v1483_v7 = vmul.f32 %v4683_v10, %v4686_v13  ;;  %v6457_v10 = vld [vmem:[#allocation21_spill] sm:$0xff] }
 0x418   :  { %v1828_v0 = vmul.f32 %v6457_v10, %v4686_v13 }
 0x419   :  { %v5002_v31 = vpop.permute.xlu1 %1201  ;;  %v5006_v18 = vpop.permute.xlu0 %1199 }
 0x41a   :  { %6450 = vst [vmem:[#allocation62_spill] sm:$0xff] %v5002_v31  ;;  %6451 = vst [vmem:[#allocation98_spill] sm:$0xff] %v5006_v18  ;;  %v6615_v18 = vld [vmem:[#allocation42_spill] sm:$0xff]  ;;  %v6617_v31 = vld [vmem:[#allocation44_spill] sm:$0xff] }
 0x41b   :  { %1573 = vrot.lane.b32.xlu1 %v1482_v51, %s3855_s11  ;;  %1571 = vrot.lane.b32.xlu0 %v1481_v21, %s3855_s11  ;;  %v1485_v21 = vmul.f32 %v4696_v16, %v4686_v13  ;;  %v6461_v16 = vld [vmem:[#allocation23_spill] sm:$0xff] }
 0x41c   :  { %v1830_v4 = vmul.f32 %v6461_v16, %v4686_v13 }
 0x41d   :  { %v5012_v8 = vpop.permute.xlu1 %1205  ;;  %v5016_v20 = vpop.permute.xlu0 %1203 }
 0x41e   :  { %6453 = vst [vmem:[#allocation63_spill] sm:$0xff] %v5012_v8  ;;  %6454 = vst [vmem:[#allocation99_spill] sm:$0xff] %v5016_v20  ;;  %v6614_v8 = vld [vmem:[#allocation41_spill] sm:$0xff] }
 0x41f   :  { %1577 = vrot.lane.b32.xlu1 %v1484_v5, %s3855_s11  ;;  %1575 = vrot.lane.b32.xlu0 %v1483_v7, %s3855_s11  ;;  %v6459_v7 = vld [vmem:[#allocation22_spill] sm:$0xff] }
 0x420   :  { %v1827_v54 = vmul.f32 %v6459_v7, %v4686_v13 }
 0x421   :  { %v5022_v51 = vpop.permute.xlu1 %1209  ;;  %v5026_v57 = vpop.permute.xlu0 %1207 }
 0x422   :  { %6455 = vst [vmem:[#allocation100_spill] sm:$0xff] %v5022_v51  ;;  %6456 = vst [vmem:[#allocation101_spill] sm:$0xff] %v5026_v57  ;;  %v6610_v51 = vld [vmem:[#allocation38_spill] sm:$0xff] }
 0x423   :  { %1581 = vrot.lane.b32.xlu1 %v1486_v43, %s3855_s11  ;;  %1579 = vrot.lane.b32.xlu0 %v1485_v21, %s3855_s11  ;;  %v6463_v21 = vld [vmem:[#allocation24_spill] sm:$0xff] }
 0x424   :  { %v1829_v17 = vmul.f32 %v6463_v21, %v4686_v13 }
 0x425   :  { %v5032_v5 = vpop.permute.xlu1 %1213  ;;  %v5036_v14 = vpop.permute.xlu0 %1211 }
 0x426   :  { %6458 = vst [vmem:[#allocation21_spill] sm:$0xff] %v5032_v5  ;;  %6460 = vst [vmem:[#allocation22_spill] sm:$0xff] %v5036_v14 }
 0x427   :  { %1921 = vrot.lane.b32.xlu1 %v1828_v0, %s3852_s4  ;;  %1919 = vrot.lane.b32.xlu0 %v1827_v54, %s3852_s4  ;;  %v6467_v0 = vld [vmem:[#allocation13_spill] sm:$0xff] }
 0x429   :  { %v5042_v43 = vpop.permute.xlu1 %1217  ;;  %v5046_v10 = vpop.permute.xlu0 %1215 }
 0x42a   :  { %6462 = vst [vmem:[#allocation23_spill] sm:$0xff] %v5042_v43  ;;  %6464 = vst [vmem:[#allocation24_spill] sm:$0xff] %v5046_v10 }
 0x42b   :  { %1925 = vrot.lane.b32.xlu1 %v1830_v4, %s3852_s4  ;;  %1923 = vrot.lane.b32.xlu0 %v1829_v17, %s3852_s4  ;;  %v6472_v17 = vld [vmem:[#allocation14_spill] sm:$0xff] }
 0x42d   :  { %v5050_v7 = vpop.permute.xlu1 %1221  ;;  %v5052_v12 = vpop.permute.xlu0 %1219 }
 0x42e   :  { %6465 = vst [vmem:[#allocation102_spill] sm:$0xff] %v5050_v7  ;;  %6466 = vst [vmem:[#allocation103_spill] sm:$0xff] %v5052_v12  ;;  %v6497_v12 = vld [vmem:[#allocation19_spill] sm:$0xff]  ;;  %v6502_v7 = vld [vmem:[#allocation20_spill] sm:$0xff] }
 0x42f   :  { %1997 = vbcast.lane.b32.xlu1 %v6467_v0, 296  ;;  %1993 = vbcast.lane.b32.xlu0 %v6467_v0, 288 }
 0x431   :  { %v5056_v54 = vpop.permute.xlu1 %1225  ;;  %v5058_v16 = vpop.permute.xlu0 %1223 }
 0x432   :  { %6468 = vst [vmem:[#allocation13_spill] sm:$0xff] %v5056_v54  ;;  %6469 = vst [vmem:[#allocation104_spill] sm:$0xff] %v5058_v16  ;;  %v6487_v16 = vld [vmem:[#allocation17_spill] sm:$0xff]  ;;  %v6492_v54 = vld [vmem:[#allocation18_spill] sm:$0xff] }
 0x433   :  { %2005 = vbcast.lane.b32.xlu1 %v6467_v0, 312  ;;  %2001 = vbcast.lane.b32.xlu0 %v6467_v0, 304 }
 0x435   :  { %v5062_v21 = vpop.permute.xlu1 %1229  ;;  %v5064_v4 = vpop.permute.xlu0 %1227 }
 0x436   :  { %6470 = vst [vmem:[#allocation105_spill] sm:$0xff] %v5062_v21  ;;  %6471 = vst [vmem:[#allocation106_spill] sm:$0xff] %v5064_v4  ;;  %v6482_v21 = vld [vmem:[#allocation16_spill] sm:$0xff] }
 0x437   :  { %2013 = vbcast.lane.b32.xlu1 %v6472_v17, 296  ;;  %2009 = vbcast.lane.b32.xlu0 %v6472_v17, 288 }
 0x439   :  { %v5068_v1 = vpop.permute.xlu1 %1233  ;;  %v5070_v9 = vpop.permute.xlu0 %1231 }
 0x43a   :  { %6473 = vst [vmem:[#allocation14_spill] sm:$0xff] %v5068_v1  ;;  %6474 = vst [vmem:[#allocation107_spill] sm:$0xff] %v5070_v9 }
 0x43b   :  { %2021 = vbcast.lane.b32.xlu1 %v6472_v17, 312  ;;  %2017 = vbcast.lane.b32.xlu0 %v6472_v17, 304 }
 0x43d   :  { %v5074_v42 = vpop.permute.xlu1 %1237  ;;  %v5076_v40 = vpop.permute.xlu0 %1235 }
 0x43e   :  { %6475 = vst [vmem:[#allocation108_spill] sm:$0xff] %v5074_v42  ;;  %6476 = vst [vmem:[#allocation109_spill] sm:$0xff] %v5076_v40 }
 0x43f   :  { %2029 = vbcast.lane.b32.xlu1 %v6477_v52, 296  ;;  %2025 = vbcast.lane.b32.xlu0 %v6477_v52, 288 }
 0x441   :  { %v5080_v36 = vpop.permute.xlu1 %1241  ;;  %v5082_v4 = vpop.permute.xlu0 %1239 }
 0x442   :  { %6478 = vst [vmem:[#allocation15_spill] sm:$0xff] %v5080_v36  ;;  %6479 = vst [vmem:[#allocation110_spill] sm:$0xff] %v5082_v4 }
 0x443   :  { %2037 = vbcast.lane.b32.xlu1 %v6477_v52, 312  ;;  %2033 = vbcast.lane.b32.xlu0 %v6477_v52, 304 }
 0x445   :  { %v5086_v9 = vpop.permute.xlu1 %1245  ;;  %v5088_v1 = vpop.permute.xlu0 %1243 }
 0x446   :  { %6480 = vst [vmem:[#allocation111_spill] sm:$0xff] %v5086_v9  ;;  %6481 = vst [vmem:[#allocation112_spill] sm:$0xff] %v5088_v1 }
 0x447   :  { %2045 = vbcast.lane.b32.xlu1 %v6482_v21, 296  ;;  %2041 = vbcast.lane.b32.xlu0 %v6482_v21, 288 }
 0x449   :  { %v5092_v40 = vpop.permute.xlu1 %1249  ;;  %v5094_v42 = vpop.permute.xlu0 %1247 }
 0x44a   :  { %6483 = vst [vmem:[#allocation16_spill] sm:$0xff] %v5092_v40  ;;  %6484 = vst [vmem:[#allocation113_spill] sm:$0xff] %v5094_v42 }
 0x44b   :  { %2053 = vbcast.lane.b32.xlu1 %v6482_v21, 312  ;;  %2049 = vbcast.lane.b32.xlu0 %v6482_v21, 304 }
 0x44d   :  { %v5098_v4 = vpop.permute.xlu1 %1253  ;;  %v5100_v36 = vpop.permute.xlu0 %1251 }
 0x44e   :  { %6485 = vst [vmem:[#allocation114_spill] sm:$0xff] %v5098_v4  ;;  %6486 = vst [vmem:[#allocation115_spill] sm:$0xff] %v5100_v36 }
 0x44f   :  { %2061 = vbcast.lane.b32.xlu1 %v6487_v16, 296  ;;  %2057 = vbcast.lane.b32.xlu0 %v6487_v16, 288 }
 0x451   :  { %v5104_v1 = vpop.permute.xlu1 %1257  ;;  %v5106_v9 = vpop.permute.xlu0 %1255 }
 0x452   :  { %6488 = vst [vmem:[#allocation17_spill] sm:$0xff] %v5104_v1  ;;  %6489 = vst [vmem:[#allocation116_spill] sm:$0xff] %v5106_v9 }
 0x453   :  { %2069 = vbcast.lane.b32.xlu1 %v6487_v16, 312  ;;  %2065 = vbcast.lane.b32.xlu0 %v6487_v16, 304 }
 0x455   :  { %v5110_v42 = vpop.permute.xlu1 %1261  ;;  %v5112_v40 = vpop.permute.xlu0 %1259 }
 0x456   :  { %6490 = vst [vmem:[#allocation117_spill] sm:$0xff] %v5110_v42  ;;  %6491 = vst [vmem:[#allocation118_spill] sm:$0xff] %v5112_v40 }
 0x457   :  { %2077 = vbcast.lane.b32.xlu1 %v6492_v54, 296  ;;  %2073 = vbcast.lane.b32.xlu0 %v6492_v54, 288 }
 0x459   :  { %v5116_v36 = vpop.permute.xlu1 %1521  ;;  %v5118_v4 = vpop.permute.xlu0 %1519 }
 0x45a   :  { %6493 = vst [vmem:[#allocation18_spill] sm:$0xff] %v5116_v36  ;;  %6494 = vst [vmem:[#allocation119_spill] sm:$0xff] %v5118_v4 }
 0x45b   :  { %2085 = vbcast.lane.b32.xlu1 %v6492_v54, 312  ;;  %2081 = vbcast.lane.b32.xlu0 %v6492_v54, 304 }
 0x45d   :  { %v5122_v9 = vpop.permute.xlu1 %1525  ;;  %v5124_v1 = vpop.permute.xlu0 %1523 }
 0x45e   :  { %6495 = vst [vmem:[#allocation120_spill] sm:$0xff] %v5122_v9  ;;  %6496 = vst [vmem:[#allocation121_spill] sm:$0xff] %v5124_v1 }
 0x45f   :  { %2093 = vbcast.lane.b32.xlu1 %v6497_v12, 296  ;;  %2089 = vbcast.lane.b32.xlu0 %v6497_v12, 288 }
 0x461   :  { %v5128_v40 = vpop.permute.xlu1 %1529  ;;  %v5130_v42 = vpop.permute.xlu0 %1527 }
 0x462   :  { %6498 = vst [vmem:[#allocation19_spill] sm:$0xff] %v5128_v40  ;;  %6499 = vst [vmem:[#allocation122_spill] sm:$0xff] %v5130_v42 }
 0x463   :  { %2101 = vbcast.lane.b32.xlu1 %v6497_v12, 312  ;;  %2097 = vbcast.lane.b32.xlu0 %v6497_v12, 304 }
 0x465   :  { %v5134_v4 = vpop.permute.xlu1 %1533  ;;  %v5136_v36 = vpop.permute.xlu0 %1531 }
 0x466   :  { %6500 = vst [vmem:[#allocation123_spill] sm:$0xff] %v5134_v4  ;;  %6501 = vst [vmem:[#allocation124_spill] sm:$0xff] %v5136_v36 }
 0x467   :  { %2109 = vbcast.lane.b32.xlu1 %v6502_v7, 296  ;;  %2105 = vbcast.lane.b32.xlu0 %v6502_v7, 288 }
 0x469   :  { %v5140_v1 = vpop.permute.xlu1 %1537  ;;  %v5142_v9 = vpop.permute.xlu0 %1535 }
 0x46a   :  { %6503 = vst [vmem:[#allocation20_spill] sm:$0xff] %v5140_v1  ;;  %6504 = vst [vmem:[#allocation125_spill] sm:$0xff] %v5142_v9 }
 0x46b   :  { %2117 = vbcast.lane.b32.xlu1 %v6502_v7, 312  ;;  %2113 = vbcast.lane.b32.xlu0 %v6502_v7, 304 }
 0x46d   :  { %v5146_v42 = vpop.permute.xlu1 %1541  ;;  %v5148_v40 = vpop.permute.xlu0 %1539 }
 0x46e   :  { %6505 = vst [vmem:[#allocation126_spill] sm:$0xff] %v5146_v42  ;;  %6506 = vst [vmem:[#allocation127_spill] sm:$0xff] %v5148_v40 }
 0x471   :  { %v5150_v10 = vpop.permute.xlu1 %1545  ;;  %v5152_v4 = vpop.permute.xlu0 %1543 }
 0x472   :  { %6507 = vst [vmem:[#allocation128_spill] sm:$0xff] %v5150_v10  ;;  %6508 = vst [vmem:[#allocation129_spill] sm:$0xff] %v5152_v4 }
 0x475   :  { %v5154_v36 = vpop.permute.xlu1 %1549  ;;  %v5156_v43 = vpop.permute.xlu0 %1547 }
 0x476   :  { %6509 = vst [vmem:[#allocation130_spill] sm:$0xff] %v5154_v36  ;;  %6510 = vst [vmem:[#allocation131_spill] sm:$0xff] %v5156_v43 }
 0x479   :  { %v5158_v14 = vpop.permute.xlu1 %1553  ;;  %v5160_v1 = vpop.permute.xlu0 %1551 }
 0x47a   :  { %6511 = vst [vmem:[#allocation132_spill] sm:$0xff] %v5158_v14  ;;  %6512 = vst [vmem:[#allocation133_spill] sm:$0xff] %v5160_v1 }
 0x47d   :  { %v5162_v9 = vpop.permute.xlu1 %1557  ;;  %v5164_v5 = vpop.permute.xlu0 %1555 }
 0x47e   :  { %6513 = vst [vmem:[#allocation134_spill] sm:$0xff] %v5162_v9  ;;  %6514 = vst [vmem:[#allocation135_spill] sm:$0xff] %v5164_v5 }
 0x481   :  { %v5166_v57 = vpop.permute.xlu1 %1561  ;;  %v5168_v42 = vpop.permute.xlu0 %1559 }
 0x482   :  { %6515 = vst [vmem:[#allocation136_spill] sm:$0xff] %v5166_v57  ;;  %6516 = vst [vmem:[#allocation137_spill] sm:$0xff] %v5168_v42 }
 0x485   :  { %v5170_v40 = vpop.permute.xlu1 %1565  ;;  %v5172_v10 = vpop.permute.xlu0 %1563 }
 0x486   :  { %6517 = vst [vmem:[#allocation138_spill] sm:$0xff] %v5170_v40  ;;  %6518 = vst [vmem:[#allocation139_spill] sm:$0xff] %v5172_v10 }
 0x489   :  { %v5174_v4 = vpop.permute.xlu1 %1569  ;;  %v5176_v36 = vpop.permute.xlu0 %1567 }
 0x48a   :  { %6519 = vst [vmem:[#allocation140_spill] sm:$0xff] %v5174_v4  ;;  %6520 = vst [vmem:[#allocation141_spill] sm:$0xff] %v5176_v36 }
 0x48d   :  { %v5178_v43 = vpop.permute.xlu1 %1573  ;;  %v5180_v14 = vpop.permute.xlu0 %1571 }
 0x48e   :  { %6521 = vst [vmem:[#allocation142_spill] sm:$0xff] %v5178_v43  ;;  %6522 = vst [vmem:[#allocation143_spill] sm:$0xff] %v5180_v14 }
 0x491   :  { %v5182_v1 = vpop.permute.xlu1 %1577  ;;  %v5184_v9 = vpop.permute.xlu0 %1575 }
 0x492   :  { %6523 = vst [vmem:[#allocation144_spill] sm:$0xff] %v5182_v1  ;;  %6524 = vst [vmem:[#allocation145_spill] sm:$0xff] %v5184_v9 }
 0x495   :  { %v5186_v5 = vpop.permute.xlu1 %1581  ;;  %v5188_v57 = vpop.permute.xlu0 %1579 }
 0x496   :  { %6525 = vst [vmem:[#allocation146_spill] sm:$0xff] %v5186_v5  ;;  %6526 = vst [vmem:[#allocation147_spill] sm:$0xff] %v5188_v57 }
 0x499   :  { %v5190_v42 = vpop.permute.xlu1 %1921  ;;  %v5192_v40 = vpop.permute.xlu0 %1919 }
 0x49a   :  { %6527 = vst [vmem:[#allocation148_spill] sm:$0xff] %v5190_v42  ;;  %6528 = vst [vmem:[#allocation149_spill] sm:$0xff] %v5192_v40 }
 0x49d   :  { %v5194_v10 = vpop.permute.xlu1 %1925  ;;  %v5196_v4 = vpop.permute.xlu0 %1923 }
 0x49e   :  { %6529 = vst [vmem:[#allocation150_spill] sm:$0xff] %v5194_v10  ;;  %6530 = vst [vmem:[#allocation151_spill] sm:$0xff] %v5196_v4 }
 0x4a1   :  { %v1998_v36 = vpop.permute.xlu1 %1997  ;;  %v1994_v14 = vpop.permute.xlu0 %1993 }
 0x4a2   :  { %v2120_v43 = vmul.f32 %v1998_v36, %v4376_v53  ;;  %v2119_v1 = vmul.f32 %v1994_v14, %v4376_v53 }
 0x4a4   :  { %2185 = vrot.lane.b32.xlu1 %v2120_v43, %s3856_s12  ;;  %2183 = vrot.lane.b32.xlu0 %v2119_v1, %s3856_s12 }
 0x4a5   :  { %v2006_v57 = vpop.permute.xlu1 %2005  ;;  %v2002_v5 = vpop.permute.xlu0 %2001 }
 0x4a6   :  { %v2122_v42 = vmul.f32 %v2006_v57, %v4376_v53  ;;  %v2121_v40 = vmul.f32 %v2002_v5, %v4376_v53 }
 0x4a8   :  { %2189 = vrot.lane.b32.xlu1 %v2122_v42, %s3856_s12  ;;  %2187 = vrot.lane.b32.xlu0 %v2121_v40, %s3856_s12 }
 0x4a9   :  { %v2014_v4 = vpop.permute.xlu1 %2013  ;;  %v2010_v10 = vpop.permute.xlu0 %2009 }
 0x4aa   :  { %v2124_v36 = vmul.f32 %v2014_v4, %v4400_v22  ;;  %v2123_v14 = vmul.f32 %v2010_v10, %v4400_v22 }
 0x4ac   :  { %2193 = vrot.lane.b32.xlu1 %v2124_v36, %s3856_s12  ;;  %2191 = vrot.lane.b32.xlu0 %v2123_v14, %s3856_s12 }
 0x4ad   :  { %v2022_v1 = vpop.permute.xlu1 %2021  ;;  %v2018_v43 = vpop.permute.xlu0 %2017 }
 0x4ae   :  { %v2126_v57 = vmul.f32 %v2022_v1, %v4400_v22  ;;  %v2125_v5 = vmul.f32 %v2018_v43, %v4400_v22 }
 0x4b0   :  { %2197 = vrot.lane.b32.xlu1 %v2126_v57, %s3856_s12  ;;  %2195 = vrot.lane.b32.xlu0 %v2125_v5, %s3856_s12 }
 0x4b1   :  { %v2030_v40 = vpop.permute.xlu1 %2029  ;;  %v2026_v4 = vpop.permute.xlu0 %2025 }
 0x4b2   :  { %v2128_v42 = vmul.f32 %v2030_v40, %v4423_v6  ;;  %v2127_v10 = vmul.f32 %v2026_v4, %v4423_v6 }
 0x4b4   :  { %2201 = vrot.lane.b32.xlu1 %v2128_v42, %s3856_s12  ;;  %2199 = vrot.lane.b32.xlu0 %v2127_v10, %s3856_s12 }
 0x4b5   :  { %v2038_v36 = vpop.permute.xlu1 %2037  ;;  %v2034_v1 = vpop.permute.xlu0 %2033 }
 0x4b6   :  { %v2130_v14 = vmul.f32 %v2038_v36, %v4423_v6  ;;  %v2129_v43 = vmul.f32 %v2034_v1, %v4423_v6 }
 0x4b8   :  { %2205 = vrot.lane.b32.xlu1 %v2130_v14, %s3856_s12  ;;  %2203 = vrot.lane.b32.xlu0 %v2129_v43, %s3856_s12 }
 0x4b9   :  { %v2046_v57 = vpop.permute.xlu1 %2045  ;;  %v2042_v40 = vpop.permute.xlu0 %2041 }
 0x4ba   :  { %v2132_v5 = vmul.f32 %v2046_v57, %v4447_v41  ;;  %v2131_v4 = vmul.f32 %v2042_v40, %v4447_v41 }
 0x4bc   :  { %2209 = vrot.lane.b32.xlu1 %v2132_v5, %s3856_s12  ;;  %2207 = vrot.lane.b32.xlu0 %v2131_v4, %s3856_s12 }
 0x4bd   :  { %v2054_v42 = vpop.permute.xlu1 %2053  ;;  %v2050_v36 = vpop.permute.xlu0 %2049 }
 0x4be   :  { %v2134_v10 = vmul.f32 %v2054_v42, %v4447_v41  ;;  %v2133_v1 = vmul.f32 %v2050_v36, %v4447_v41 }
 0x4c0   :  { %2213 = vrot.lane.b32.xlu1 %v2134_v10, %s3856_s12  ;;  %2211 = vrot.lane.b32.xlu0 %v2133_v1, %s3856_s12 }
 0x4c1   :  { %v2062_v14 = vpop.permute.xlu1 %2061  ;;  %v2058_v57 = vpop.permute.xlu0 %2057 }
 0x4c2   :  { %v2136_v43 = vmul.f32 %v2062_v14, %v4471_v34  ;;  %v2135_v40 = vmul.f32 %v2058_v57, %v4471_v34 }
 0x4c4   :  { %2217 = vrot.lane.b32.xlu1 %v2136_v43, %s3856_s12  ;;  %2215 = vrot.lane.b32.xlu0 %v2135_v40, %s3856_s12 }
 0x4c5   :  { %v2070_v5 = vpop.permute.xlu1 %2069  ;;  %v2066_v42 = vpop.permute.xlu0 %2065 }
 0x4c6   :  { %v2138_v4 = vmul.f32 %v2070_v5, %v4471_v34  ;;  %v2137_v36 = vmul.f32 %v2066_v42, %v4471_v34 }
 0x4c8   :  { %2221 = vrot.lane.b32.xlu1 %v2138_v4, %s3856_s12  ;;  %2219 = vrot.lane.b32.xlu0 %v2137_v36, %s3856_s12 }
 0x4c9   :  { %v2078_v10 = vpop.permute.xlu1 %2077  ;;  %v2074_v14 = vpop.permute.xlu0 %2073 }
 0x4ca   :  { %v2140_v1 = vmul.f32 %v2078_v10, %v4498_v38  ;;  %v2139_v57 = vmul.f32 %v2074_v14, %v4498_v38 }
 0x4cc   :  { %2225 = vrot.lane.b32.xlu1 %v2140_v1, %s3856_s12  ;;  %2223 = vrot.lane.b32.xlu0 %v2139_v57, %s3856_s12 }
 0x4cd   :  { %v2086_v43 = vpop.permute.xlu1 %2085  ;;  %v2082_v5 = vpop.permute.xlu0 %2081 }
 0x4ce   :  { %v2142_v40 = vmul.f32 %v2086_v43, %v4498_v38  ;;  %v2141_v42 = vmul.f32 %v2082_v5, %v4498_v38 }
 0x4d0   :  { %2229 = vrot.lane.b32.xlu1 %v2142_v40, %s3856_s12  ;;  %2227 = vrot.lane.b32.xlu0 %v2141_v42, %s3856_s12 }
 0x4d1   :  { %v2094_v4 = vpop.permute.xlu1 %2093  ;;  %v2090_v10 = vpop.permute.xlu0 %2089 }
 0x4d2   :  { %v2144_v36 = vmul.f32 %v2094_v4, %v4521_v24  ;;  %v2143_v14 = vmul.f32 %v2090_v10, %v4521_v24 }
 0x4d4   :  { %2233 = vrot.lane.b32.xlu1 %v2144_v36, %s3856_s12  ;;  %2231 = vrot.lane.b32.xlu0 %v2143_v14, %s3856_s12 }
 0x4d5   :  { %v2102_v1 = vpop.permute.xlu1 %2101  ;;  %v2098_v43 = vpop.permute.xlu0 %2097 }
 0x4d6   :  { %v2146_v57 = vmul.f32 %v2102_v1, %v4521_v24  ;;  %v2145_v5 = vmul.f32 %v2098_v43, %v4521_v24 }
 0x4d8   :  { %2237 = vrot.lane.b32.xlu1 %v2146_v57, %s3856_s12  ;;  %2235 = vrot.lane.b32.xlu0 %v2145_v5, %s3856_s12 }
 0x4d9   :  { %v2110_v40 = vpop.permute.xlu1 %2109  ;;  %v2106_v4 = vpop.permute.xlu0 %2105 }
 0x4da   :  { %v2148_v42 = vmul.f32 %v2110_v40, %v4686_v13  ;;  %v2147_v10 = vmul.f32 %v2106_v4, %v4686_v13 }
 0x4dc   :  { %2241 = vrot.lane.b32.xlu1 %v2148_v42, %s3856_s12  ;;  %2239 = vrot.lane.b32.xlu0 %v2147_v10, %s3856_s12 }
 0x4dd   :  { %v2118_v36 = vpop.permute.xlu1 %2117  ;;  %v2114_v1 = vpop.permute.xlu0 %2113 }
 0x4de   :  { %v2150_v14 = vmul.f32 %v2118_v36, %v4686_v13  ;;  %v2149_v43 = vmul.f32 %v2114_v1, %v4686_v13 }
 0x4e0   :  { %2245 = vrot.lane.b32.xlu1 %v2150_v14, %s3856_s12  ;;  %2243 = vrot.lane.b32.xlu0 %v2149_v43, %s3856_s12 }
 0x4e4   :  { %2317 = vbcast.lane.b32.xlu1 %v6467_v0, 328  ;;  %2313 = vbcast.lane.b32.xlu0 %v6467_v0, 320 }
 0x4e8   :  { %2325 = vbcast.lane.b32.xlu1 %v6467_v0, 344  ;;  %2321 = vbcast.lane.b32.xlu0 %v6467_v0, 336 }
 0x4ec   :  { %2333 = vbcast.lane.b32.xlu1 %v6472_v17, 328  ;;  %2329 = vbcast.lane.b32.xlu0 %v6472_v17, 320 }
 0x4f0   :  { %2341 = vbcast.lane.b32.xlu1 %v6472_v17, 344  ;;  %2337 = vbcast.lane.b32.xlu0 %v6472_v17, 336 }
 0x4f4   :  { %2349 = vbcast.lane.b32.xlu1 %v6477_v52, 328  ;;  %2345 = vbcast.lane.b32.xlu0 %v6477_v52, 320 }
 0x4f8   :  { %2357 = vbcast.lane.b32.xlu1 %v6477_v52, 344  ;;  %2353 = vbcast.lane.b32.xlu0 %v6477_v52, 336 }
 0x4fc   :  { %2365 = vbcast.lane.b32.xlu1 %v6482_v21, 328  ;;  %2361 = vbcast.lane.b32.xlu0 %v6482_v21, 320 }
 0x500   :  { %2373 = vbcast.lane.b32.xlu1 %v6482_v21, 344  ;;  %2369 = vbcast.lane.b32.xlu0 %v6482_v21, 336 }
 0x504   :  { %2381 = vbcast.lane.b32.xlu1 %v6487_v16, 328  ;;  %2377 = vbcast.lane.b32.xlu0 %v6487_v16, 320 }
 0x508   :  { %2389 = vbcast.lane.b32.xlu1 %v6487_v16, 344  ;;  %2385 = vbcast.lane.b32.xlu0 %v6487_v16, 336 }
 0x50c   :  { %2397 = vbcast.lane.b32.xlu1 %v6492_v54, 328  ;;  %2393 = vbcast.lane.b32.xlu0 %v6492_v54, 320 }
 0x510   :  { %2405 = vbcast.lane.b32.xlu1 %v6492_v54, 344  ;;  %2401 = vbcast.lane.b32.xlu0 %v6492_v54, 336 }
 0x514   :  { %2413 = vbcast.lane.b32.xlu1 %v6497_v12, 328  ;;  %2409 = vbcast.lane.b32.xlu0 %v6497_v12, 320 }
 0x516   :  { %v5288_v57 = vpop.permute.xlu1 %2185  ;;  %v5290_v5 = vpop.permute.xlu0 %2183 }
 0x517   :  { %6531 = vst [vmem:[#allocation152_spill] sm:$0xff] %v5288_v57  ;;  %6532 = vst [vmem:[#allocation153_spill] sm:$0xff] %v5290_v5 }
 0x518   :  { %2421 = vbcast.lane.b32.xlu1 %v6497_v12, 344  ;;  %2417 = vbcast.lane.b32.xlu0 %v6497_v12, 336 }
 0x51a   :  { %v5294_v40 = vpop.permute.xlu1 %2189  ;;  %v5296_v42 = vpop.permute.xlu0 %2187 }
 0x51b   :  { %6533 = vst [vmem:[#allocation154_spill] sm:$0xff] %v5294_v40  ;;  %6534 = vst [vmem:[#allocation155_spill] sm:$0xff] %v5296_v42 }
 0x51c   :  { %2429 = vbcast.lane.b32.xlu1 %v6502_v7, 328  ;;  %2425 = vbcast.lane.b32.xlu0 %v6502_v7, 320 }
 0x51e   :  { %v5300_v4 = vpop.permute.xlu1 %2193  ;;  %v5302_v10 = vpop.permute.xlu0 %2191 }
 0x51f   :  { %6535 = vst [vmem:[#allocation156_spill] sm:$0xff] %v5300_v4  ;;  %6536 = vst [vmem:[#allocation157_spill] sm:$0xff] %v5302_v10 }
 0x520   :  { %2437 = vbcast.lane.b32.xlu1 %v6502_v7, 344  ;;  %2433 = vbcast.lane.b32.xlu0 %v6502_v7, 336 }
 0x522   :  { %v5306_v36 = vpop.permute.xlu1 %2197  ;;  %v5308_v14 = vpop.permute.xlu0 %2195 }
 0x523   :  { %6537 = vst [vmem:[#allocation158_spill] sm:$0xff] %v5306_v36  ;;  %6538 = vst [vmem:[#allocation159_spill] sm:$0xff] %v5308_v14 }
 0x526   :  { %v5310_v1 = vpop.permute.xlu1 %2201  ;;  %v5312_v43 = vpop.permute.xlu0 %2199 }
 0x527   :  { %6539 = vst [vmem:[#allocation160_spill] sm:$0xff] %v5310_v1  ;;  %6540 = vst [vmem:[#allocation161_spill] sm:$0xff] %v5312_v43 }
 0x52a   :  { %v5314_v42 = vpop.permute.xlu1 %2205  ;;  %v5316_v40 = vpop.permute.xlu0 %2203 }
 0x52b   :  { %6541 = vst [vmem:[#allocation162_spill] sm:$0xff] %v5314_v42  ;;  %6542 = vst [vmem:[#allocation163_spill] sm:$0xff] %v5316_v40 }
 0x52e   :  { %v5318_v5 = vpop.permute.xlu1 %2209  ;;  %v5320_v4 = vpop.permute.xlu0 %2207 }
 0x52f   :  { %6543 = vst [vmem:[#allocation164_spill] sm:$0xff] %v5318_v5  ;;  %6544 = vst [vmem:[#allocation165_spill] sm:$0xff] %v5320_v4 }
 0x532   :  { %v5322_v10 = vpop.permute.xlu1 %2213  ;;  %v5324_v57 = vpop.permute.xlu0 %2211 }
 0x533   :  { %6545 = vst [vmem:[#allocation166_spill] sm:$0xff] %v5322_v10  ;;  %6546 = vst [vmem:[#allocation167_spill] sm:$0xff] %v5324_v57 }
 0x536   :  { %v5326_v9 = vpop.permute.xlu1 %2217  ;;  %v5328_v36 = vpop.permute.xlu0 %2215 }
 0x537   :  { %6547 = vst [vmem:[#allocation168_spill] sm:$0xff] %v5326_v9  ;;  %6548 = vst [vmem:[#allocation169_spill] sm:$0xff] %v5328_v36 }
 0x53a   :  { %v5330_v14 = vpop.permute.xlu1 %2221  ;;  %v5332_v1 = vpop.permute.xlu0 %2219 }
 0x53b   :  { %6549 = vst [vmem:[#allocation170_spill] sm:$0xff] %v5330_v14  ;;  %6550 = vst [vmem:[#allocation171_spill] sm:$0xff] %v5332_v1 }
 0x53e   :  { %v5334_v43 = vpop.permute.xlu1 %2225  ;;  %v5336_v42 = vpop.permute.xlu0 %2223 }
 0x53f   :  { %6551 = vst [vmem:[#allocation172_spill] sm:$0xff] %v5334_v43  ;;  %6552 = vst [vmem:[#allocation173_spill] sm:$0xff] %v5336_v42 }
 0x542   :  { %v5338_v40 = vpop.permute.xlu1 %2229  ;;  %v5340_v5 = vpop.permute.xlu0 %2227 }
 0x543   :  { %6553 = vst [vmem:[#allocation174_spill] sm:$0xff] %v5338_v40  ;;  %6554 = vst [vmem:[#allocation175_spill] sm:$0xff] %v5340_v5 }
 0x546   :  { %v5342_v4 = vpop.permute.xlu1 %2233  ;;  %v5344_v10 = vpop.permute.xlu0 %2231 }
 0x547   :  { %6555 = vst [vmem:[#allocation176_spill] sm:$0xff] %v5342_v4  ;;  %6556 = vst [vmem:[#allocation177_spill] sm:$0xff] %v5344_v10  ;;  %v6609_v10 = vld [vmem:[#allocation37_spill] sm:$0xff] }
 0x54a   :  { %v5346_v57 = vpop.permute.xlu1 %2237  ;;  %v5348_v9 = vpop.permute.xlu0 %2235 }
 0x54b   :  { %6557 = vst [vmem:[#allocation178_spill] sm:$0xff] %v5346_v57  ;;  %6558 = vst [vmem:[#allocation179_spill] sm:$0xff] %v5348_v9 }
 0x54e   :  { %v5350_v36 = vpop.permute.xlu1 %2241  ;;  %v5352_v14 = vpop.permute.xlu0 %2239 }
 0x54f   :  { %6559 = vst [vmem:[#allocation180_spill] sm:$0xff] %v5350_v36  ;;  %6560 = vst [vmem:[#allocation181_spill] sm:$0xff] %v5352_v14 }
 0x552   :  { %v5354_v1 = vpop.permute.xlu1 %2245  ;;  %v5356_v43 = vpop.permute.xlu0 %2243 }
 0x553   :  { %6561 = vst [vmem:[#allocation182_spill] sm:$0xff] %v5354_v1  ;;  %6562 = vst [vmem:[#allocation183_spill] sm:$0xff] %v5356_v43 }
 0x556   :  { %v2318_v42 = vpop.permute.xlu1 %2317  ;;  %v2314_v5 = vpop.permute.xlu0 %2313 }
 0x557   :  { %v2440_v40 = vmul.f32 %v2318_v42, %v4376_v53  ;;  %v2439_v4 = vmul.f32 %v2314_v5, %v4376_v53 }
 0x559   :  { %2505 = vrot.lane.b32.xlu1 %v2440_v40, %s3849_s28  ;;  %2503 = vrot.lane.b32.xlu0 %v2439_v4, %s3849_s28 }
 0x55a   :  { %v2326_v57 = vpop.permute.xlu1 %2325  ;;  %v2322_v36 = vpop.permute.xlu0 %2321 }
 0x55b   :  { %v2442_v9 = vmul.f32 %v2326_v57, %v4376_v53  ;;  %v2441_v14 = vmul.f32 %v2322_v36, %v4376_v53 }
 0x55d   :  { %2509 = vrot.lane.b32.xlu1 %v2442_v9, %s3849_s28  ;;  %2507 = vrot.lane.b32.xlu0 %v2441_v14, %s3849_s28 }
 0x55e   :  { %v2334_v43 = vpop.permute.xlu1 %2333  ;;  %v2330_v1 = vpop.permute.xlu0 %2329 }
 0x55f   :  { %v2444_v42 = vmul.f32 %v2334_v43, %v4400_v22  ;;  %v2443_v5 = vmul.f32 %v2330_v1, %v4400_v22 }
 0x561   :  { %2513 = vrot.lane.b32.xlu1 %v2444_v42, %s3849_s28  ;;  %2511 = vrot.lane.b32.xlu0 %v2443_v5, %s3849_s28 }
 0x562   :  { %v2342_v40 = vpop.permute.xlu1 %2341  ;;  %v2338_v4 = vpop.permute.xlu0 %2337 }
 0x563   :  { %v2446_v57 = vmul.f32 %v2342_v40, %v4400_v22  ;;  %v2445_v36 = vmul.f32 %v2338_v4, %v4400_v22 }
 0x565   :  { %2517 = vrot.lane.b32.xlu1 %v2446_v57, %s3849_s28  ;;  %2515 = vrot.lane.b32.xlu0 %v2445_v36, %s3849_s28 }
 0x566   :  { %v2350_v9 = vpop.permute.xlu1 %2349  ;;  %v2346_v43 = vpop.permute.xlu0 %2345 }
 0x567   :  { %v2448_v14 = vmul.f32 %v2350_v9, %v4423_v6  ;;  %v2447_v1 = vmul.f32 %v2346_v43, %v4423_v6 }
 0x569   :  { %2521 = vrot.lane.b32.xlu1 %v2448_v14, %s3849_s28  ;;  %2519 = vrot.lane.b32.xlu0 %v2447_v1, %s3849_s28 }
 0x56a   :  { %v2358_v42 = vpop.permute.xlu1 %2357  ;;  %v2354_v40 = vpop.permute.xlu0 %2353 }
 0x56b   :  { %v2450_v5 = vmul.f32 %v2358_v42, %v4423_v6  ;;  %v2449_v4 = vmul.f32 %v2354_v40, %v4423_v6 }
 0x56d   :  { %2525 = vrot.lane.b32.xlu1 %v2450_v5, %s3849_s28  ;;  %2523 = vrot.lane.b32.xlu0 %v2449_v4, %s3849_s28 }
 0x56e   :  { %v2366_v57 = vpop.permute.xlu1 %2365  ;;  %v2362_v9 = vpop.permute.xlu0 %2361 }
 0x56f   :  { %v2452_v36 = vmul.f32 %v2366_v57, %v4447_v41  ;;  %v2451_v43 = vmul.f32 %v2362_v9, %v4447_v41 }
 0x571   :  { %2529 = vrot.lane.b32.xlu1 %v2452_v36, %s3849_s28  ;;  %2527 = vrot.lane.b32.xlu0 %v2451_v43, %s3849_s28 }
 0x572   :  { %v2374_v14 = vpop.permute.xlu1 %2373  ;;  %v2370_v42 = vpop.permute.xlu0 %2369 }
 0x573   :  { %v2454_v1 = vmul.f32 %v2374_v14, %v4447_v41  ;;  %v2453_v40 = vmul.f32 %v2370_v42, %v4447_v41 }
 0x575   :  { %2533 = vrot.lane.b32.xlu1 %v2454_v1, %s3849_s28  ;;  %2531 = vrot.lane.b32.xlu0 %v2453_v40, %s3849_s28 }
 0x576   :  { %v2382_v5 = vpop.permute.xlu1 %2381  ;;  %v2378_v57 = vpop.permute.xlu0 %2377 }
 0x577   :  { %v2456_v4 = vmul.f32 %v2382_v5, %v4471_v34  ;;  %v2455_v9 = vmul.f32 %v2378_v57, %v4471_v34 }
 0x579   :  { %2537 = vrot.lane.b32.xlu1 %v2456_v4, %s3849_s28  ;;  %2535 = vrot.lane.b32.xlu0 %v2455_v9, %s3849_s28 }
 0x57a   :  { %v2390_v36 = vpop.permute.xlu1 %2389  ;;  %v2386_v14 = vpop.permute.xlu0 %2385 }
 0x57b   :  { %v2458_v43 = vmul.f32 %v2390_v36, %v4471_v34  ;;  %v2457_v42 = vmul.f32 %v2386_v14, %v4471_v34 }
 0x57d   :  { %2541 = vrot.lane.b32.xlu1 %v2458_v43, %s3849_s28  ;;  %2539 = vrot.lane.b32.xlu0 %v2457_v42, %s3849_s28 }
 0x57e   :  { %v2398_v1 = vpop.permute.xlu1 %2397  ;;  %v2394_v5 = vpop.permute.xlu0 %2393 }
 0x57f   :  { %v2460_v40 = vmul.f32 %v2398_v1, %v4498_v38  ;;  %v2459_v57 = vmul.f32 %v2394_v5, %v4498_v38 }
 0x581   :  { %2545 = vrot.lane.b32.xlu1 %v2460_v40, %s3849_s28  ;;  %2543 = vrot.lane.b32.xlu0 %v2459_v57, %s3849_s28 }
 0x582   :  { %v2406_v4 = vpop.permute.xlu1 %2405  ;;  %v2402_v36 = vpop.permute.xlu0 %2401 }
 0x583   :  { %v2462_v9 = vmul.f32 %v2406_v4, %v4498_v38  ;;  %v2461_v14 = vmul.f32 %v2402_v36, %v4498_v38 }
 0x585   :  { %2549 = vrot.lane.b32.xlu1 %v2462_v9, %s3849_s28  ;;  %2547 = vrot.lane.b32.xlu0 %v2461_v14, %s3849_s28 }
 0x586   :  { %v2414_v43 = vpop.permute.xlu1 %2413  ;;  %v2410_v1 = vpop.permute.xlu0 %2409 }
 0x587   :  { %v2464_v42 = vmul.f32 %v2414_v43, %v4521_v24  ;;  %v2463_v5 = vmul.f32 %v2410_v1, %v4521_v24 }
 0x589   :  { %2553 = vrot.lane.b32.xlu1 %v2464_v42, %s3849_s28  ;;  %2551 = vrot.lane.b32.xlu0 %v2463_v5, %s3849_s28 }
 0x58d   :  { %2637 = vbcast.lane.b32.xlu1 %v6467_v0, 360  ;;  %2633 = vbcast.lane.b32.xlu0 %v6467_v0, 352 }
 0x591   :  { %2645 = vbcast.lane.b32.xlu1 %v6467_v0, 376  ;;  %2641 = vbcast.lane.b32.xlu0 %v6467_v0, 368  ;;  %v2418_v0 = vpop.permute.xlu0 %2417 }
 0x592   :  { %v2465_v4 = vmul.f32 %v2418_v0, %v4521_v24 }
 0x595   :  { %2653 = vbcast.lane.b32.xlu1 %v6472_v17, 360  ;;  %2649 = vbcast.lane.b32.xlu0 %v6472_v17, 352 }
 0x599   :  { %2661 = vbcast.lane.b32.xlu1 %v6472_v17, 376  ;;  %2657 = vbcast.lane.b32.xlu0 %v6472_v17, 368  ;;  %v2426_v17 = vpop.permute.xlu0 %2425 }
 0x59a   :  { %v2467_v14 = vmul.f32 %v2426_v17, %v4686_v13 }
 0x59d   :  { %2669 = vbcast.lane.b32.xlu1 %v6477_v52, 360  ;;  %2665 = vbcast.lane.b32.xlu0 %v6477_v52, 352  ;;  %v2434_v40 = vpop.permute.xlu0 %2433 }
 0x59e   :  { %v2469_v1 = vmul.f32 %v2434_v40, %v4686_v13 }
 0x5a1   :  { %2677 = vbcast.lane.b32.xlu1 %v6477_v52, 376  ;;  %2673 = vbcast.lane.b32.xlu0 %v6477_v52, 368  ;;  %v2422_v52 = vpop.permute.xlu1 %2421 }
 0x5a5   :  { %2685 = vbcast.lane.b32.xlu1 %v6482_v21, 360  ;;  %2681 = vbcast.lane.b32.xlu0 %v6482_v21, 352 }
 0x5a9   :  { %2693 = vbcast.lane.b32.xlu1 %v6482_v21, 376  ;;  %2689 = vbcast.lane.b32.xlu0 %v6482_v21, 368  ;;  %v2430_v21 = vpop.permute.xlu1 %2429 }
 0x5ad   :  { %2701 = vbcast.lane.b32.xlu1 %v6487_v16, 360  ;;  %2697 = vbcast.lane.b32.xlu0 %v6487_v16, 352 }
 0x5b1   :  { %2709 = vbcast.lane.b32.xlu1 %v6487_v16, 376  ;;  %2705 = vbcast.lane.b32.xlu0 %v6487_v16, 368  ;;  %v2438_v16 = vpop.permute.xlu1 %2437 }
 0x5b5   :  { %2717 = vbcast.lane.b32.xlu1 %v6492_v54, 360  ;;  %2713 = vbcast.lane.b32.xlu0 %v6492_v54, 352 }
 0x5b9   :  { %2725 = vbcast.lane.b32.xlu1 %v6492_v54, 376  ;;  %2721 = vbcast.lane.b32.xlu0 %v6492_v54, 368  ;;  %v2466_v54 = vmul.f32 %v2422_v52, %v4521_v24 }
 0x5bd   :  { %2733 = vbcast.lane.b32.xlu1 %v6497_v12, 360  ;;  %2729 = vbcast.lane.b32.xlu0 %v6497_v12, 352 }
 0x5c1   :  { %2741 = vbcast.lane.b32.xlu1 %v6497_v12, 376  ;;  %2737 = vbcast.lane.b32.xlu0 %v6497_v12, 368  ;;  %v2468_v12 = vmul.f32 %v2430_v21, %v4686_v13 }
 0x5c5   :  { %2749 = vbcast.lane.b32.xlu1 %v6502_v7, 360  ;;  %2745 = vbcast.lane.b32.xlu0 %v6502_v7, 352 }
 0x5c9   :  { %2757 = vbcast.lane.b32.xlu1 %v6502_v7, 376  ;;  %2753 = vbcast.lane.b32.xlu0 %v6502_v7, 368  ;;  %v2470_v7 = vmul.f32 %v2438_v16, %v4686_v13 }
 0x5cb   :  { %v5443_v57 = vpop.permute.xlu1 %2505  ;;  %v5446_v9 = vpop.permute.xlu0 %2503 }
 0x5cc   :  { %6563 = vst [vmem:[#allocation184_spill] sm:$0xff] %v5443_v57  ;;  %6564 = vst [vmem:[#allocation185_spill] sm:$0xff] %v5446_v9  ;;  %v6605_v9 = vld [vmem:[#allocation34_spill] sm:$0xff] }
 0x5cd   :  { %2557 = vrot.lane.b32.xlu1 %v2466_v54, %s3849_s28  ;;  %2555 = vrot.lane.b32.xlu0 %v2465_v4, %s3849_s28 }
 0x5cf   :  { %v5451_v36 = vpop.permute.xlu1 %2509  ;;  %v5454_v43 = vpop.permute.xlu0 %2507 }
 0x5d0   :  { %6565 = vst [vmem:[#allocation186_spill] sm:$0xff] %v5451_v36  ;;  %6566 = vst [vmem:[#allocation187_spill] sm:$0xff] %v5454_v43  ;;  %v6601_v36 = vld [vmem:[#allocation30_spill] sm:$0xff] }
 0x5d1   :  { %2561 = vrot.lane.b32.xlu1 %v2468_v12, %s3849_s28  ;;  %2559 = vrot.lane.b32.xlu0 %v2467_v14, %s3849_s28 }
 0x5d3   :  { %v5459_v42 = vpop.permute.xlu1 %2513  ;;  %v5462_v5 = vpop.permute.xlu0 %2511 }
 0x5d4   :  { %6567 = vst [vmem:[#allocation188_spill] sm:$0xff] %v5459_v42  ;;  %6568 = vst [vmem:[#allocation189_spill] sm:$0xff] %v5462_v5  ;;  %v6594_v5 = vld [vmem:[#allocation12_spill] sm:$0xff]  ;;  %v6597_v42 = vld [vmem:[#allocation26_spill] sm:$0xff] }
 0x5d5   :  { %2565 = vrot.lane.b32.xlu1 %v2470_v7, %s3849_s28  ;;  %2563 = vrot.lane.b32.xlu0 %v2469_v1, %s3849_s28 }
 0x5d7   :  { %v5466_v52 = vpop.permute.xlu1 %2517  ;;  %v5468_v0 = vpop.permute.xlu0 %2515 }
 0x5d8   :  { %6569 = vst [vmem:[#allocation190_spill] sm:$0xff] %v5466_v52  ;;  %6570 = vst [vmem:[#allocation191_spill] sm:$0xff] %v5468_v0 }
 0x5db   :  { %v5470_v21 = vpop.permute.xlu1 %2521  ;;  %v5472_v17 = vpop.permute.xlu0 %2519 }
 0x5dc   :  { %6571 = vst [vmem:[#allocation192_spill] sm:$0xff] %v5470_v21  ;;  %6572 = vst [vmem:[#allocation193_spill] sm:$0xff] %v5472_v17 }
 0x5df   :  { %v5474_v54 = vpop.permute.xlu1 %2525  ;;  %v5476_v16 = vpop.permute.xlu0 %2523 }
 0x5e0   :  { %6573 = vst [vmem:[#allocation194_spill] sm:$0xff] %v5474_v54  ;;  %6574 = vst [vmem:[#allocation195_spill] sm:$0xff] %v5476_v16 }
 0x5e3   :  { %v5478_v4 = vpop.permute.xlu1 %2529  ;;  %v5480_v40 = vpop.permute.xlu0 %2527 }
 0x5e4   :  { %6575 = vst [vmem:[#allocation196_spill] sm:$0xff] %v5478_v4  ;;  %6576 = vst [vmem:[#allocation197_spill] sm:$0xff] %v5480_v40 }
 0x5e7   :  { %v5482_v12 = vpop.permute.xlu1 %2533  ;;  %v5484_v14 = vpop.permute.xlu0 %2531 }
 0x5e8   :  { %6577 = vst [vmem:[#allocation198_spill] sm:$0xff] %v5482_v12  ;;  %6578 = vst [vmem:[#allocation199_spill] sm:$0xff] %v5484_v14 }
 0x5eb   :  { %v5486_v7 = vpop.permute.xlu1 %2537  ;;  %v5488_v1 = vpop.permute.xlu0 %2535 }
 0x5ec   :  { %6579 = vst [vmem:[#allocation200_spill] sm:$0xff] %v5486_v7  ;;  %6580 = vst [vmem:[#allocation201_spill] sm:$0xff] %v5488_v1 }
 0x5ef   :  { %v5490_v0 = vpop.permute.xlu1 %2541  ;;  %v5492_v21 = vpop.permute.xlu0 %2539 }
 0x5f0   :  { %6581 = vst [vmem:[#allocation202_spill] sm:$0xff] %v5490_v0  ;;  %6582 = vst [vmem:[#allocation203_spill] sm:$0xff] %v5492_v21 }
 0x5f3   :  { %v5494_v17 = vpop.permute.xlu1 %2545  ;;  %v5496_v54 = vpop.permute.xlu0 %2543 }
 0x5f4   :  { %6583 = vst [vmem:[#allocation204_spill] sm:$0xff] %v5494_v17  ;;  %6584 = vst [vmem:[#allocation205_spill] sm:$0xff] %v5496_v54 }
 0x5f7   :  { %v5498_v16 = vpop.permute.xlu1 %2549  ;;  %v5500_v4 = vpop.permute.xlu0 %2547 }
 0x5f8   :  { %6585 = vst [vmem:[#allocation206_spill] sm:$0xff] %v5498_v16  ;;  %6586 = vst [vmem:[#allocation207_spill] sm:$0xff] %v5500_v4 }
 0x5fb   :  { %v5502_v40 = vpop.permute.xlu1 %2553  ;;  %v5504_v12 = vpop.permute.xlu0 %2551 }
 0x5fc   :  { %6587 = vst [vmem:[#allocation208_spill] sm:$0xff] %v5502_v40  ;;  %6588 = vst [vmem:[#allocation209_spill] sm:$0xff] %v5504_v12 }
 0x5ff   :  { %v2638_v14 = vpop.permute.xlu1 %2637  ;;  %v2634_v1 = vpop.permute.xlu0 %2633 }
 0x600   :  { %v2760_v7 = vmul.f32 %v2638_v14, %v4376_v53  ;;  %v2759_v0 = vmul.f32 %v2634_v1, %v4376_v53 }
 0x602   :  { %2825 = vrot.lane.b32.xlu1 %v2760_v7, %s3845_s29  ;;  %2823 = vrot.lane.b32.xlu0 %v2759_v0, %s3845_s29 }
 0x603   :  { %v2646_v17 = vpop.permute.xlu1 %2645  ;;  %v2642_v16 = vpop.permute.xlu0 %2641 }
 0x604   :  { %v2762_v54 = vmul.f32 %v2646_v17, %v4376_v53  ;;  %v2761_v4 = vmul.f32 %v2642_v16, %v4376_v53 }
 0x606   :  { %2829 = vrot.lane.b32.xlu1 %v2762_v54, %s3845_s29  ;;  %2827 = vrot.lane.b32.xlu0 %v2761_v4, %s3845_s29 }
 0x607   :  { %v2654_v12 = vpop.permute.xlu1 %2653  ;;  %v2650_v40 = vpop.permute.xlu0 %2649 }
 0x608   :  { %v2764_v14 = vmul.f32 %v2654_v12, %v4400_v22  ;;  %v2763_v1 = vmul.f32 %v2650_v40, %v4400_v22 }
 0x60a   :  { %2833 = vrot.lane.b32.xlu1 %v2764_v14, %s3845_s29  ;;  %2831 = vrot.lane.b32.xlu0 %v2763_v1, %s3845_s29 }
 0x60b   :  { %v2662_v0 = vpop.permute.xlu1 %2661  ;;  %v2658_v7 = vpop.permute.xlu0 %2657 }
 0x60c   :  { %v2766_v17 = vmul.f32 %v2662_v0, %v4400_v22  ;;  %v2765_v16 = vmul.f32 %v2658_v7, %v4400_v22 }
 0x60e   :  { %2837 = vrot.lane.b32.xlu1 %v2766_v17, %s3845_s29  ;;  %2835 = vrot.lane.b32.xlu0 %v2765_v16, %s3845_s29 }
 0x60f   :  { %v2670_v54 = vpop.permute.xlu1 %2669  ;;  %v2666_v12 = vpop.permute.xlu0 %2665 }
 0x610   :  { %v2768_v4 = vmul.f32 %v2670_v54, %v4423_v6  ;;  %v2767_v40 = vmul.f32 %v2666_v12, %v4423_v6 }
 0x612   :  { %2841 = vrot.lane.b32.xlu1 %v2768_v4, %s3845_s29  ;;  %2839 = vrot.lane.b32.xlu0 %v2767_v40, %s3845_s29 }
 0x613   :  { %v2678_v14 = vpop.permute.xlu1 %2677  ;;  %v2674_v0 = vpop.permute.xlu0 %2673 }
 0x614   :  { %v2770_v1 = vmul.f32 %v2678_v14, %v4423_v6  ;;  %v2769_v7 = vmul.f32 %v2674_v0, %v4423_v6 }
 0x616   :  { %2845 = vrot.lane.b32.xlu1 %v2770_v1, %s3845_s29  ;;  %2843 = vrot.lane.b32.xlu0 %v2769_v7, %s3845_s29 }
 0x617   :  { %v2686_v17 = vpop.permute.xlu1 %2685  ;;  %v2682_v54 = vpop.permute.xlu0 %2681 }
 0x618   :  { %v2772_v16 = vmul.f32 %v2686_v17, %v4447_v41  ;;  %v2771_v12 = vmul.f32 %v2682_v54, %v4447_v41 }
 0x61a   :  { %2849 = vrot.lane.b32.xlu1 %v2772_v16, %s3845_s29  ;;  %2847 = vrot.lane.b32.xlu0 %v2771_v12, %s3845_s29 }
 0x61b   :  { %v2694_v4 = vpop.permute.xlu1 %2693  ;;  %v2690_v14 = vpop.permute.xlu0 %2689 }
 0x61c   :  { %v2774_v40 = vmul.f32 %v2694_v4, %v4447_v41  ;;  %v2773_v0 = vmul.f32 %v2690_v14, %v4447_v41 }
 0x61e   :  { %2853 = vrot.lane.b32.xlu1 %v2774_v40, %s3845_s29  ;;  %2851 = vrot.lane.b32.xlu0 %v2773_v0, %s3845_s29 }
 0x61f   :  { %v2702_v1 = vpop.permute.xlu1 %2701  ;;  %v2698_v17 = vpop.permute.xlu0 %2697 }
 0x620   :  { %v2776_v7 = vmul.f32 %v2702_v1, %v4471_v34  ;;  %v2775_v54 = vmul.f32 %v2698_v17, %v4471_v34 }
 0x622   :  { %2857 = vrot.lane.b32.xlu1 %v2776_v7, %s3845_s29  ;;  %2855 = vrot.lane.b32.xlu0 %v2775_v54, %s3845_s29 }
 0x623   :  { %v2710_v16 = vpop.permute.xlu1 %2709  ;;  %v2706_v4 = vpop.permute.xlu0 %2705 }
 0x624   :  { %v2778_v12 = vmul.f32 %v2710_v16, %v4471_v34  ;;  %v2777_v14 = vmul.f32 %v2706_v4, %v4471_v34 }
 0x626   :  { %2861 = vrot.lane.b32.xlu1 %v2778_v12, %s3845_s29  ;;  %2859 = vrot.lane.b32.xlu0 %v2777_v14, %s3845_s29 }
 0x627   :  { %v2718_v40 = vpop.permute.xlu1 %2717  ;;  %v2714_v1 = vpop.permute.xlu0 %2713 }
 0x628   :  { %v2780_v0 = vmul.f32 %v2718_v40, %v4498_v38  ;;  %v2779_v17 = vmul.f32 %v2714_v1, %v4498_v38 }
 0x62a   :  { %2865 = vrot.lane.b32.xlu1 %v2780_v0, %s3845_s29  ;;  %2863 = vrot.lane.b32.xlu0 %v2779_v17, %s3845_s29 }
 0x62b   :  { %v2726_v7 = vpop.permute.xlu1 %2725  ;;  %v2722_v16 = vpop.permute.xlu0 %2721 }
 0x62c   :  { %v2782_v54 = vmul.f32 %v2726_v7, %v4498_v38  ;;  %v2781_v4 = vmul.f32 %v2722_v16, %v4498_v38 }
 0x62e   :  { %2869 = vrot.lane.b32.xlu1 %v2782_v54, %s3845_s29  ;;  %2867 = vrot.lane.b32.xlu0 %v2781_v4, %s3845_s29 }
 0x62f   :  { %v2734_v12 = vpop.permute.xlu1 %2733  ;;  %v2730_v40 = vpop.permute.xlu0 %2729 }
 0x630   :  { %v2784_v14 = vmul.f32 %v2734_v12, %v4521_v24  ;;  %v2783_v1 = vmul.f32 %v2730_v40, %v4521_v24 }
 0x632   :  { %2873 = vrot.lane.b32.xlu1 %v2784_v14, %s3845_s29  ;;  %2871 = vrot.lane.b32.xlu0 %v2783_v1, %s3845_s29 }
 0x633   :  { %v2742_v0 = vpop.permute.xlu1 %2741  ;;  %v2738_v7 = vpop.permute.xlu0 %2737 }
 0x634   :  { %v2786_v17 = vmul.f32 %v2742_v0, %v4521_v24  ;;  %v2785_v16 = vmul.f32 %v2738_v7, %v4521_v24 }
 0x636   :  { %2877 = vrot.lane.b32.xlu1 %v2786_v17, %s3845_s29  ;;  %2875 = vrot.lane.b32.xlu0 %v2785_v16, %s3845_s29 }
 0x637   :  { %v2750_v54 = vpop.permute.xlu1 %2749  ;;  %v2746_v12 = vpop.permute.xlu0 %2745 }
 0x638   :  { %v2788_v4 = vmul.f32 %v2750_v54, %v4686_v13  ;;  %v2787_v40 = vmul.f32 %v2746_v12, %v4686_v13  ;;  %v3857_v54 = vmov 1983009808  }
 0x639   :  { %v2956_v12 = vunpack.c.l.s4 %v3857_v54  ;;  %v6598_v54 = vld [vmem:[#allocation27_spill] sm:$0xff] }
 0x63a   :  { %2881 = vrot.lane.b32.xlu1 %v2788_v4, %s3845_s29  ;;  %2879 = vrot.lane.b32.xlu0 %v2787_v40, %s3845_s29  ;;  %v3858_v4 = vmov 1934713408  }
 0x63b   :  { %v2758_v14 = vpop.permute.xlu1 %2757  ;;  %v2754_v0 = vpop.permute.xlu0 %2753  ;;  %v2957_v21 = vunpack.c.0.s8 %v2956_v12  ;;  %v5574_v52 = vunpack.c.l.s4 %v3858_v4  ;;  %v626_v12 = vmul.f32 %v4376_v53, %v6598_v54  ;;  %v6599_v4 = vld [vmem:[#allocation28_spill] sm:$0xff]  ;;  %v631_v54 = vmul.f32 %v4423_v6, %v6605_v9 }
 0x63c   :  { %v2790_v1 = vmul.f32 %v2758_v14, %v4686_v13  ;;  %v2789_v7 = vmul.f32 %v2754_v0, %v4686_v13  ;;  %v624_v43 = vmul.f32 %v4376_v53, %v6599_v4  ;;  %v6608_v4 = vld [vmem:[#allocation36_spill] sm:$0xff] }
 0x63d   :  { %6591 = vst [vmem:[#allocation212_spill] sm:$0xff] %v5574_v52  ;;  %v5581_v0 = vsub.s32 %v2957_v21, %v6594_v5  ;;  %v627_v21 = vmul.f32 %v4400_v22, %v6601_v36  ;;  %v6602_v5 = vld [vmem:[#allocation31_spill] sm:$0xff]  ;;  %v6603_v52 = vld [vmem:[#allocation32_spill] sm:$0xff]  ;;  %v633_v36 = vmul.f32 %v4423_v6, %v6608_v4 }
 0x63e   :  { %2885 = vrot.lane.b32.xlu1 %v2790_v1, %s3845_s29  ;;  %2883 = vrot.lane.b32.xlu0 %v2789_v7, %s3845_s29  ;;  %v6596_v7 = vld [vmem:[#allocation25_spill] sm:$0xff]  ;;  %v630_v1 = vmul.f32 %v4400_v22, %v6602_v5  ;;  %v636_v5 = vmul.f32 %v4447_v41, %v6609_v10  ;;  %v6613_v9 = vld [vmem:[#allocation40_spill] sm:$0xff]  ;;  %v6616_v4 = vld [vmem:[#allocation43_spill] sm:$0xff]  ;;  %v976_v63 = vadd.f32 %v4842_v32, %v624_v43 }
 0x63f   :  { %v5570_v17 = vpop.permute.xlu1 %2557  ;;  %v5572_v16 = vpop.permute.xlu0 %2555  ;;  %6595 = vst [vmem:[#allocation215_spill] sm:$0xff] %v5581_v0  ;;  %v6604_v0 = vld [vmem:[#allocation33_spill] sm:$0xff]  ;;  %v642_v10 = vmul.f32 %v4471_v34, %v6616_v4  ;;  %v647_v4 = vmul.f32 %v4521_v24, %v6623_v59  ;;  %v6631_v59 = vld [vmem:[#allocation56_spill] sm:$0xff] }
 0x640   :  { %6589 = vst [vmem:[#allocation210_spill] sm:$0xff] %v5570_v17  ;;  %6590 = vst [vmem:[#allocation211_spill] sm:$0xff] %v5572_v16  ;;  %v625_v17 = vmul.f32 %v4376_v53, %v6596_v7  ;;  %v623_v16 = vmul.f32 %v4376_v53, %v6597_v42  ;;  %v629_v7 = vmul.f32 %v4400_v22, %v6603_v52  ;;  %v6607_v53 = vld [vmem:[#allocation35_spill] sm:$0xff]  ;;  %v6632_v43 = vld [vmem:[#allocation76_spill] sm:$0xff] }
 0x641   :  { %v632_v42 = vmul.f32 %v4423_v6, %v6604_v0  ;;  %v6612_v0 = vld [vmem:[#allocation39_spill] sm:$0xff] }
 0x642   :  { %v638_v20 = vmul.f32 %v4447_v41, %v6612_v0  ;;  %v643_v0 = vmul.f32 %v4498_v38, %v6619_v25  ;;  %v981_v2 = vadd.f32 %v4876_v26, %v629_v7  ;;  %v6640_v7 = vld [vmem:[#allocation59_spill] sm:$0xff] }
 0x643   :  { %v5576_v40 = vpop.permute.xlu1 %2561  ;;  %v5578_v14 = vpop.permute.xlu0 %2559 }
 0x644   :  { %6592 = vst [vmem:[#allocation213_spill] sm:$0xff] %v5576_v40  ;;  %6593 = vst [vmem:[#allocation214_spill] sm:$0xff] %v5578_v14  ;;  %v6600_v40 = vld [vmem:[#allocation29_spill] sm:$0xff] }
 0x645   :  { %v628_v14 = vmul.f32 %v4400_v22, %v6600_v40  ;;  %v634_v40 = vmul.f32 %v4423_v6, %v6607_v53  ;;  %v635_v22 = vmul.f32 %v4447_v41, %v6610_v51  ;;  %v640_v53 = vmul.f32 %v4471_v34, %v6614_v8 }
 0x646   :  { %v639_v6 = vmul.f32 %v4471_v34, %v6615_v18  ;;  %v641_v51 = vmul.f32 %v4471_v34, %v6617_v31  ;;  %v648_v18 = vmul.f32 %v4521_v24, %v6622_v56  ;;  %v6625_v34 = vld [vmem:[#allocation51_spill] sm:$0xff]  ;;  %v6626_v31 = vld [vmem:[#allocation52_spill] sm:$0xff] }
 0x647   :  { %v5604_v57 = vpop.permute.xlu1 %2565  ;;  %v5614_v52 = vpop.permute.xlu0 %2563  ;;  %v649_v25 = vmul.f32 %v4521_v24, %v6626_v31  ;;  %v6630_v56 = vld [vmem:[#allocation55_spill] sm:$0xff]  ;;  %v977_v31 = vadd.f32 %v4856_v19, %v625_v17  ;;  %v986_v32 = vadd.f32 %v4892_v37, %v634_v40  ;;  %v987_v19 = vadd.f32 %v4906_v44, %v635_v22  ;;  %v6643_v22 = vld [vmem:[#allocation62_spill] sm:$0xff] }
 0x648   :  { %6606 = vst [vmem:[#allocation25_spill] sm:$0xff] %v5604_v57  ;;  %6611 = vst [vmem:[#allocation26_spill] sm:$0xff] %v5614_v52  ;;  %v637_v57 = vmul.f32 %v4447_v41, %v6613_v9  ;;  %v644_v52 = vmul.f32 %v4498_v38, %v6618_v39  ;;  %v646_v41 = vmul.f32 %v4498_v38, %v6620_v15  ;;  %v6621_v9 = vld [vmem:[#allocation48_spill] sm:$0xff]  ;;  %v6633_v17 = vld [vmem:[#allocation95_spill] sm:$0xff] }
 0x649   :  { %v645_v8 = vmul.f32 %v4498_v38, %v6621_v9  ;;  %v650_v39 = vmul.f32 %v4521_v24, %v6625_v34  ;;  %v652_v15 = vmul.f32 %v4686_v13, %v6627_v62  ;;  %v651_v38 = vmul.f32 %v4686_v13, %v6628_v60 }
 0x64a   :  { %v654_v61 = vmul.f32 %v4686_v13, %v6630_v56  ;;  %v975_v34 = vadd.f32 %v4846_v27, %v623_v16  ;;  %v978_v24 = vadd.f32 %v4852_v23, %v626_v12  ;;  %v980_v62 = vadd.f32 %v4862_v28, %v628_v14  ;;  %v6634_v16 = vld [vmem:[#allocation96_spill] sm:$0xff]  ;;  %v6638_v12 = vld [vmem:[#allocation57_spill] sm:$0xff] }
 0x64b   :  { %v979_v60 = vadd.f32 %v4866_v30, %v627_v21  ;;  %v984_v56 = vadd.f32 %v4882_v29, %v632_v42  ;;  %v985_v27 = vadd.f32 %v4896_v35, %v633_v36  ;;  %v988_v23 = vadd.f32 %v4902_v55, %v636_v5  ;;  %v6639_v21 = vld [vmem:[#allocation58_spill] sm:$0xff]  ;;  %v6642_v36 = vld [vmem:[#allocation61_spill] sm:$0xff] }
 0x64c   :  { %v990_v30 = vadd.f32 %v4912_v47, %v638_v20  ;;  %v992_v26 = vadd.f32 %v4922_v49, %v640_v53  ;;  %v991_v29 = vadd.f32 %v4926_v48, %v639_v6  ;;  %v993_v37 = vadd.f32 %v4936_v50, %v641_v51  ;;  %v6636_v20 = vld [vmem:[#allocation77_spill] sm:$0xff]  ;;  %v6637_v49 = vld [vmem:[#allocation78_spill] sm:$0xff] }
 0x64d   :  { %v996_v35 = vadd.f32 %v4942_v3, %v644_v52  ;;  %v995_v55 = vadd.f32 %v6632_v43, %v643_v0  ;;  %v998_v44 = vadd.f32 %v6633_v17, %v646_v41  ;;  %v997_v14 = vadd.f32 %v6634_v16, %v645_v8  ;;  %v6644_v53 = vld [vmem:[#allocation98_spill] sm:$0xff]  ;;  %v6646_v0 = vld [vmem:[#allocation99_spill] sm:$0xff]  ;;  %v6647_v8 = vld [vmem:[#allocation100_spill] sm:$0xff] }
 0x64e   :  { %v1002_v48 = vadd.f32 %v6637_v49, %v650_v39  ;;  %v1004_v50 = vadd.f32 %v6639_v21, %v652_v15  ;;  %v1003_v3 = vadd.f32 %v6640_v7, %v651_v38  ;;  %v1296_v52 = vadd.f32 %v6643_v22, %v976_v63  ;;  %v6650_v38 = vld [vmem:[#allocation22_spill] sm:$0xff]  ;;  %v6651_v17 = vld [vmem:[#allocation23_spill] sm:$0xff]  ;;  %v6652_v16 = vld [vmem:[#allocation24_spill] sm:$0xff] }
 0x64f   :  { %v1295_v6 = vadd.f32 %v6644_v53, %v975_v34  ;;  %v1297_v41 = vadd.f32 %v6646_v0, %v977_v31  ;;  %v1301_v43 = vadd.f32 %v6650_v38, %v981_v2  ;;  %v6653_v63 = vld [vmem:[#allocation102_spill] sm:$0xff]  ;;  %v6655_v49 = vld [vmem:[#allocation13_spill] sm:$0xff]  ;;  %v6661_v22 = vld [vmem:[#allocation108_spill] sm:$0xff] }
 0x650   :  { %v1306_v34 = vadd.f32 %v6653_v63, %v986_v32  ;;  %v1308_v31 = vadd.f32 %v6655_v49, %v988_v23  ;;  %v6658_v7 = vld [vmem:[#allocation106_spill] sm:$0xff]  ;;  %v6663_v0 = vld [vmem:[#allocation15_spill] sm:$0xff] }
 0x651   :  { %v6671_v49 = vld [vmem:[#allocation18_spill] sm:$0xff] }
 0x674   :  { %v5640_v58 = vpop.permute.xlu1 %2825  ;;  %v5650_v9 = vpop.permute.xlu0 %2823 }
 0x675   :  { %6624 = vst [vmem:[#allocation27_spill] sm:$0xff] %v5640_v58  ;;  %6629 = vst [vmem:[#allocation28_spill] sm:$0xff] %v5650_v9  ;;  %v653_v58 = vmul.f32 %v4686_v13, %v6631_v59  ;;  %v982_v9 = vadd.f32 %v4872_v33, %v630_v1  ;;  %v983_v13 = vadd.f32 %v4886_v11, %v631_v54  ;;  %v6635_v1 = vld [vmem:[#allocation97_spill] sm:$0xff]  ;;  %v6641_v54 = vld [vmem:[#allocation60_spill] sm:$0xff] }
 0x676   :  { %v989_v33 = vadd.f32 %v4916_v46, %v637_v57  ;;  %v994_v11 = vadd.f32 %v4932_v45, %v642_v10  ;;  %v1000_v47 = vadd.f32 %v6635_v1, %v648_v18  ;;  %v999_v46 = vadd.f32 %v6636_v20, %v647_v4  ;;  %v6645_v10 = vld [vmem:[#allocation63_spill] sm:$0xff]  ;;  %v6648_v4 = vld [vmem:[#allocation101_spill] sm:$0xff] }
 0x677   :  { %v1001_v45 = vadd.f32 %v6638_v12, %v649_v25  ;;  %v1006_v40 = vadd.f32 %v6641_v54, %v654_v61  ;;  %v1005_v5 = vadd.f32 %v6642_v36, %v653_v58  ;;  %v1298_v51 = vadd.f32 %v6645_v10, %v978_v24  ;;  %v6649_v25 = vld [vmem:[#allocation21_spill] sm:$0xff]  ;;  %v6654_v20 = vld [vmem:[#allocation103_spill] sm:$0xff]  ;;  %v6656_v12 = vld [vmem:[#allocation104_spill] sm:$0xff] }
 0x678   :  { %v5666_v59 = vpop.permute.xlu1 %2829  ;;  %v5672_v28 = vpop.permute.xlu0 %2827  ;;  %v1300_v18 = vadd.f32 %v6647_v8, %v980_v62  ;;  %v1299_v39 = vadd.f32 %v6648_v4, %v979_v60  ;;  %v1302_v15 = vadd.f32 %v6649_v25, %v982_v9  ;;  %v1304_v61 = vadd.f32 %v6651_v17, %v984_v56  ;;  %v6657_v60 = vld [vmem:[#allocation105_spill] sm:$0xff]  ;;  %v6659_v54 = vld [vmem:[#allocation14_spill] sm:$0xff]  ;;  %v6660_v36 = vld [vmem:[#allocation107_spill] sm:$0xff] }
 0x679   :  { %v1303_v58 = vadd.f32 %v6652_v16, %v983_v13  ;;  %v1305_v24 = vadd.f32 %v6654_v20, %v985_v27  ;;  %v1307_v62 = vadd.f32 %v6656_v12, %v987_v19  ;;  %v1310_v9 = vadd.f32 %v6657_v60, %v990_v30  ;;  %v6662_v10 = vld [vmem:[#allocation109_spill] sm:$0xff]  ;;  %v6664_v8 = vld [vmem:[#allocation110_spill] sm:$0xff]  ;;  %v6665_v4 = vld [vmem:[#allocation111_spill] sm:$0xff] }
 0x67a   :  { %v1309_v2 = vadd.f32 %v6658_v7, %v989_v33  ;;  %v1312_v56 = vadd.f32 %v6659_v54, %v992_v26  ;;  %v1311_v13 = vadd.f32 %v6660_v36, %v991_v29  ;;  %v1314_v53 = vadd.f32 %v6661_v22, %v994_v11  ;;  %v6666_v25 = vld [vmem:[#allocation112_spill] sm:$0xff]  ;;  %v6668_v16 = vld [vmem:[#allocation113_spill] sm:$0xff]  ;;  %v6669_v26 = vld [vmem:[#allocation114_spill] sm:$0xff] }
 0x67b   :  { %v1313_v32 = vadd.f32 %v6662_v10, %v993_v37  ;;  %v1316_v27 = vadd.f32 %v6663_v0, %v996_v35  ;;  %v1315_v23 = vadd.f32 %v6664_v8, %v995_v55  ;;  %v1318_v19 = vadd.f32 %v6665_v4, %v998_v44  ;;  %v6667_v17 = vld [vmem:[#allocation16_spill] sm:$0xff]  ;;  %v6670_v20 = vld [vmem:[#allocation115_spill] sm:$0xff]  ;;  %v6674_v7 = vld [vmem:[#allocation121_spill] sm:$0xff] }
 0x67c   :  { %v5686_v57 = vpop.permute.xlu1 %2833  ;;  %v5692_v42 = vpop.permute.xlu0 %2831  ;;  %v1317_v38 = vadd.f32 %v6666_v25, %v997_v14  ;;  %v1320_v30 = vadd.f32 %v6667_v17, %v1000_v47  ;;  %v1319_v33 = vadd.f32 %v6668_v16, %v999_v46  ;;  %v1322_v29 = vadd.f32 %v6669_v26, %v1002_v48  ;;  %v6672_v12 = vld [vmem:[#allocation119_spill] sm:$0xff]  ;;  %v6673_v55 = vld [vmem:[#allocation120_spill] sm:$0xff]  ;;  %v6676_v36 = vld [vmem:[#allocation122_spill] sm:$0xff] }
 0x67d   :  { %v1321_v11 = vadd.f32 %v6670_v20, %v1001_v45  ;;  %v1616_v37 = vadd.f32 %v6671_v49, %v1296_v52  ;;  %v1615_v35 = vadd.f32 %v6672_v12, %v1295_v6  ;;  %v1618_v44 = vadd.f32 %v6673_v55, %v1298_v51  ;;  %v6675_v54 = vld [vmem:[#allocation19_spill] sm:$0xff]  ;;  %v6677_v22 = vld [vmem:[#allocation17_spill] sm:$0xff]  ;;  %v6678_v0 = vld [vmem:[#allocation116_spill] sm:$0xff] }
 0x67e   :  { %v1617_v14 = vadd.f32 %v6674_v7, %v1297_v41  ;;  %v1620_v47 = vadd.f32 %v6675_v54, %v1300_v18  ;;  %v1619_v46 = vadd.f32 %v6676_v36, %v1299_v39  ;;  %v1324_v10 = vadd.f32 %v6677_v22, %v1004_v50  ;;  %v6679_v8 = vld [vmem:[#allocation123_spill] sm:$0xff]  ;;  %v6680_v4 = vld [vmem:[#allocation124_spill] sm:$0xff]  ;;  %v6681_v25 = vld [vmem:[#allocation117_spill] sm:$0xff] }
 0x67f   :  { %v1323_v48 = vadd.f32 %v6678_v0, %v1003_v3  ;;  %v1622_v45 = vadd.f32 %v6679_v8, %v1302_v15  ;;  %v1621_v52 = vadd.f32 %v6680_v4, %v1301_v43  ;;  %v1326_v6 = vadd.f32 %v6681_v25, %v1006_v40  ;;  %v6682_v17 = vld [vmem:[#allocation118_spill] sm:$0xff]  ;;  %v6683_v26 = vld [vmem:[#allocation20_spill] sm:$0xff]  ;;  %v6684_v20 = vld [vmem:[#allocation125_spill] sm:$0xff] }
 0x680   :  { %v5706_v1 = vpop.permute.xlu1 %2837  ;;  %v5712_v21 = vpop.permute.xlu0 %2835  ;;  %v1325_v16 = vadd.f32 %v6682_v17, %v1005_v5  ;;  %v1624_v51 = vadd.f32 %v6683_v26, %v1304_v61  ;;  %v1623_v41 = vadd.f32 %v6684_v20, %v1303_v58  ;;  %v6685_v18 = vld [vmem:[#allocation126_spill] sm:$0xff]  ;;  %v6686_v12 = vld [vmem:[#allocation127_spill] sm:$0xff]  ;;  %v6687_v55 = vld [vmem:[#allocation64_spill] sm:$0xff] }
 0x681   :  { %v1626_v39 = vadd.f32 %v6685_v18, %v1306_v34  ;;  %v1625_v50 = vadd.f32 %v6686_v12, %v1305_v24  ;;  %v1960_v3 = vadd.f32 %v6687_v55, %v1616_v37  ;;  %v6688_v7 = vld [vmem:[#allocation65_spill] sm:$0xff]  ;;  %v6690_v43 = vld [vmem:[#allocation66_spill] sm:$0xff]  ;;  %v6691_v36 = vld [vmem:[#allocation67_spill] sm:$0xff] }
 0x682   :  { %v1959_v15 = vadd.f32 %v6688_v7, %v1615_v35  ;;  %v1962_v40 = vadd.f32 %v6690_v43, %v1618_v44  ;;  %v1961_v5 = vadd.f32 %v6691_v36, %v1617_v14  ;;  %v6692_v22 = vld [vmem:[#allocation68_spill] sm:$0xff]  ;;  %v6693_v0 = vld [vmem:[#allocation69_spill] sm:$0xff]  ;;  %v6696_v17 = vld [vmem:[#allocation70_spill] sm:$0xff] }
 0x683   :  { %v1964_v61 = vadd.f32 %v6692_v22, %v1620_v47  ;;  %v1963_v58 = vadd.f32 %v6693_v0, %v1619_v46  ;;  %v6694_v8 = vld [vmem:[#allocation128_spill] sm:$0xff]  ;;  %v6695_v25 = vld [vmem:[#allocation129_spill] sm:$0xff]  ;;  %v1966_v24 = vadd.f32 %v6696_v17, %v1622_v45  ;;  %v6697_v26 = vld [vmem:[#allocation71_spill] sm:$0xff] }
 0x684   :  { %v5726_v63 = vpop.permute.xlu1 %2841  ;;  %v5732_v60 = vpop.permute.xlu0 %2839  ;;  %v1628_v4 = vadd.f32 %v6694_v8, %v1308_v31  ;;  %v1627_v34 = vadd.f32 %v6695_v25, %v1307_v62  ;;  %v1965_v37 = vadd.f32 %v6697_v26, %v1621_v52  ;;  %v6698_v20 = vld [vmem:[#allocation130_spill] sm:$0xff]  ;;  %v6699_v18 = vld [vmem:[#allocation131_spill] sm:$0xff]  ;;  %v6700_v55 = vld [vmem:[#allocation72_spill] sm:$0xff] }
 0x685   :  { %v1630_v35 = vadd.f32 %v6698_v20, %v1310_v9  ;;  %v1629_v12 = vadd.f32 %v6699_v18, %v1309_v2  ;;  %v1968_v44 = vadd.f32 %v6700_v55, %v1624_v51  ;;  %v6701_v7 = vld [vmem:[#allocation79_spill] sm:$0xff]  ;;  %v6702_v47 = vld [vmem:[#allocation132_spill] sm:$0xff]  ;;  %v6703_v36 = vld [vmem:[#allocation133_spill] sm:$0xff] }
 0x686   :  { %v1967_v14 = vadd.f32 %v6701_v7, %v1623_v41  ;;  %v1632_v46 = vadd.f32 %v6702_v47, %v1312_v56  ;;  %v1631_v31 = vadd.f32 %v6703_v36, %v1311_v13  ;;  %v6704_v22 = vld [vmem:[#allocation80_spill] sm:$0xff]  ;;  %v6705_v0 = vld [vmem:[#allocation73_spill] sm:$0xff]  ;;  %v6706_v52 = vld [vmem:[#allocation134_spill] sm:$0xff] }
 0x687   :  { %v1970_v62 = vadd.f32 %v6704_v22, %v1626_v39  ;;  %v1969_v45 = vadd.f32 %v6705_v0, %v1625_v50  ;;  %v1634_v9 = vadd.f32 %v6706_v52, %v1314_v53  ;;  %v6707_v25 = vld [vmem:[#allocation135_spill] sm:$0xff]  ;;  %v6708_v17 = vld [vmem:[#allocation136_spill] sm:$0xff]  ;;  %v6709_v26 = vld [vmem:[#allocation137_spill] sm:$0xff] }
 0x688   :  { %v5746_v49 = vpop.permute.xlu1 %2845  ;;  %v5752_v54 = vpop.permute.xlu0 %2843  ;;  %v1633_v2 = vadd.f32 %v6707_v25, %v1313_v32  ;;  %v1636_v51 = vadd.f32 %v6708_v17, %v1316_v27  ;;  %v1635_v41 = vadd.f32 %v6709_v26, %v1315_v23  ;;  %v6710_v20 = vld [vmem:[#allocation138_spill] sm:$0xff]  ;;  %v6711_v55 = vld [vmem:[#allocation139_spill] sm:$0xff]  ;;  %v6713_v47 = vld [vmem:[#allocation81_spill] sm:$0xff] }
 0x689   :  { %6689 = vst [vmem:[#allocation29_spill] sm:$0xff] %v5752_v54  ;;  %v1638_v18 = vadd.f32 %v6710_v20, %v1318_v19  ;;  %v1637_v56 = vadd.f32 %v6711_v55, %v1317_v38  ;;  %v6712_v7 = vld [vmem:[#allocation74_spill] sm:$0xff]  ;;  %v1971_v39 = vadd.f32 %v6713_v47, %v1627_v34  ;;  %v6714_v36 = vld [vmem:[#allocation140_spill] sm:$0xff]  ;;  %v6715_v22 = vld [vmem:[#allocation141_spill] sm:$0xff] }
 0x68a   :  { %v1972_v13 = vadd.f32 %v6712_v7, %v1628_v4  ;;  %v1640_v50 = vadd.f32 %v6714_v36, %v1320_v30  ;;  %v1639_v0 = vadd.f32 %v6715_v22, %v1319_v33  ;;  %v6716_v54 = vld [vmem:[#allocation82_spill] sm:$0xff]  ;;  %v6717_v52 = vld [vmem:[#allocation83_spill] sm:$0xff]  ;;  %v6721_v26 = vld [vmem:[#allocation84_spill] sm:$0xff] }
 0x68b   :  { %v1974_v53 = vadd.f32 %v6716_v54, %v1630_v35  ;;  %v1973_v32 = vadd.f32 %v6717_v52, %v1629_v12  ;;  %v6719_v27 = vld [vmem:[#allocation142_spill] sm:$0xff]  ;;  %v6720_v17 = vld [vmem:[#allocation143_spill] sm:$0xff]  ;;  %v1976_v38 = vadd.f32 %v6721_v26, %v1632_v46  ;;  %v6724_v34 = vld [vmem:[#allocation85_spill] sm:$0xff] }
 0x68c   :  { %v5766_v43 = vpop.permute.xlu1 %2849  ;;  %v5772_v8 = vpop.permute.xlu0 %2847  ;;  %v1642_v23 = vadd.f32 %v6719_v27, %v1322_v29  ;;  %v1641_v19 = vadd.f32 %v6720_v17, %v1321_v11  ;;  %v6722_v20 = vld [vmem:[#allocation75_spill] sm:$0xff]  ;;  %v1978_v30 = vadd.f32 %v6724_v34, %v1634_v9  ;;  %v6725_v7 = vld [vmem:[#allocation86_spill] sm:$0xff]  ;;  %v6727_v35 = vld [vmem:[#allocation88_spill] sm:$0xff] }
 0x68d   :  { %v1975_v4 = vadd.f32 %v6722_v20, %v1631_v31  ;;  %v1977_v33 = vadd.f32 %v6725_v7, %v1633_v2  ;;  %v6726_v47 = vld [vmem:[#allocation87_spill] sm:$0xff]  ;;  %v1979_v12 = vadd.f32 %v6727_v35, %v1635_v41  ;;  %v6728_v36 = vld [vmem:[#allocation144_spill] sm:$0xff]  ;;  %v6729_v52 = vld [vmem:[#allocation145_spill] sm:$0xff] }
 0x68e   :  { %v1980_v54 = vadd.f32 %v6726_v47, %v1636_v51  ;;  %v1644_v22 = vadd.f32 %v6728_v36, %v1324_v10  ;;  %v1643_v29 = vadd.f32 %v6729_v52, %v1323_v48  ;;  %v6730_v27 = vld [vmem:[#allocation89_spill] sm:$0xff]  ;;  %v6731_v17 = vld [vmem:[#allocation90_spill] sm:$0xff]  ;;  %v6733_v20 = vld [vmem:[#allocation147_spill] sm:$0xff] }
 0x68f   :  { %v1982_v11 = vadd.f32 %v6730_v27, %v1638_v18  ;;  %v1981_v46 = vadd.f32 %v6731_v17, %v1637_v56  ;;  %v6732_v26 = vld [vmem:[#allocation146_spill] sm:$0xff]  ;;  %v6735_v34 = vld [vmem:[#allocation92_spill] sm:$0xff]  ;;  %v6738_v47 = vld [vmem:[#allocation149_spill] sm:$0xff] }
 0x690   :  { %v5786_v25 = vpop.permute.xlu1 %2853  ;;  %v5792_v55 = vpop.permute.xlu0 %2851  ;;  %v1646_v31 = vadd.f32 %v6732_v26, %v1326_v6  ;;  %v1983_v2 = vadd.f32 %v6735_v34, %v1639_v0  ;;  %v6737_v51 = vld [vmem:[#allocation148_spill] sm:$0xff]  ;;  %v1987_v10 = vadd.f32 %v6738_v47, %v1643_v29  ;;  %v6739_v35 = vld [vmem:[#allocation93_spill] sm:$0xff]  ;;  %v6740_v36 = vld [vmem:[#allocation94_spill] sm:$0xff] }
 0x691   :  { %6718 = vst [vmem:[#allocation30_spill] sm:$0xff] %v5786_v25  ;;  %6723 = vst [vmem:[#allocation31_spill] sm:$0xff] %v5792_v55  ;;  %v1645_v55 = vadd.f32 %v6733_v20, %v1325_v16  ;;  %v6734_v25 = vld [vmem:[#allocation91_spill] sm:$0xff]  ;;  %v1988_v41 = vadd.f32 %v6737_v51, %v1644_v22  ;;  %v1986_v48 = vadd.f32 %v6739_v35, %v1642_v23  ;;  %v6742_v56 = vld [vmem:[#allocation150_spill] sm:$0xff] }
 0x692   :  { %v1984_v9 = vadd.f32 %v6734_v25, %v1640_v50  ;;  %v1985_v18 = vadd.f32 %v6740_v36, %v1641_v19  ;;  %v1990_v6 = vadd.f32 %v6742_v56, %v1646_v31  ;;  %v6743_v27 = vld [vmem:[#allocation151_spill] sm:$0xff]  ;;  %v6744_v17 = vld [vmem:[#allocation152_spill] sm:$0xff]  ;;  %v6745_v25 = vld [vmem:[#allocation153_spill] sm:$0xff] }
 0x693   :  { %v1989_v16 = vadd.f32 %v6743_v27, %v1645_v55  ;;  %v2280_v50 = vadd.f32 %v6744_v17, %v1960_v3  ;;  %v2279_v0 = vadd.f32 %v6745_v25, %v1959_v15  ;;  %v6746_v26 = vld [vmem:[#allocation154_spill] sm:$0xff]  ;;  %v6747_v34 = vld [vmem:[#allocation155_spill] sm:$0xff]  ;;  %v6748_v51 = vld [vmem:[#allocation156_spill] sm:$0xff] }
 0x694   :  { %v5806_v7 = vpop.permute.xlu1 %2857  ;;  %v5812_v52 = vpop.permute.xlu0 %2855  ;;  %v2282_v20 = vadd.f32 %v6746_v26, %v1962_v40  ;;  %v2281_v22 = vadd.f32 %v6747_v34, %v1961_v5  ;;  %v2284_v29 = vadd.f32 %v6748_v51, %v1964_v61  ;;  %v6749_v47 = vld [vmem:[#allocation157_spill] sm:$0xff]  ;;  %v6750_v35 = vld [vmem:[#allocation158_spill] sm:$0xff]  ;;  %v6751_v36 = vld [vmem:[#allocation159_spill] sm:$0xff] }
 0x695   :  { %6736 = vst [vmem:[#allocation32_spill] sm:$0xff] %v5806_v7  ;;  %6741 = vst [vmem:[#allocation33_spill] sm:$0xff] %v5812_v52  ;;  %v2283_v23 = vadd.f32 %v6749_v47, %v1963_v58  ;;  %v2286_v19 = vadd.f32 %v6750_v35, %v1966_v24  ;;  %v2285_v52 = vadd.f32 %v6751_v36, %v1965_v37  ;;  %v6752_v7 = vld [vmem:[#allocation160_spill] sm:$0xff]  ;;  %v6753_v56 = vld [vmem:[#allocation161_spill] sm:$0xff] }
 0x696   :  { %v2288_v31 = vadd.f32 %v6752_v7, %v1968_v44  ;;  %v2287_v55 = vadd.f32 %v6753_v56, %v1967_v14  ;;  %v6755_v3 = vld [vmem:[#allocation162_spill] sm:$0xff]  ;;  %v6756_v17 = vld [vmem:[#allocation163_spill] sm:$0xff]  ;;  %v6757_v25 = vld [vmem:[#allocation164_spill] sm:$0xff] }
 0x697   :  { %v2290_v15 = vadd.f32 %v6755_v3, %v1970_v62  ;;  %v2289_v40 = vadd.f32 %v6756_v17, %v1969_v45  ;;  %v2292_v5 = vadd.f32 %v6757_v25, %v1972_v13  ;;  %v6758_v26 = vld [vmem:[#allocation165_spill] sm:$0xff]  ;;  %v6760_v58 = vld [vmem:[#allocation166_spill] sm:$0xff]  ;;  %v6761_v51 = vld [vmem:[#allocation167_spill] sm:$0xff] }
 0x698   :  { %v5826_v27 = vpop.permute.xlu1 %2861  ;;  %v2291_v61 = vadd.f32 %v6758_v26, %v1971_v39  ;;  %v5832_v34 = vpop.permute.xlu0 %2859  ;;  %v2294_v24 = vadd.f32 %v6760_v58, %v1974_v53  ;;  %v2293_v37 = vadd.f32 %v6761_v51, %v1973_v32  ;;  %v6762_v47 = vld [vmem:[#allocation168_spill] sm:$0xff]  ;;  %v6763_v7 = vld [vmem:[#allocation169_spill] sm:$0xff]  ;;  %v6764_v35 = vld [vmem:[#allocation170_spill] sm:$0xff] }
 0x699   :  { %6754 = vst [vmem:[#allocation34_spill] sm:$0xff] %v5826_v27  ;;  %6759 = vst [vmem:[#allocation35_spill] sm:$0xff] %v5832_v34  ;;  %v2296_v44 = vadd.f32 %v6762_v47, %v1976_v38  ;;  %v2295_v14 = vadd.f32 %v6763_v7, %v1975_v4  ;;  %v2298_v36 = vadd.f32 %v6764_v35, %v1978_v30  ;;  %v6765_v56 = vld [vmem:[#allocation171_spill] sm:$0xff]  ;;  %v6766_v3 = vld [vmem:[#allocation172_spill] sm:$0xff] }
 0x69a   :  { %v2297_v62 = vadd.f32 %v6765_v56, %v1977_v33  ;;  %v2300_v45 = vadd.f32 %v6766_v3, %v1980_v54  ;;  %v6767_v17 = vld [vmem:[#allocation173_spill] sm:$0xff]  ;;  %v6768_v25 = vld [vmem:[#allocation174_spill] sm:$0xff]  ;;  %v6769_v26 = vld [vmem:[#allocation175_spill] sm:$0xff] }
 0x69b   :  { %v2299_v13 = vadd.f32 %v6767_v17, %v1979_v12  ;;  %v2302_v39 = vadd.f32 %v6768_v25, %v1982_v11  ;;  %v2301_v34 = vadd.f32 %v6769_v26, %v1981_v46  ;;  %v6770_v27 = vld [vmem:[#allocation176_spill] sm:$0xff]  ;;  %v6771_v58 = vld [vmem:[#allocation177_spill] sm:$0xff]  ;;  %v6773_v38 = vld [vmem:[#allocation178_spill] sm:$0xff] }
 0x69c   :  { %v2304_v53 = vadd.f32 %v6770_v27, %v1984_v9  ;;  %v2303_v32 = vadd.f32 %v6771_v58, %v1983_v2  ;;  %v5846_v51 = vpop.permute.xlu1 %2865  ;;  %v2306_v4 = vadd.f32 %v6773_v38, %v1986_v48  ;;  %v6774_v47 = vld [vmem:[#allocation179_spill] sm:$0xff]  ;;  %v6775_v7 = vld [vmem:[#allocation180_spill] sm:$0xff]  ;;  %v6776_v35 = vld [vmem:[#allocation181_spill] sm:$0xff]  ;;  %v5852_v56 = vpop.permute.xlu0 %2863 }
 0x69d   :  { %6772 = vst [vmem:[#allocation36_spill] sm:$0xff] %v5846_v51  ;;  %v2305_v30 = vadd.f32 %v6774_v47, %v1985_v18  ;;  %v2308_v33 = vadd.f32 %v6775_v7, %v1988_v41  ;;  %v2307_v54 = vadd.f32 %v6776_v35, %v1987_v10  ;;  %6777 = vst [vmem:[#allocation37_spill] sm:$0xff] %v5852_v56  ;;  %v6778_v12 = vld [vmem:[#allocation182_spill] sm:$0xff]  ;;  %v6779_v3 = vld [vmem:[#allocation183_spill] sm:$0xff] }
 0x69e   :  { %v2310_v11 = vadd.f32 %v6778_v12, %v1990_v6  ;;  %v2309_v46 = vadd.f32 %v6779_v3, %v1989_v16  ;;  %v6780_v17 = vld [vmem:[#allocation184_spill] sm:$0xff]  ;;  %v6781_v27 = vld [vmem:[#allocation185_spill] sm:$0xff]  ;;  %v6782_v25 = vld [vmem:[#allocation186_spill] sm:$0xff] }
 0x69f   :  { %v2600_v9 = vadd.f32 %v6780_v17, %v2280_v50  ;;  %v2599_v2 = vadd.f32 %v6781_v27, %v2279_v0  ;;  %v2602_v26 = vadd.f32 %v6782_v25, %v2282_v20  ;;  %v6783_v58 = vld [vmem:[#allocation187_spill] sm:$0xff]  ;;  %v6784_v38 = vld [vmem:[#allocation188_spill] sm:$0xff]  ;;  %v6785_v47 = vld [vmem:[#allocation189_spill] sm:$0xff] }
 0x6a0   :  { %v2601_v48 = vadd.f32 %v6783_v58, %v2281_v22  ;;  %v2604_v18 = vadd.f32 %v6784_v38, %v2284_v29  ;;  %v2603_v41 = vadd.f32 %v6785_v47, %v2283_v23  ;;  %v6786_v7 = vld [vmem:[#allocation190_spill] sm:$0xff]  ;;  %v6787_v35 = vld [vmem:[#allocation191_spill] sm:$0xff]  ;;  %v6788_v51 = vld [vmem:[#allocation192_spill] sm:$0xff]  ;;  %v5866_v3 = vpop.permute.xlu1 %2869  ;;  %v5872_v58 = vpop.permute.xlu0 %2867 }
 0x6a1   :  { %v2606_v10 = vadd.f32 %v6786_v7, %v2286_v19  ;;  %v2605_v56 = vadd.f32 %v6787_v35, %v2285_v52  ;;  %v2608_v6 = vadd.f32 %v6788_v51, %v2288_v31  ;;  %v6789_v12 = vld [vmem:[#allocation193_spill] sm:$0xff]  ;;  %v6790_v50 = vld [vmem:[#allocation194_spill] sm:$0xff]  ;;  %v6791_v17 = vld [vmem:[#allocation195_spill] sm:$0xff] }
 0x6a2   :  { %v2607_v16 = vadd.f32 %v6789_v12, %v2287_v55  ;;  %v2610_v0 = vadd.f32 %v6790_v50, %v2290_v15  ;;  %v2609_v20 = vadd.f32 %v6791_v17, %v2289_v40  ;;  %v6792_v27 = vld [vmem:[#allocation196_spill] sm:$0xff]  ;;  %v6793_v25 = vld [vmem:[#allocation197_spill] sm:$0xff]  ;;  %v6794_v23 = vld [vmem:[#allocation198_spill] sm:$0xff] }
 0x6a3   :  { %v2612_v22 = vadd.f32 %v6792_v27, %v2292_v5  ;;  %v2611_v29 = vadd.f32 %v6793_v25, %v2291_v61  ;;  %v2614_v19 = vadd.f32 %v6794_v23, %v2294_v24  ;;  %v6795_v38 = vld [vmem:[#allocation199_spill] sm:$0xff]  ;;  %v6796_v47 = vld [vmem:[#allocation200_spill] sm:$0xff]  ;;  %v6797_v51 = vld [vmem:[#allocation201_spill] sm:$0xff]  ;;  %v5886_v61 = vadd.f32 %v5726_v63, %v2608_v6 }
 0x6a4   :  { %v2613_v52 = vadd.f32 %v6795_v38, %v2293_v37  ;;  %v2616_v31 = vadd.f32 %v6796_v47, %v2296_v44  ;;  %v2615_v55 = vadd.f32 %v6797_v51, %v2295_v14  ;;  %v6798_v7 = vld [vmem:[#allocation202_spill] sm:$0xff]  ;;  %v6799_v15 = vld [vmem:[#allocation203_spill] sm:$0xff]  ;;  %v6800_v40 = vld [vmem:[#allocation204_spill] sm:$0xff]  ;;  %v5896_v14 = vadd.f32 %v5732_v60, %v2607_v16 }
 0x6a5   :  { %v5879_v35 = vadd.f32 %v6798_v7, %v2298_v36  ;;  %v5882_v12 = vadd.f32 %v6799_v15, %v2297_v62  ;;  %v2620_v5 = vadd.f32 %v6800_v40, %v2300_v45  ;;  %v6801_v50 = vld [vmem:[#allocation205_spill] sm:$0xff]  ;;  %v6802_v24 = vld [vmem:[#allocation206_spill] sm:$0xff]  ;;  %v6803_v37 = vld [vmem:[#allocation207_spill] sm:$0xff]  ;;  %v2874_v36 = vpop.permute.xlu1 %2873 }
 0x6a6   :  { %v2619_v17 = vadd.f32 %v6801_v50, %v2299_v13  ;;  %v5890_v27 = vadd.f32 %v6802_v24, %v2302_v39  ;;  %v5893_v44 = vadd.f32 %v6803_v37, %v2301_v34  ;;  %v6804_v25 = vld [vmem:[#allocation208_spill] sm:$0xff]  ;;  %v6805_v23 = vld [vmem:[#allocation209_spill] sm:$0xff]  ;;  %v6806_v45 = vld [vmem:[#allocation210_spill] sm:$0xff]  ;;  %v2872_v13 = vpop.permute.xlu0 %2871 }
 0x6a7   :  { %v2624_v62 = vadd.f32 %v6804_v25, %v2304_v53  ;;  %v2623_v38 = vadd.f32 %v6805_v23, %v2303_v32  ;;  %v2626_v47 = vadd.f32 %v6806_v45, %v2306_v4  ;;  %v6807_v63 = vld [vmem:[#allocation27_spill] sm:$0xff]  ;;  %v6809_v7 = vld [vmem:[#allocation213_spill] sm:$0xff]  ;;  %v6810_v34 = vld [vmem:[#allocation214_spill] sm:$0xff]  ;;  %v5915_v4 = vadd.f32 %v5766_v43, %v2612_v22 }
 0x6a8   :  { %v5902_v6 = vadd.f32 %v6807_v63, %v2600_v9  ;;  %v6808_v51 = vld [vmem:[#allocation211_spill] sm:$0xff]  ;;  %v2628_v15 = vadd.f32 %v6809_v7, %v2308_v33  ;;  %v2627_v40 = vadd.f32 %v6810_v34, %v2307_v54  ;;  %v6811_v50 = vld [vmem:[#allocation28_spill] sm:$0xff]  ;;  %v6812_v16 = vld [vmem:[#allocation25_spill] sm:$0xff]  ;;  %v5918_v9 = vadd.f32 %v5666_v59, %v2602_v26 }
 0x6a9   :  { %v2625_v39 = vadd.f32 %v6808_v51, %v2305_v30  ;;  %v5908_v60 = vadd.f32 %v6811_v50, %v2599_v2  ;;  %v2630_v24 = vadd.f32 %v6812_v16, %v2310_v11  ;;  %v6813_v53 = vld [vmem:[#allocation26_spill] sm:$0xff]  ;;  %v5921_v30 = vadd.f32 %v5672_v28, %v2601_v48  ;;  %v2878_v11 = vpop.permute.xlu1 %2877  ;;  %v6822_v23 = vld [vmem:[#allocation36_spill] sm:$0xff] }
 0x6aa   :  { %v2629_v37 = vadd.f32 %v6813_v53, %v2309_v46  ;;  %v3089_v32 = vcombine.low %v5902_v6, %v5886_v61  ;;  %v5926_v54 = vadd.f32 %v5772_v8, %v2611_v29  ;;  %v5929_v46 = vadd.f32 %v5686_v57, %v2604_v18  ;;  %v2876_v28 = vpop.permute.xlu0 %2875  ;;  %v6815_v8 = vld [vmem:[#allocation29_spill] sm:$0xff]  ;;  %v6817_v18 = vld [vmem:[#allocation215_spill] sm:$0xff]  ;;  %v6819_v29 = vld [vmem:[#allocation32_spill] sm:$0xff] }
 0x6ab   :  { %6814 = vst [vmem:[#allocation38_spill] sm:$0xff] %v5921_v30  ;;  %v2953_v33 = vcombine.low %v5908_v60, %v5896_v14  ;;  %v5932_v2 = vadd.f32 %v5692_v42, %v2603_v41  ;;  %v5935_v43 = vadd.f32 %v5746_v49, %v2610_v0  ;;  %v5937_v59 = vadd.f32 %v2874_v36, %v2624_v62  ;;  %v6818_v41 = vld [vmem:[#allocation30_spill] sm:$0xff]  ;;  %v6821_v36 = vld [vmem:[#allocation33_spill] sm:$0xff] }
 0x6ac   :  { %v5940_v26 = vadd.f32 %v5706_v1, %v2606_v10  ;;  %v5943_v48 = vadd.f32 %v5712_v21, %v2605_v56  ;;  %v5946_v22 = vadd.f32 %v6815_v8, %v2609_v20  ;;  %v5948_v57 = vadd.f32 %v2872_v13, %v2623_v38  ;;  %v6820_v10 = vld [vmem:[#allocation31_spill] sm:$0xff]  ;;  %v6823_v13 = vld [vmem:[#allocation37_spill] sm:$0xff] }
 0x6ad   :  { %v5951_v42 = vrot.slane %v3089_v32, %v6817_v18  ;;  %v3105_v49 = vcombine.low %v5929_v46, %v5915_v4  ;;  %v5956_v0 = vadd.f32 %v6818_v41, %v2614_v19  ;;  %v5959_v1 = vadd.f32 %v6819_v29, %v2616_v31  ;;  %v2882_v62 = vpop.permute.xlu1 %2881  ;;  %v6825_v29 = vld [vmem:[#allocation35_spill] sm:$0xff] }
 0x6ae   :  { %6816 = vst [vmem:[#allocation39_spill] sm:$0xff] %v5946_v22  ;;  %v5962_v21 = vrot.slane %v2953_v33, %v6817_v18  ;;  %v2969_v56 = vcombine.low %v5932_v2, %v5926_v54  ;;  %v5967_v20 = vadd.f32 %v6820_v10, %v2613_v52  ;;  %v5970_v25 = vadd.f32 %v6821_v36, %v2615_v55  ;;  %v2880_v63 = vpop.permute.xlu0 %2879  ;;  %v6824_v33 = vld [vmem:[#allocation34_spill] sm:$0xff] }
 0x6af   :  { %v3361_v19 = vcombine.low %v5918_v9, %v5935_v43  ;;  %v5975_v38 = vadd.f32 %v6822_v23, %v2620_v5  ;;  %v3121_v31 = vcombine.low %v5959_v1, %v5937_v59  ;;  %v5979_v45 = vadd.f32 %v2882_v62, %v2628_v15 }
 0x6b0   :  { %v3225_v52 = vcombine.low %v5921_v30, %v5946_v22  ;;  %v5984_v51 = vadd.f32 %v6823_v13, %v2619_v17  ;;  %v2985_v55 = vcombine.low %v5970_v25, %v5948_v57  ;;  %v5988_v7 = vadd.f32 %v2880_v63, %v2627_v40  ;;  %v6826_v63 = vld [vmem:[#allocation12_spill] sm:$0xff] }
 0x6b1   :  { %v5991_v5 = vrot.slane %v3105_v49, %v6817_v18  ;;  %v3377_v34 = vcombine.low %v5940_v26, %v5956_v0  ;;  %v5995_v15 = vadd.f32 %v2878_v11, %v2626_v47  ;;  %v3137_v50 = vcombine.low %v5975_v38, %v5979_v45  ;;  %v2886_v32 = vpop.permute.xlu1 %2885  ;;  %v6827_v13 = vld [vmem:[#allocation212_spill] sm:$0xff] }
 0x6b2   :  { %v6000_v16 = vrot.slane %v2969_v56, %v6817_v18  ;;  %v3241_v17 = vcombine.low %v5943_v48, %v5967_v20  ;;  %v6004_v53 = vadd.f32 %v2876_v28, %v2625_v39  ;;  %v3001_v40 = vcombine.low %v5984_v51, %v5988_v7  ;;  %v2884_v41 = vpop.permute.xlu0 %2883 }
 0x6b3   :  { %v6010_v8 = vadd.f32 %v6824_v33, %v5879_v35  ;;  %v3129_v47 = vrot.slane %v3121_v31, %v6817_v18  ;;  %v3145_v11 = vrot.slane %v3137_v50, %v6817_v18  ;;  %v6014_v49 = vadd.f32 %v2886_v32, %v2630_v24 }
 0x6b4   :  { %v6018_v56 = vadd.f32 %v6825_v29, %v5882_v12  ;;  %v2993_v39 = vrot.slane %v2985_v55, %v6817_v18  ;;  %v3009_v28 = vrot.slane %v3001_v40, %v6817_v18  ;;  %v6022_v10 = vadd.f32 %v2884_v41, %v2629_v37 }
 0x6b5   :  { %v3385_v35 = vrot.slane %v3377_v34, %v6817_v18  ;;  %v6027_v36 = vadd.f32 %v5866_v3, %v5890_v27  ;;  %v3393_v24 = vcombine.low %v6010_v8, %v5995_v15  ;;  %v3185_v62 = vcombine.low %v3129_v47, %v3145_v11 }
 0x6b6   :  { %v6032_v23 = vrot.slane %v3241_v17, %v6817_v18  ;;  %v6036_v12 = vadd.f32 %v5872_v58, %v5893_v44  ;;  %v3257_v37 = vcombine.low %v6018_v56, %v6004_v53  ;;  %v3049_v31 = vcombine.low %v2993_v39, %v3009_v28 }
 0x6b7   :  { %v6828_v55 = vunpack.c.0.s8 %v6827_v13  ;;  %v3153_v27 = vcombine.low %v5951_v42, %v5991_v5  ;;  %v3017_v34 = vcombine.low %v5962_v21, %v6000_v16  ;;  %v3409_v50 = vcombine.low %v6027_v36, %v6014_v49 }
 0x6b8   :  { %v3369_v58 = vrot.slane %v3361_v19, %v6817_v18  ;;  %v3233_v44 = vrot.slane %v3225_v52, %v6817_v18  ;;  %v3273_v17 = vcombine.low %v6036_v12, %v6022_v10  ;;  %v3401_v40 = vrot.slane %v3393_v24, %v6817_v18 }
 0x6b9   :  { %v6043_v3 = vsub.s32 %v6828_v55, %v6826_v63  ;;  %v3417_v32 = vrot.slane %v3409_v50, %v6817_v18  ;;  %v3265_v19 = vrot.slane %v3257_v37, %v6817_v18  ;;  %v3050_v30 = vcombine.high %v2993_v39, %v3009_v28 }
 0x6ba   :  { %v3425_v29 = vcombine.low %v3369_v58, %v3385_v35  ;;  %v3289_v63 = vcombine.low %v3233_v44, %v6032_v23  ;;  %v3281_v52 = vrot.slane %v3273_v17, %v6817_v18 }
 0x6bb   :  { %v6058_v33 = vrot.slane %v3185_v62, %v6043_v3  ;;  %v6061_v41 = vrot.slane %v3049_v31, %v6043_v3  ;;  %v3457_v13 = vcombine.low %v3401_v40, %v3417_v32  ;;  %v6067_v55 = vrot.slane %v3153_v27, %v6043_v3 }
 0x6bc   :  { %v6070_v24 = vrot.slane %v3017_v34, %v6043_v3  ;;  %v3090_v62 = vcombine.high %v5902_v6, %v5886_v61  ;;  %v3321_v50 = vcombine.low %v3265_v19, %v3281_v52  ;;  %v3186_v31 = vcombine.high %v3129_v47, %v3145_v11 }
 0x6bd   :  { %v3218_v22 = vcombine.high %v6067_v55, %v6058_v33  ;;  %v6079_v17 = vrot.slane %v3425_v29, %v6043_v3  ;;  %v6082_v27 = vrot.slane %v3457_v13, %v6043_v3  ;;  %v6085_v34 = vrot.slane %v3289_v63, %v6043_v3 }
 0x6be   :  { %v3082_v37 = vcombine.high %v6070_v24, %v6061_v41  ;;  %v6088_v61 = vrot.slane %v3321_v50, %v6043_v3  ;;  %v3154_v6 = vcombine.high %v5951_v42, %v5991_v5  ;;  %v3018_v47 = vcombine.high %v5962_v21, %v6000_v16 }
 0x6bf   :  { %3526 = vrot.lane.b32.xlu1 %v3218_v22, %s3845_s29  ;;  %v3426_v11 = vcombine.high %v3369_v58, %v3385_v35  ;;  %v3490_v39 = vcombine.high %v6079_v17, %v6082_v27  ;;  %v3458_v29 = vcombine.high %v3401_v40, %v3417_v32  ;;  %v3322_v63 = vcombine.high %v3265_v19, %v3281_v52 }
 0x6c0   :  { %3498 = vrot.lane.b32.xlu0 %v3082_v37, %s3845_s29  ;;  %v3354_v28 = vcombine.high %v6085_v34, %v6088_v61  ;;  %v3200_v13 = vrot.slane %v3186_v31, %v6043_v3  ;;  %v3064_v42 = vrot.slane %v3050_v30, %v6043_v3  ;;  %v6103_v5 = vrot.slane %v3090_v62, %v6817_v18 }
 0x6c1   :  { %v2954_v22 = vcombine.high %v5908_v60, %v5896_v14  ;;  %v3106_v21 = vcombine.high %v5929_v46, %v5915_v4  ;;  %v3290_v16 = vcombine.high %v3233_v44, %v6032_v23  ;;  %v3168_v35 = vrot.slane %v3154_v6, %v6043_v3 }
 0x6c2   :  { %v3032_v58 = vrot.slane %v3018_v47, %v6043_v3  ;;  %v2970_v30 = vcombine.high %v5932_v2, %v5926_v54  ;;  %v3138_v40 = vcombine.high %v5975_v38, %v5979_v45  ;;  %v3002_v14 = vcombine.high %v5984_v51, %v5988_v7 }
 0x6c3   :  { %3582 = vrot.lane.b32.xlu1 %v3490_v39, %s3845_s29  ;;  %v3440_v60 = vrot.slane %v3426_v11, %v6043_v3  ;;  %v3219_v4 = vcombine.low %v3168_v35, %v3200_v13  ;;  %v3472_v23 = vrot.slane %v3458_v29, %v6043_v3  ;;  %v3336_v44 = vrot.slane %v3322_v63, %v6043_v3 }
 0x6c4   :  { %3554 = vrot.lane.b32.xlu0 %v3354_v28, %s3845_s29  ;;  %v3083_v46 = vcombine.low %v3032_v58, %v3064_v42  ;;  %v3122_v32 = vcombine.high %v5959_v1, %v5937_v59  ;;  %v2986_v54 = vcombine.high %v5970_v25, %v5948_v57  ;;  %v3217_v2 = vcombine.low %v6067_v55, %v6058_v33  ;;  %s3859_s29 = smov [#allocation8]  }
 0x6c5   :  { %v3081_v38 = vcombine.low %v6070_v24, %v6061_v41  ;;  %v3304_v45 = vrot.slane %v3290_v16, %v6043_v3  ;;  %v3489_v51 = vcombine.low %v6079_v17, %v6082_v27  ;;  %v3353_v59 = vcombine.low %v6085_v34, %v6088_v61  ;;  %s3653_s13 = sshll.u32 %s3859_s29, 4  ;;  %s3654_s13 = int_to_ptr.vmem [resolvable:$true] %s3653_s13 }
 0x6c6   :  { %v6139_v57 = vrot.slane %v2954_v22, %v6817_v18  ;;  %v6142_v1 = vrot.slane %v3106_v21, %v6817_v18  ;;  %v6145_v25 = vrot.slane %v3138_v40, %v6817_v18  ;;  %v6148_v7 = vrot.slane %v3002_v14, %v6817_v18  ;;  %s3815_s14 = scalar_lea.vmem %s3654_s13, 768  ;;  %p3820_p11 = scmp.lt.s32.totalorder %s3654_s13, %s3654_s13 }
 0x6c7   :  { %3530 = vrot.lane.b32.xlu1 %v3219_v4, %s3849_s28  ;;  %v3410_v19 = vcombine.high %v6027_v36, %v6014_v49  ;;  %v3274_v52 = vcombine.high %v6036_v12, %v6022_v10  ;;  %v3491_v62 = vcombine.low %v3440_v60, %v3472_v23  ;;  %v3355_v50 = vcombine.low %v3304_v45, %v3336_v44  ;;  %v6830_v36 = vld [vmem:[#allocation38_spill] sm:$0xff]  ;;  %p3816_p10 = scmp.ne.s32.totalorder %s3654_s13, %s3815_s14  ;;  %p3821_p12 = scmp.lt.s32.totalorder %s3815_s14, %s3815_s14 }
 0x6c8   :  { %3502 = vrot.lane.b32.xlu0 %v3083_v46, %s3849_s28  ;;  %v6155_v31 = vrot.slane %v2970_v30, %v6817_v18  ;;  %v3378_v37 = vcombine.high %v5940_v26, %v5956_v0  ;;  %v3136_v6 = vrot.slane %v3122_v32, %v6817_v18  ;;  %v3000_v47 = vrot.slane %v2986_v54, %v6817_v18  ;;  %v6829_v0 = vld [vmem:[#allocation39_spill] sm:$0xff] }
 0x6c9   :  { %v3242_v11 = vcombine.high %v5943_v48, %v5967_v20  ;;  %v3394_v49 = vcombine.high %v6010_v8, %v5995_v15  ;;  %v3258_v10 = vcombine.high %v6018_v56, %v6004_v53  ;;  %v3362_v26 = vcombine.high %v5918_v9, %v5935_v43  ;;  %p3822_p13 = por %p3821_p12, %p3820_p11 }
 0x6ca   :  { %v3226_v12 = vcombine.high %v6830_v36, %v6829_v0  ;;  %v3201_v39 = vcombine.low %v3136_v6, %v6145_v25  ;;  %v3065_v48 = vcombine.low %v3000_v47, %v6148_v7  ;;  %v3424_v20 = vrot.slane %v3410_v19, %v6817_v18 }
 0x6cb   :  { %3586 = vrot.lane.b32.xlu1 %v3491_v62, %s3849_s28  ;;  %v3288_v15 = vrot.slane %v3274_v52, %v6817_v18  ;;  %v3220_v8 = vcombine.high %v3168_v35, %v3200_v13  ;;  %v3084_v53 = vcombine.high %v3032_v58, %v3064_v42  ;;  %v3169_v56 = vcombine.low %v6103_v5, %v6142_v1  ;;  %p3823_p0 = pnand %p3822_p13, %p3816_p10 }
 0x6cc   :  { %3558 = vrot.lane.b32.xlu0 %v3355_v50, %s3849_s28  ;;  %v3033_v28 = vcombine.low %v6139_v57, %v6155_v31  ;;  %v3392_v9 = vrot.slane %v3378_v37, %v6817_v18  ;;  %v3256_v43 = vrot.slane %v3242_v11, %v6817_v18  ;;  %v3408_v29 = vrot.slane %v3394_v49, %v6817_v18 }
 0x6cd   :  { %v3272_v63 = vrot.slane %v3258_v10, %v6817_v18  ;;  %v3376_v13 = vrot.slane %v3362_v26, %v6817_v18  ;;  %v3240_v42 = vrot.slane %v3226_v12, %v6817_v18  ;;  %v3209_v22 = vrot.slane %v3201_v39, %v6043_v3 }
 0x6ce   :  { %v3073_v21 = vrot.slane %v3065_v48, %v6043_v3  ;;  %v3473_v16 = vcombine.low %v3408_v29, %v3424_v20  ;;  %v3492_v58 = vcombine.high %v3440_v60, %v3472_v23  ;;  %v3356_v30 = vcombine.high %v3304_v45, %v3336_v44 }
 0x6cf   :  { %3534 = vrot.lane.b32.xlu1 %v3220_v8, %s3856_s12  ;;  %v3337_v35 = vcombine.low %v3272_v63, %v3288_v15  ;;  %v3177_v40 = vrot.slane %v3169_v56, %v6043_v3  ;;  %v3041_v14 = vrot.slane %v3033_v28, %v6043_v3  ;;  %v3441_v4 = vcombine.low %v3376_v13, %v3392_v9 }
 0x6d0   :  { %3506 = vrot.lane.b32.xlu0 %v3084_v53, %s3856_s12  ;;  %v3305_v46 = vcombine.low %v3240_v42, %v3256_v43  ;;  %v3481_v18 = vrot.slane %v3473_v16, %v6043_v3  ;;  %v3202_v45 = vcombine.high %v3136_v6, %v6145_v25  ;;  %v3066_v62 = vcombine.high %v3000_v47, %v6148_v7 }
 0x6d1   :  { %v3345_v32 = vrot.slane %v3337_v35, %v6043_v3  ;;  %v3221_v54 = vcombine.low %v3177_v40, %v3209_v22  ;;  %v3085_v19 = vcombine.low %v3041_v14, %v3073_v21  ;;  %v3449_v52 = vrot.slane %v3441_v4, %v6043_v3 }
 0x6d2   :  { %v3313_v60 = vrot.slane %v3305_v46, %v6043_v3  ;;  %v3222_v50 = vcombine.high %v3177_v40, %v3209_v22  ;;  %v3086_v37 = vcombine.high %v3041_v14, %v3073_v21  ;;  %v3170_v11 = vcombine.high %v6103_v5, %v6142_v1 }
 0x6d3   :  { %3590 = vrot.lane.b32.xlu1 %v3492_v58, %s3856_s12  ;;  %v3493_v23 = vcombine.low %v3449_v52, %v3481_v18  ;;  %v3034_v49 = vcombine.high %v6139_v57, %v6155_v31  ;;  %v3216_v10 = vrot.slane %v3202_v45, %v6043_v3  ;;  %v3080_v26 = vrot.slane %v3066_v62, %v6043_v3 }
 0x6d4   :  { %3562 = vrot.lane.b32.xlu0 %v3356_v30, %s3856_s12  ;;  %v3357_v44 = vcombine.low %v3313_v60, %v3345_v32  ;;  %v3474_v0 = vcombine.high %v3408_v29, %v3424_v20  ;;  %v3338_v25 = vcombine.high %v3272_v63, %v3288_v15  ;;  %v3494_v6 = vcombine.high %v3449_v52, %v3481_v18 }
 0x6d5   :  { %v3358_v7 = vcombine.high %v3313_v60, %v3345_v32  ;;  %v3184_v47 = vrot.slane %v3170_v11, %v6043_v3  ;;  %v3048_v36 = vrot.slane %v3034_v49, %v6043_v3  ;;  %v3442_v5 = vcombine.high %v3376_v13, %v3392_v9 }
 0x6d6   :  { %v3306_v1 = vcombine.high %v3240_v42, %v3256_v43  ;;  %v3488_v57 = vrot.slane %v3474_v0, %v6043_v3  ;;  %v3352_v31 = vrot.slane %v3338_v25, %v6043_v3 }
 0x6d7   :  { %3538 = vrot.lane.b32.xlu1 %v3221_v54, %s3852_s4  ;;  %v3223_v12 = vcombine.low %v3184_v47, %v3216_v10  ;;  %v3087_v39 = vcombine.low %v3048_v36, %v3080_v26  ;;  %v3456_v48 = vrot.slane %v3442_v5, %v6043_v3  ;;  %v3224_v53 = vcombine.high %v3184_v47, %v3216_v10 }
 0x6d8   :  { %3510 = vrot.lane.b32.xlu0 %v3085_v19, %s3852_s4  ;;  %v3320_v20 = vrot.slane %v3306_v1, %v6043_v3  ;;  %v3088_v56 = vcombine.high %v3048_v36, %v3080_v26 }
 0x6d9   :  { %v3495_v15 = vcombine.low %v3456_v48, %v3488_v57  ;;  %v3496_v28 = vcombine.high %v3456_v48, %v3488_v57 }
 0x6da   :  { %v3359_v8 = vcombine.low %v3320_v20, %v3352_v31  ;;  %v3360_v9 = vcombine.high %v3320_v20, %v3352_v31 }
 0x6db   :  { %3594 = vrot.lane.b32.xlu1 %v3493_v23, %s3852_s4 }
 0x6dc   :  { %3566 = vrot.lane.b32.xlu0 %v3357_v44, %s3852_s4 }
 0x6df   :  { %3542 = vrot.lane.b32.xlu1 %v3222_v50, %s3855_s11 }
 0x6e0   :  { %3514 = vrot.lane.b32.xlu0 %v3086_v37, %s3855_s11 }
 0x6e3   :  { %3598 = vrot.lane.b32.xlu1 %v3494_v6, %s3855_s11 }
 0x6e4   :  { %3570 = vrot.lane.b32.xlu0 %v3358_v7, %s3855_s11 }
 0x6e7   :  { %3546 = vrot.lane.b32.xlu1 %v3223_v12, %s3854_s10 }
 0x6e8   :  { %3518 = vrot.lane.b32.xlu0 %v3087_v39, %s3854_s10 }
 0x6eb   :  { %3602 = vrot.lane.b32.xlu1 %v3495_v15, %s3854_s10 }
 0x6ec   :  { %3574 = vrot.lane.b32.xlu0 %v3359_v8, %s3854_s10 }
 0x6ef   :  { %3550 = vrot.lane.b32.xlu1 %v3224_v53, %s3853_s9 }
 0x6f0   :  { %3522 = vrot.lane.b32.xlu0 %v3088_v56, %s3853_s9 }
 0x6f3   :  { %3606 = vrot.lane.b32.xlu1 %v3496_v28, %s3853_s9 }
 0x6f4   :  { %3578 = vrot.lane.b32.xlu0 %v3360_v9, %s3853_s9 }
 0x731   :  { %v3527_v3 = vpop.permute.xlu1 %3526 }
 0x732   :  { %v3499_v43 = vpop.permute.xlu0 %3498  ;;  %v3622_v23 = vsel %vm77_vm0, %v3217_v2, %v3527_v3 }
 0x733   :  { %v3609_v44 = vsel %vm77_vm0, %v3081_v38, %v3499_v43 }
 0x735   :  { %v3583_v29 = vpop.permute.xlu1 %3582 }
 0x736   :  { %v3555_v63 = vpop.permute.xlu0 %3554  ;;  %v3636_v41 = vsel %vm77_vm0, %v3489_v51, %v3583_v29 }
 0x737   :  { %v3629_v24 = vsel %vm77_vm0, %v3353_v59, %v3555_v63 }
 0x739   :  { %v3531_v13 = vpop.permute.xlu1 %3530 }
 0x73a   :  { %v3503_v42 = vpop.permute.xlu0 %3502  ;;  %v3623_v45 = vsel %vm3610_vm1, %v3622_v23, %v3531_v13 }
 0x73b   :  { %v3611_v62 = vsel %vm3610_vm1, %v3609_v44, %v3503_v42 }
 0x73d   :  { %v3587_v22 = vpop.permute.xlu1 %3586 }
 0x73e   :  { %v3559_v21 = vpop.permute.xlu0 %3558  ;;  %v3637_v10 = vsel %vm3610_vm1, %v3636_v41, %v3587_v22 }
 0x73f   :  { %v3630_v26 = vsel %vm3610_vm1, %v3629_v24, %v3559_v21 }
 0x741   :  { %v3535_v16 = vpop.permute.xlu1 %3534 }
 0x742   :  { %v3507_v35 = vpop.permute.xlu0 %3506  ;;  %v3624_v11 = vsel %vm3612_vm2, %v3623_v45, %v3535_v16 }
 0x743   :  { %v3613_v49 = vsel %vm3612_vm2, %v3611_v62, %v3507_v35 }
 0x745   :  { %v3591_v58 = vpop.permute.xlu1 %3590 }
 0x746   :  { %v3563_v30 = vpop.permute.xlu0 %3562  ;;  %v3638_v51 = vsel %vm3612_vm2, %v3637_v10, %v3591_v58 }
 0x747   :  { %v3631_v34 = vsel %vm3612_vm2, %v3630_v26, %v3563_v30 }
 0x749   :  { %v3539_v40 = vpop.permute.xlu1 %3538 }
 0x74a   :  { %v3511_v14 = vpop.permute.xlu0 %3510  ;;  %v3625_v33 = vsel %vm3614_vm3, %v3624_v11, %v3539_v40 }
 0x74b   :  { %v3615_v55 = vsel %vm3614_vm3, %v3613_v49, %v3511_v14 }
 0x74d   :  { %v3595_v4 = vpop.permute.xlu1 %3594 }
 0x74e   :  { %v3567_v46 = vpop.permute.xlu0 %3566  ;;  %v3639_v6 = vsel %vm3614_vm3, %v3638_v51, %v3595_v4 }
 0x74f   :  { %v3632_v7 = vsel %vm3614_vm3, %v3631_v34, %v3567_v46 }
 0x751   :  { %v3543_v18 = vpop.permute.xlu1 %3542 }
 0x752   :  { %v3515_v32 = vpop.permute.xlu0 %3514  ;;  %v3626_v2 = vsel %vm3616_vm4, %v3625_v33, %v3543_v18 }
 0x753   :  { %v3617_v38 = vsel %vm3616_vm4, %v3615_v55, %v3515_v32 }
 0x755   :  { %v3599_v54 = vpop.permute.xlu1 %3598 }
 0x756   :  { %v3571_v19 = vpop.permute.xlu0 %3570  ;;  %v3640_v47 = vsel %vm3616_vm4, %v3639_v6, %v3599_v54 }
 0x757   :  { %v3633_v36 = vsel %vm3616_vm4, %v3632_v7, %v3571_v19 }
 0x759   :  { %v3547_v52 = vpop.permute.xlu1 %3546 }
 0x75a   :  { %v3519_v60 = vpop.permute.xlu0 %3518  ;;  %v3627_v0 = vsel %vm3618_vm5, %v3626_v2, %v3547_v52 }
 0x75b   :  { %v3619_v25 = vsel %vm3618_vm5, %v3617_v38, %v3519_v60 }
 0x75d   :  { %v3603_v50 = vpop.permute.xlu1 %3602 }
 0x75e   :  { %v3575_v37 = vpop.permute.xlu0 %3574  ;;  %v3641_v5 = vsel %vm3618_vm5, %v3640_v47, %v3603_v50 }
 0x75f   :  { %v3634_v1 = vsel %vm3618_vm5, %v3633_v36, %v3575_v37 }
 0x761   :  { %v3551_v17 = vpop.permute.xlu1 %3550 }
 0x762   :  { %v3523_v27 = vpop.permute.xlu0 %3522  ;;  %v3628_v61 = vsel %vm3620_vm6, %v3627_v0, %v3551_v17 }
 0x763   :  { %v3621_v59 = vsel %vm3620_vm6, %v3619_v25, %v3523_v27  ;;  %3644 = vst [vmem:[#allocation8 + $0x18] sm:$0xff] %v3628_v61 }
 0x764   :  { %3643 = vst [vmem:[#allocation8 + $0x10] sm:$0xff] %v3621_v59 }
 0x765   :  { %v3607_v57 = vpop.permute.xlu1 %3606 }
 0x766   :  { %v3579_v31 = vpop.permute.xlu0 %3578  ;;  %v3642_v12 = vsel %vm3620_vm6, %v3641_v5, %v3607_v57 }
 0x767   :  { %v3635_v39 = vsel %vm3620_vm6, %v3634_v1, %v3579_v31  ;;  %3646 = vst [vmem:[#allocation8 + $0x28] sm:$0xff] %v3642_v12 }
 0x768   :  { %3645 = vst [vmem:[#allocation8 + $0x20] sm:$0xff] %v3635_v39 }
 0x769   :  { %3826 = shalt.err (!%p3823_p0)
}
 0x76a   :  { %s3827_s17 = scalar_lea.hbm %s6286_s5, 768 }
 0x76b   :  { %p3828_p1 = scmp.ne.s32.totalorder %s6286_s5, %s3827_s17  ;;  %p3831_p2 = scmp.lt.u32.totalorder %s3827_s17, %s6286_s5 }
 0x76d   :  { %p3833_p3 = pnand %p3831_p2, %p3828_p1 }
 0x76f   :  { %3836 = shalt.err (!%p3833_p3)
}
 0x770   :  { %3656 = dma.vmem_to_hbm [thread:$0]  %s3654_s13, 768, %s6286_s5, [#allocation4]  }
 0x771   :  { %3841 = dma.done.wait [#allocation4], 768  }
 0x772   :  { %3842 = vsyncadd [#allocation4], 4294966528 }
 0x773   :  { %3660 = vsyncpa [#allocation3], 1 }
 0x774   :  { %3661 = vsyncpa [#allocation6], 1 }
 0x775   :  { %3662 = vsyncpa [#allocation4], 1 }

</bundles_post_ra>
